<compile_context>
chip_gen: v6e
topology: v6e:2x2x1
jax: 0.10.0
libtpu: 0.0.40
codegen_flags: <defaults>
</compile_context>

<pallas_src>
import functools

import jax
import jax.numpy as jnp
from jax import lax
from jax.experimental import pallas as pl
from jax.experimental.pallas import tpu as pltpu


# MXU operand dtype.  bf16 halves weight/activation vreg traffic and is the
# native MXU path on v5e/v6e/v7x; accumulation is f32 and all elementwise /
# softmax / normalize math stays f32.  Set to jnp.float32 for strict parity.
MM_DTYPE = jnp.bfloat16


# ----------------------------------------------------------------------------
# helpers
# ----------------------------------------------------------------------------

def _act(h, act):
    if act == "relu":
        return jnp.maximum(h, 0.0)
    if act == "tanh":
        return jnp.tanh(h)
    return h


def _mm(a, w):
    """MXU matmul with bf16 operands and f32 accumulation."""
    return jnp.dot(a.astype(MM_DTYPE), w.astype(MM_DTYPE),
                   preferred_element_type=jnp.float32)


def _row_tile(n, cap=512, min_grid=2):
    """Largest sublane-aligned row tile <= cap dividing n, preferring a grid of
    >= min_grid programs (v7x has 2 TensorCores; grid=1 gives no megacore
    sharding and no DMA/compute pipelining)."""
    cap = min(cap, n)
    cap -= cap % 8
    best = None
    for t in range(cap, 7, -8):
        if n % t == 0:
            if best is None:
                best = t
            if n // t >= min_grid:
                return t
    return best if best is not None else n


# ----------------------------------------------------------------------------
# fused MLP kernel (all Linear+act layers in one pallas_call, optional L2 norm)
# ----------------------------------------------------------------------------

def _fused_mlp_kernel(*refs, n_layers, hidden_act, output_act, l2_normalize):
    x_ref, o_ref = refs[0], refs[-1]
    wrefs = refs[1:-1]
    h = x_ref[...]
    for li in range(n_layers):
        w = wrefs[2 * li][...]
        b = wrefs[2 * li + 1][...]
        h = _act(_mm(h, w) + b, output_act if li == n_layers - 1 else hidden_act)
    if l2_normalize:
        # F.normalize(p=2, dim=1, eps=1e-12): x / max(||x||, eps)
        ss = jnp.sum(h * h, axis=-1, keepdims=True)
        h = h * lax.rsqrt(jnp.maximum(ss, 1e-24))
    o_ref[...] = h.astype(o_ref.dtype)


def pallas_fused_mlp(x, params, hidden_act, output_act, l2_normalize=False):
    n, din = x.shape
    dout = params[-1][0].shape[1]
    tm = _row_tile(n)
    args = [x]
    in_specs = [pl.BlockSpec((tm, din), lambda i: (i, 0))]
    for (w, b) in params:
        args += [w.astype(MM_DTYPE), b.reshape(1, -1)]
        in_specs += [pl.BlockSpec(w.shape, lambda i: (0, 0)),
                     pl.BlockSpec((1, w.shape[1]), lambda i: (0, 0))]
    kernel = functools.partial(
        _fused_mlp_kernel, n_layers=len(params),
        hidden_act=hidden_act, output_act=output_act, l2_normalize=l2_normalize)
    return pl.pallas_call(
        kernel,
        out_shape=jax.ShapeDtypeStruct((n, dout), jnp.float32),
        grid=(n // tm,),
        in_specs=in_specs,
        out_specs=pl.BlockSpec((tm, dout), lambda i: (i, 0)),
        compiler_params=pltpu.CompilerParams(
            dimension_semantics=("parallel",)),
    )(*args)


# ----------------------------------------------------------------------------
# fused node_encoder + node_network_0 (two MLPs, one kernel, two outputs)
# ----------------------------------------------------------------------------

def _enc_node0_kernel(*refs, n_enc, n_n0, hidden_act):
    it = iter(refs)
    x_ref = next(it)
    enc = [(next(it), next(it)) for _ in range(n_enc)]
    nd0 = [(next(it), next(it)) for _ in range(n_n0)]
    v_ref = next(it)
    xo_ref = next(it)
    h = x_ref[...]
    for (w_ref, b_ref) in enc:                     # output_act == hidden_act
        h = _act(_mm(h, w_ref[...]) + b_ref[...], hidden_act)
    v_ref[...] = h.astype(v_ref.dtype)
    for (w_ref, b_ref) in nd0:
        h = _act(_mm(h, w_ref[...]) + b_ref[...], hidden_act)
    xo_ref[...] = h.astype(xo_ref.dtype)


def pallas_encoder_node0(x, enc_params, n0_params, hidden_act):
    n, din = x.shape
    d_v = enc_params[-1][0].shape[1]
    d_x = n0_params[-1][0].shape[1]
    tm = _row_tile(n)
    args = [x]
    in_specs = [pl.BlockSpec((tm, din), lambda i: (i, 0))]
    for (w, b) in list(enc_params) + list(n0_params):
        args += [w.astype(MM_DTYPE), b.reshape(1, -1)]
        in_specs += [pl.BlockSpec(w.shape, lambda i: (0, 0)),
                     pl.BlockSpec((1, w.shape[1]), lambda i: (0, 0))]
    kernel = functools.partial(_enc_node0_kernel, n_enc=len(enc_params),
                               n_n0=len(n0_params), hidden_act=hidden_act)
    return pl.pallas_call(
        kernel,
        out_shape=(jax.ShapeDtypeStruct((n, d_v), jnp.float32),
                   jax.ShapeDtypeStruct((n, d_x), jnp.float32)),
        grid=(n // tm,),
        in_specs=in_specs,
        out_specs=(pl.BlockSpec((tm, d_v), lambda i: (i, 0)),
                   pl.BlockSpec((tm, d_x), lambda i: (i, 0))),
        compiler_params=pltpu.CompilerParams(
            dimension_semantics=("parallel",)),
    )(*args)


# ----------------------------------------------------------------------------
# fused pairwise-distance + k-NN selection (N x N never touches HBM)
# ----------------------------------------------------------------------------

def _knn_kernel(xr_ref, xat_ref, sqc_ref, nbr_ref, *, k):
    xr = xr_ref[...]                                     # (tm, d)  query rows
    xat = xat_ref[...]                                   # (d, n)   all points^T
    sq_c = sqc_ref[...]                                  # (1, n)   precomputed
    tm = xr.shape[0]
    n = xat.shape[1]
    sq_r = jnp.sum(xr * xr, axis=-1, keepdims=True)      # (tm, 1)
    gram = jnp.dot(xr, xat, preferred_element_type=jnp.float32)   # (tm, n) MXU
    d2 = jnp.maximum(sq_r + sq_c - 2.0 * gram, 0.0)      # clamp fp cancellation
    big = jnp.float32(3.0e38)
    r0 = pl.program_id(0) * tm
    row = r0 + lax.broadcasted_iota(jnp.int32, (tm, n), 0)
    col = lax.broadcasted_iota(jnp.int32, (tm, n), 1)
    colf = col.astype(jnp.float32)
    d2 = jnp.where(row == col, big, d2)                  # mask self-loops
    for t in range(k):                                   # running k-smallest
        m = jnp.min(d2, axis=-1, keepdims=True)                      # (tm, 1)
        idx = jnp.min(jnp.where(d2 == m, colf, jnp.float32(n)),
                      axis=-1, keepdims=True)                        # (tm, 1)
        nbr_ref[:, t:t + 1] = idx.astype(jnp.int32)
        d2 = jnp.where(colf == idx, big, d2)


def pallas_knn(emb, k):
    n, d = emb.shape
    # VMEM-aware row tile: ~6 live (tm, n) 32-bit temporaries per grid step,
    # budget ~20 MiB so the kernel fits v7x's 64 MiB (and the default limits
    # once raised below).
    budget = 20 * 1024 * 1024
    cap = max(8, budget // (6 * 4 * n))
    tm = _row_tile(n, cap=min(cap, 1024))
    sq_c = jnp.sum(emb * emb, axis=-1)[None, :]          # (1, n), computed once
    return pl.pallas_call(
        functools.partial(_knn_kernel, k=k),
        out_shape=jax.ShapeDtypeStruct((n, k), jnp.int32),
        grid=(n // tm,),
        in_specs=[pl.BlockSpec((tm, d), lambda i: (i, 0)),
                  pl.BlockSpec((d, n), lambda i: (0, 0)),
                  pl.BlockSpec((1, n), lambda i: (0, 0))],
        out_specs=pl.BlockSpec((tm, k), lambda i: (i, 0)),
        compiler_params=pltpu.CompilerParams(
            dimension_semantics=("parallel",),
            vmem_limit_bytes=48 * 1024 * 1024),
    )(emb, emb.T, sq_c)


# ----------------------------------------------------------------------------
# fused GNN message-passing step (mask-free, slot-major lane-dense edges)
#   edge-MLP (split first/last layers) + per-destination softmax + weighted
#   scatter-add + node-MLP, all in one kernel.  Edges for node n are its k
#   nearest neighbors (slot t); x[start] arrives as (tm, k*nr) and the edge
#   representation lives as (tm, k*er) in HBM between sub-steps.
# ----------------------------------------------------------------------------

def _gnn_step_kernel(*refs, k, nr, er, has_ep, n_edge_mid, n_node_rest,
                     hidden_act):
    it = iter(refs)
    x_ref = next(it)                        # (tm, nr)
    xsw_ref = next(it)                      # (tm, k*nr)  x[start], slot-major
    ep_ref = next(it) if has_ep else None   # (tm, k*er)  previous edge rep
    w0s_ref = next(it)                      # edge layer0: x[start] rows
    w0e_ref = next(it)                      # edge layer0: x[end] rows
    w0p_ref = next(it) if has_ep else None  # edge layer0: e_prev rows
    b0_ref = next(it)
    edge_mid = [(next(it), next(it)) for _ in range(n_edge_mid)]
    wle_ref = next(it)                      # edge last layer, e columns
    ble_ref = next(it)
    wlw_ref = next(it)                      # edge last layer, logit column
    blw_ref = next(it)
    v0x_ref = next(it)                      # node layer0: x rows
    v0a_ref = next(it)                      # node layer0: agg rows
    c0_ref = next(it)
    node_rest = [(next(it), next(it)) for _ in range(n_node_rest)]
    x_out_ref = next(it)                    # (tm, nr)
    e_out_ref = next(it)                    # (tm, k*er)

    x = x_ref[...]
    xsw = xsw_ref[...]
    ep = ep_ref[...] if has_ep else None

    # x[end] contribution + bias: shared by all k edges of a destination node,
    # computed once per tile (no one-hot broadcast matmul).
    t_end = _mm(x, w0e_ref[...]) + b0_ref[...]            # (tm, eh)

    e_slots, logit_slots = [], []
    for t in range(k):                                    # k small, static
        h = _mm(xsw[:, t * nr:(t + 1) * nr], w0s_ref[...]) + t_end
        if has_ep:
            h = h + _mm(ep[:, t * er:(t + 1) * er], w0p_ref[...])
        h = _act(h, hidden_act)
        for (w_ref, b_ref) in edge_mid:
            h = _act(_mm(h, w_ref[...]) + b_ref[...], hidden_act)
        # last edge layer split into lane-separate outputs (no strided slices)
        e_slots.append(_act(_mm(h, wle_ref[...]) + ble_ref[...], hidden_act))
        logit_slots.append(_act(_mm(h, wlw_ref[...]) + blw_ref[...], hidden_act))

    # per-destination softmax over the k incoming edges: pure elementwise ops
    # across the k slots (no (E, N) one-hot, no cross-sublane reductions).
    m = logit_slots[0]
    for t in range(1, k):
        m = jnp.maximum(m, logit_slots[t])
    p = [jnp.exp(l - m) for l in logit_slots]
    denom = p[0]
    for t in range(1, k):
        denom = denom + p[t]
    inv = 1.0 / denom                                     # exact (parity)
    agg = (p[0] * inv) * e_slots[0]
    for t in range(1, k):
        agg = agg + (p[t] * inv) * e_slots[t]             # (tm, er)
    # TODO(synk): if a radius cut ever creates empty groups, guard denom here.

    # node MLP on [x | agg]: first-layer weight split, no concat
    g = _act(_mm(x, v0x_ref[...]) + _mm(agg, v0a_ref[...]) + c0_ref[...],
             hidden_act)
    for (w_ref, b_ref) in node_rest:
        g = _act(_mm(g, w_ref[...]) + b_ref[...], hidden_act)

    x_out_ref[...] = g.astype(x_out_ref.dtype)
    for t in range(k):
        e_out_ref[:, t * er:(t + 1) * er] = e_slots[t].astype(e_out_ref.dtype)


def pallas_gnn_step(x, xs_wide, e_prev, edge_params, node_params, *, k,
                    hidden_act="relu"):
    n, nr = x.shape
    er = node_params[0][0].shape[0] - nr
    has_ep = e_prev is not None
    assert len(edge_params) >= 2, "single-layer edge MLP not supported"
    # TODO(synk): a 1-layer edge MLP would need a joint row/column weight split.

    tm = _row_tile(n, cap=512)

    # edge first layer: rows [x[start] | x[end] | e_prev]
    w0, b0 = edge_params[0]
    w0s, w0e = w0[:nr], w0[nr:2 * nr]
    w0p = w0[2 * nr:] if has_ep else None
    # edge last layer: columns [e | w_logit]
    wl, bl = edge_params[-1]
    wle, ble = wl[:, :er], bl[:er]
    wlw, blw = wl[:, er:], bl[er:]
    edge_mid = edge_params[1:-1]
    # node first layer: rows [x | agg]
    v0, c0 = node_params[0]
    v0x, v0a = v0[:nr], v0[nr:]
    node_rest = node_params[1:]

    args = [x, xs_wide] + ([e_prev] if has_ep else [])
    in_specs = [pl.BlockSpec((tm, nr), lambda i: (i, 0)),
                pl.BlockSpec((tm, k * nr), lambda i: (i, 0))]
    if has_ep:
        in_specs.append(pl.BlockSpec((tm, k * er), lambda i: (i, 0)))

    def add_full(a, cast=True):
        a2 = a if a.ndim == 2 else a.reshape(1, -1)
        if cast:                              # weights -> bf16, biases stay f32
            a2 = a2.astype(MM_DTYPE)
        args.append(a2)
        in_specs.append(pl.BlockSpec(a2.shape, lambda i: (0, 0)))

    add_full(w0s); add_full(w0e)
    if has_ep:
        add_full(w0p)
    add_full(b0, cast=False)
    for (w, b) in edge_mid:
        add_full(w); add_full(b, cast=False)
    add_full(wle); add_full(ble, cast=False)
    add_full(wlw); add_full(blw, cast=False)
    add_full(v0x); add_full(v0a); add_full(c0, cast=False)
    for (w, b) in node_rest:
        add_full(w); add_full(b, cast=False)

    kernel = functools.partial(
        _gnn_step_kernel, k=k, nr=nr, er=er, has_ep=has_ep,
        n_edge_mid=len(edge_mid), n_node_rest=len(node_rest),
        hidden_act=hidden_act)

    x_out, e_out = pl.pallas_call(
        kernel,
        out_shape=(jax.ShapeDtypeStruct((n, nr), jnp.float32),
                   jax.ShapeDtypeStruct((n, k * er), jnp.float32)),
        grid=(n // tm,),
        in_specs=in_specs,
        out_specs=(pl.BlockSpec((tm, nr), lambda i: (i, 0)),
                   pl.BlockSpec((tm, k * er), lambda i: (i, 0))),
        compiler_params=pltpu.CompilerParams(
            dimension_semantics=("parallel",),
            vmem_limit_bytes=48 * 1024 * 1024),
    )(*args)
    return x_out, e_out


# ----------------------------------------------------------------------------
# parameter init (deterministic, PyTorch-Linear-like uniform bounds)
# ----------------------------------------------------------------------------

def init_linear(key, din, dout):
    kw, kb = jax.random.split(key)
    bound = 1.0 / float(din) ** 0.5
    w = jax.random.uniform(kw, (din, dout), jnp.float32, -bound, bound)
    b = jax.random.uniform(kb, (dout,), jnp.float32, -bound, bound)
    return w, b


def init_mlp(key, sizes):
    keys = jax.random.split(key, len(sizes) - 1)
    return [init_linear(k, din, dout)
            for k, din, dout in zip(keys, sizes[:-1], sizes[1:])]


def init_eggnet_params(key, hp):
    in_ch = len(hp["node_features"])
    nr, er = hp["node_rep_dim"], hp["edge_rep_dim"]
    keys = jax.random.split(key, 6)

    enc_sizes = [in_ch] + [hp["encoder_hidden"]] * (hp["n_encoder_layers"] - 1) + [nr]
    n0_sizes = [nr] + [hp["node_0_hidden"]] * (hp["n_node_0_layers"] - 1) + [nr]
    dec_sizes = [nr] + [hp["decoder_hidden"]] * (hp["n_decoder_layers"] - 1) + [hp["node_pspace_dim"]]
    node_sizes = [nr + er] + [hp["node_hidden"]] * (hp["n_node_layers"] - 1) + [nr]

    n_edge_nets = hp["n_iters"] * hp["n_gnns_per_iter"]
    n_node_nets = hp["n_iters"] * hp["n_gnns_per_iter"]
    n_decoders = hp["n_iters"] + 1

    ek = jax.random.split(keys[2], max(n_edge_nets, 1))
    nk = jax.random.split(keys[3], max(n_node_nets, 1))
    dk = jax.random.split(keys[4], n_decoders)

    edge_networks = []
    for i in range(n_edge_nets):
        ein = 2 * nr if (i % hp["n_gnns_per_iter"] == 0) else 2 * nr + er
        esizes = [ein] + [hp["edge_hidden"]] * (hp["n_edge_layers"] - 1) + [er + 1]
        edge_networks.append(init_mlp(ek[i], esizes))

    return {
        "node_encoder": init_mlp(keys[0], enc_sizes),
        "node_network_0": init_mlp(keys[1], n0_sizes),
        "edge_networks": edge_networks,
        "node_networks": [init_mlp(nk[i], node_sizes) for i in range(n_node_nets)],
        "node_decoders": [init_mlp(dk[i], dec_sizes) for i in range(n_decoders)],
    }


# ----------------------------------------------------------------------------
# EggNet forward
# ----------------------------------------------------------------------------

def eggnet_forward(params, hp, node_feats):
    hidden_act = "relu"    # hparams['hidden_activation'] = ReLU
    out_act = "tanh"       # hparams['output_activation'] = Tanh (decoders only)
    k = hp["knn_train"]
    nr = hp["node_rep_dim"]
    n_nodes = node_feats.shape[0]

    x_in = node_feats.astype(jnp.float32)          # torch.stack(...).float()
    v, x = pallas_encoder_node0(x_in, params["node_encoder"],
                                params["node_network_0"], hidden_act)

    for i in range(hp["n_iters"]):
        # build_edges: decode -> normalize -> fused brute-force k-NN
        emb = pallas_fused_mlp(x, params["node_decoders"][i], hidden_act, out_act,
                               l2_normalize=hp["embedding_norm"])
        nbr = pallas_knn(emb, k)           # (N, k) int32 neighbors, self excluded
        # TODO(synk): cu_knn.get_graph edge ordering / r_max radius cut not
        #             reproduced (ordering is irrelevant to softmax/scatter).

        if hp.get("recycle_node_representation", True):
            x = v

        e = None
        for j in range(hp["n_gnns_per_iter"]):
            # gather x[start] in slot-major, lane-dense (N, k*nr) layout
            # TODO(synk): could move in-kernel (scalar-prefetched nbr + resident
            #             x) to drop this (E, nr) HBM roundtrip per sub-step.
            xs_wide = jnp.take(x, nbr.reshape(-1), axis=0).reshape(n_nodes, k * nr)
            idx = i * hp["n_gnns_per_iter"] + j
            x, e = pallas_gnn_step(x, xs_wide, e,
                                   params["edge_networks"][idx],
                                   params["node_networks"][idx],
                                   k=k, hidden_act=hidden_act)

    hit_embedding = pallas_fused_mlp(x, params["node_decoders"][-1],
                                     hidden_act, out_act,
                                     l2_normalize=hp["embedding_norm"])
    return hit_embedding


# ----------------------------------------------------------------------------

if __name__ == "__main__":
    hp = {
        "node_features": ["f0", "f1", "f2", "f3"],   # in_channels = 4
        "encoder_hidden": 32, "n_encoder_layers": 2,
        "node_rep_dim": 16, "edge_rep_dim": 8,
        "edge_hidden": 32, "n_edge_layers": 2,
        "node_0_hidden": 32, "n_node_0_layers": 2,
        "node_hidden": 32, "n_node_layers": 2,
        "decoder_hidden": 32, "n_decoder_layers": 2,
        "node_pspace_dim": 8,
        "n_iters": 1, "n_gnns_per_iter": 2,
        "recurrent": False, "recurrent_gnn": False,
        "layernorm": False, "batchnorm": False,
        "hidden_activation": "ReLU", "output_activation": "Tanh",
        "embedding_norm": True,
        "knn_train": 4,
        "recycle_node_representation": True,
    }

    N = 32  # number of hits/nodes

    key = jax.random.PRNGKey(0)
    kparams, kx = jax.random.split(key)
    params = init_eggnet_params(kparams, hp)

    # batch[feature] stacked along the last dim -> (N, 4)
    node_feats = jax.random.normal(kx, (N, len(hp["node_features"])), jnp.float32)

    fwd = jax.jit(lambda p, nf: eggnet_forward(p, hp, nf))
    hit_embedding = jax.block_until_ready(fwd(params, node_feats))

    assert hit_embedding.shape == (N, hp["node_pspace_dim"])
    assert bool(jnp.all(jnp.isfinite(hit_embedding)))
    print("KERNEL_OK")
</pallas_src>

<mosaic_0001>
module attributes {stable_mosaic.version = 11 : i64} {
  func.func @_fused_mlp_kernel(%arg0: i32, %arg1: memref<16x16xf32, #tpu.memory_space<vmem>>, %arg2: memref<16x32xbf16, #tpu.memory_space<vmem>>, %arg3: memref<1x32xf32, #tpu.memory_space<vmem>>, %arg4: memref<32x8xbf16, #tpu.memory_space<vmem>>, %arg5: memref<1x8xf32, #tpu.memory_space<vmem>>, %arg6: memref<16x8xf32, #tpu.memory_space<vmem>>) attributes {dimension_semantics = [#tpu.dimension_semantics<parallel>], iteration_bounds = array<i64: 2>, scalar_prefetch = 0 : i64, scratch_operands = 0 : i64, tpu.core_type = #tpu.core_type<tc>, window_params = [{transform_indices = @transform_0, window_bounds = array<i64: 16, 16>}, {pipeline_mode = #tpu.pipeline_mode<synchronous>, transform_indices = @transform_1, window_bounds = array<i64: 16, 32>}, {pipeline_mode = #tpu.pipeline_mode<synchronous>, transform_indices = @transform_2, window_bounds = array<i64: 1, 32>}, {pipeline_mode = #tpu.pipeline_mode<synchronous>, transform_indices = @transform_3, window_bounds = array<i64: 32, 8>}, {pipeline_mode = #tpu.pipeline_mode<synchronous>, transform_indices = @transform_4, window_bounds = array<i64: 1, 8>}, {transform_indices = @transform_5, window_bounds = array<i64: 16, 8>}]} {
    %c0 = arith.constant 0 : index
    %c0_0 = arith.constant 0 : index
    %0 = vector.load %arg1[%c0, %c0_0] : memref<16x16xf32, #tpu.memory_space<vmem>>, vector<16x16xf32>
    %c0_1 = arith.constant 0 : index
    %c0_2 = arith.constant 0 : index
    %1 = vector.load %arg2[%c0_1, %c0_2] : memref<16x32xbf16, #tpu.memory_space<vmem>>, vector<16x32xbf16>
    %c0_3 = arith.constant 0 : index
    %c0_4 = arith.constant 0 : index
    %2 = vector.load %arg3[%c0_3, %c0_4] : memref<1x32xf32, #tpu.memory_space<vmem>>, vector<1x32xf32>
    %3 = arith.truncf %0 : vector<16x16xf32> to vector<16x16xbf16>
    %cst = arith.constant dense<0.000000e+00> : vector<16x32xf32>
    %4 = tpu.matmul %3, %1, %cst {dimension_numbers = #tpu.dot_dimension_numbers<[1], [0], [0], [1], [0, 0, 1, 1], [], []>} : vector<16x16xbf16>, vector<16x32xbf16>, vector<16x32xf32> -> vector<16x32xf32>
    %5 = vector.broadcast %2 : vector<1x32xf32> to vector<16x32xf32>
    %6 = arith.addf %4, %5 : vector<16x32xf32>
    %cst_5 = arith.constant 0.000000e+00 : f32
    %7 = vector.broadcast %cst_5 : f32 to vector<16x32xf32>
    %8 = arith.maximumf %6, %7 : vector<16x32xf32>
    %c0_6 = arith.constant 0 : index
    %c0_7 = arith.constant 0 : index
    %9 = vector.load %arg4[%c0_6, %c0_7] : memref<32x8xbf16, #tpu.memory_space<vmem>>, vector<32x8xbf16>
    %c0_8 = arith.constant 0 : index
    %c0_9 = arith.constant 0 : index
    %10 = vector.load %arg5[%c0_8, %c0_9] : memref<1x8xf32, #tpu.memory_space<vmem>>, vector<1x8xf32>
    %11 = arith.truncf %8 : vector<16x32xf32> to vector<16x32xbf16>
    %cst_10 = arith.constant dense<0.000000e+00> : vector<16x8xf32>
    %12 = tpu.matmul %11, %9, %cst_10 {dimension_numbers = #tpu.dot_dimension_numbers<[1], [0], [0], [1], [0, 0, 1, 1], [], []>} : vector<16x32xbf16>, vector<32x8xbf16>, vector<16x8xf32> -> vector<16x8xf32>
    %13 = vector.broadcast %10 : vector<1x8xf32> to vector<16x8xf32>
    %14 = arith.addf %12, %13 : vector<16x8xf32>
    %15 = math.tanh %14 : vector<16x8xf32>
    %16 = arith.mulf %15, %15 : vector<16x8xf32>
    %cst_11 = arith.constant dense<0.000000e+00> : vector<16xf32>
    %17 = vector.multi_reduction <add>, %16, %cst_11 [1] : vector<16x8xf32> to vector<16xf32>
    %18 = vector.shape_cast %17 : vector<16xf32> to vector<16x1xf32>
    %cst_12 = arith.constant 1.000000e-24 : f32
    %19 = vector.broadcast %cst_12 : f32 to vector<16x1xf32>
    %20 = arith.maximumf %18, %19 : vector<16x1xf32>
    %21 = math.rsqrt %20 : vector<16x1xf32>
    %22 = vector.broadcast %21 : vector<16x1xf32> to vector<16x8xf32>
    %23 = arith.mulf %15, %22 : vector<16x8xf32>
    %c0_13 = arith.constant 0 : index
    %c0_14 = arith.constant 0 : index
    %24 = vector.load %arg6[%c0_13, %c0_14] : memref<16x8xf32, #tpu.memory_space<vmem>>, vector<16x8xf32>
    tpu.vector_store %arg6[%c0_13, %c0_14], %23 {strides = array<i32>} : memref<16x8xf32, #tpu.memory_space<vmem>>, vector<16x8xf32>,
    return
  }
  func.func @transform_0(%arg0: i32) -> (i32, i32) {
    %c0_i32 = arith.constant 0 : i32
    %c0_i32_0 = arith.constant 0 : i32
    return %arg0, %c0_i32 : i32, i32
  }
  func.func @transform_1(%arg0: i32) -> (i32, i32) {
    %c0_i32 = arith.constant 0 : i32
    %c0_i32_0 = arith.constant 0 : i32
    %c0_i32_1 = arith.constant 0 : i32
    return %c0_i32, %c0_i32_0 : i32, i32
  }
  func.func @transform_2(%arg0: i32) -> (i32, i32) {
    %c0_i32 = arith.constant 0 : i32
    %c0_i32_0 = arith.constant 0 : i32
    %c0_i32_1 = arith.constant 0 : i32
    return %c0_i32, %c0_i32_0 : i32, i32
  }
  func.func @transform_3(%arg0: i32) -> (i32, i32) {
    %c0_i32 = arith.constant 0 : i32
    %c0_i32_0 = arith.constant 0 : i32
    %c0_i32_1 = arith.constant 0 : i32
    return %c0_i32, %c0_i32_0 : i32, i32
  }
  func.func @transform_4(%arg0: i32) -> (i32, i32) {
    %c0_i32 = arith.constant 0 : i32
    %c0_i32_0 = arith.constant 0 : i32
    %c0_i32_1 = arith.constant 0 : i32
    return %c0_i32, %c0_i32_0 : i32, i32
  }
  func.func @transform_5(%arg0: i32) -> (i32, i32) {
    %c0_i32 = arith.constant 0 : i32
    %c0_i32_0 = arith.constant 0 : i32
    return %arg0, %c0_i32 : i32, i32
  }
}

module attributes {stable_mosaic.version = 11 : i64} {
  func.func @_enc_node0_kernel(%arg0: i32, %arg1: memref<16x4xf32, #tpu.memory_space<vmem>>, %arg2: memref<4x32xbf16, #tpu.memory_space<vmem>>, %arg3: memref<1x32xf32, #tpu.memory_space<vmem>>, %arg4: memref<32x16xbf16, #tpu.memory_space<vmem>>, %arg5: memref<1x16xf32, #tpu.memory_space<vmem>>, %arg6: memref<16x32xbf16, #tpu.memory_space<vmem>>, %arg7: memref<1x32xf32, #tpu.memory_space<vmem>>, %arg8: memref<32x16xbf16, #tpu.memory_space<vmem>>, %arg9: memref<1x16xf32, #tpu.memory_space<vmem>>, %arg10: memref<16x16xf32, #tpu.memory_space<vmem>>, %arg11: memref<16x16xf32, #tpu.memory_space<vmem>>) attributes {dimension_semantics = [#tpu.dimension_semantics<parallel>], iteration_bounds = array<i64: 2>, scalar_prefetch = 0 : i64, scratch_operands = 0 : i64, tpu.core_type = #tpu.core_type<tc>, window_params = [{transform_indices = @transform_0, window_bounds = array<i64: 16, 4>}, {pipeline_mode = #tpu.pipeline_mode<synchronous>, transform_indices = @transform_1, window_bounds = array<i64: 4, 32>}, {pipeline_mode = #tpu.pipeline_mode<synchronous>, transform_indices = @transform_2, window_bounds = array<i64: 1, 32>}, {pipeline_mode = #tpu.pipeline_mode<synchronous>, transform_indices = @transform_3, window_bounds = array<i64: 32, 16>}, {pipeline_mode = #tpu.pipeline_mode<synchronous>, transform_indices = @transform_4, window_bounds = array<i64: 1, 16>}, {pipeline_mode = #tpu.pipeline_mode<synchronous>, transform_indices = @transform_5, window_bounds = array<i64: 16, 32>}, {pipeline_mode = #tpu.pipeline_mode<synchronous>, transform_indices = @transform_6, window_bounds = array<i64: 1, 32>}, {pipeline_mode = #tpu.pipeline_mode<synchronous>, transform_indices = @transform_7, window_bounds = array<i64: 32, 16>}, {pipeline_mode = #tpu.pipeline_mode<synchronous>, transform_indices = @transform_8, window_bounds = array<i64: 1, 16>}, {transform_indices = @transform_9, window_bounds = array<i64: 16, 16>}, {transform_indices = @transform_10, window_bounds = array<i64: 16, 16>}]} {
    %c0 = arith.constant 0 : index
    %c0_0 = arith.constant 0 : index
    %0 = vector.load %arg1[%c0, %c0_0] : memref<16x4xf32, #tpu.memory_space<vmem>>, vector<16x4xf32>
    %c0_1 = arith.constant 0 : index
    %c0_2 = arith.constant 0 : index
    %1 = vector.load %arg2[%c0_1, %c0_2] : memref<4x32xbf16, #tpu.memory_space<vmem>>, vector<4x32xbf16>
    %2 = arith.truncf %0 : vector<16x4xf32> to vector<16x4xbf16>
    %cst = arith.constant dense<0.000000e+00> : vector<16x32xf32>
    %3 = tpu.matmul %2, %1, %cst {dimension_numbers = #tpu.dot_dimension_numbers<[1], [0], [0], [1], [0, 0, 1, 1], [], []>} : vector<16x4xbf16>, vector<4x32xbf16>, vector<16x32xf32> -> vector<16x32xf32>
    %c0_3 = arith.constant 0 : index
    %c0_4 = arith.constant 0 : index
    %4 = vector.load %arg3[%c0_3, %c0_4] : memref<1x32xf32, #tpu.memory_space<vmem>>, vector<1x32xf32>
    %5 = vector.broadcast %4 : vector<1x32xf32> to vector<16x32xf32>
    %6 = arith.addf %3, %5 : vector<16x32xf32>
    %cst_5 = arith.constant 0.000000e+00 : f32
    %7 = vector.broadcast %cst_5 : f32 to vector<16x32xf32>
    %8 = arith.maximumf %6, %7 : vector<16x32xf32>
    %c0_6 = arith.constant 0 : index
    %c0_7 = arith.constant 0 : index
    %9 = vector.load %arg4[%c0_6, %c0_7] : memref<32x16xbf16, #tpu.memory_space<vmem>>, vector<32x16xbf16>
    %10 = arith.truncf %8 : vector<16x32xf32> to vector<16x32xbf16>
    %cst_8 = arith.constant dense<0.000000e+00> : vector<16x16xf32>
    %11 = tpu.matmul %10, %9, %cst_8 {dimension_numbers = #tpu.dot_dimension_numbers<[1], [0], [0], [1], [0, 0, 1, 1], [], []>} : vector<16x32xbf16>, vector<32x16xbf16>, vector<16x16xf32> -> vector<16x16xf32>
    %c0_9 = arith.constant 0 : index
    %c0_10 = arith.constant 0 : index
    %12 = vector.load %arg5[%c0_9, %c0_10] : memref<1x16xf32, #tpu.memory_space<vmem>>, vector<1x16xf32>
    %13 = vector.broadcast %12 : vector<1x16xf32> to vector<16x16xf32>
    %14 = arith.addf %11, %13 : vector<16x16xf32>
    %cst_11 = arith.constant 0.000000e+00 : f32
    %15 = vector.broadcast %cst_11 : f32 to vector<16x16xf32>
    %16 = arith.maximumf %14, %15 : vector<16x16xf32>
    %c0_12 = arith.constant 0 : index
    %c0_13 = arith.constant 0 : index
    %17 = vector.load %arg10[%c0_12, %c0_13] : memref<16x16xf32, #tpu.memory_space<vmem>>, vector<16x16xf32>
    tpu.vector_store %arg10[%c0_12, %c0_13], %16 {strides = array<i32>} : memref<16x16xf32, #tpu.memory_space<vmem>>, vector<16x16xf32>,
    %c0_14 = arith.constant 0 : index
    %c0_15 = arith.constant 0 : index
    %18 = vector.load %arg6[%c0_14, %c0_15] : memref<16x32xbf16, #tpu.memory_space<vmem>>, vector<16x32xbf16>
    %19 = arith.truncf %16 : vector<16x16xf32> to vector<16x16xbf16>
    %cst_16 = arith.constant dense<0.000000e+00> : vector<16x32xf32>
    %20 = tpu.matmul %19, %18, %cst_16 {dimension_numbers = #tpu.dot_dimension_numbers<[1], [0], [0], [1], [0, 0, 1, 1], [], []>} : vector<16x16xbf16>, vector<16x32xbf16>, vector<16x32xf32> -> vector<16x32xf32>
    %c0_17 = arith.constant 0 : index
    %c0_18 = arith.constant 0 : index
    %21 = vector.load %arg7[%c0_17, %c0_18] : memref<1x32xf32, #tpu.memory_space<vmem>>, vector<1x32xf32>
    %22 = vector.broadcast %21 : vector<1x32xf32> to vector<16x32xf32>
    %23 = arith.addf %20, %22 : vector<16x32xf32>
    %cst_19 = arith.constant 0.000000e+00 : f32
    %24 = vector.broadcast %cst_19 : f32 to vector<16x32xf32>
    %25 = arith.maximumf %23, %24 : vector<16x32xf32>
    %c0_20 = arith.constant 0 : index
    %c0_21 = arith.constant 0 : index
    %26 = vector.load %arg8[%c0_20, %c0_21] : memref<32x16xbf16, #tpu.memory_space<vmem>>, vector<32x16xbf16>
    %27 = arith.truncf %25 : vector<16x32xf32> to vector<16x32xbf16>
    %cst_22 = arith.constant dense<0.000000e+00> : vector<16x16xf32>
    %28 = tpu.matmul %27, %26, %cst_22 {dimension_numbers = #tpu.dot_dimension_numbers<[1], [0], [0], [1], [0, 0, 1, 1], [], []>} : vector<16x32xbf16>, vector<32x16xbf16>, vector<16x16xf32> -> vector<16x16xf32>
    %c0_23 = arith.constant 0 : index
    %c0_24 = arith.constant 0 : index
    %29 = vector.load %arg9[%c0_23, %c0_24] : memref<1x16xf32, #tpu.memory_space<vmem>>, vector<1x16xf32>
    %30 = vector.broadcast %29 : vector<1x16xf32> to vector<16x16xf32>
    %31 = arith.addf %28, %30 : vector<16x16xf32>
    %cst_25 = arith.constant 0.000000e+00 : f32
    %32 = vector.broadcast %cst_25 : f32 to vector<16x16xf32>
    %33 = arith.maximumf %31, %32 : vector<16x16xf32>
    %c0_26 = arith.constant 0 : index
    %c0_27 = arith.constant 0 : index
    %34 = vector.load %arg11[%c0_26, %c0_27] : memref<16x16xf32, #tpu.memory_space<vmem>>, vector<16x16xf32>
    tpu.vector_store %arg11[%c0_26, %c0_27], %33 {strides = array<i32>} : memref<16x16xf32, #tpu.memory_space<vmem>>, vector<16x16xf32>,
    return
  }
  func.func @transform_0(%arg0: i32) -> (i32, i32) {
    %c0_i32 = arith.constant 0 : i32
    %c0_i32_0 = arith.constant 0 : i32
    return %arg0, %c0_i32 : i32, i32
  }
  func.func @transform_1(%arg0: i32) -> (i32, i32) {
    %c0_i32 = arith.constant 0 : i32
    %c0_i32_0 = arith.constant 0 : i32
    %c0_i32_1 = arith.constant 0 : i32
    return %c0_i32, %c0_i32_0 : i32, i32
  }
  func.func @transform_2(%arg0: i32) -> (i32, i32) {
    %c0_i32 = arith.constant 0 : i32
    %c0_i32_0 = arith.constant 0 : i32
    %c0_i32_1 = arith.constant 0 : i32
    return %c0_i32, %c0_i32_0 : i32, i32
  }
  func.func @transform_3(%arg0: i32) -> (i32, i32) {
    %c0_i32 = arith.constant 0 : i32
    %c0_i32_0 = arith.constant 0 : i32
    %c0_i32_1 = arith.constant 0 : i32
    return %c0_i32, %c0_i32_0 : i32, i32
  }
  func.func @transform_4(%arg0: i32) -> (i32, i32) {
    %c0_i32 = arith.constant 0 : i32
    %c0_i32_0 = arith.constant 0 : i32
    %c0_i32_1 = arith.constant 0 : i32
    return %c0_i32, %c0_i32_0 : i32, i32
  }
  func.func @transform_5(%arg0: i32) -> (i32, i32) {
    %c0_i32 = arith.constant 0 : i32
    %c0_i32_0 = arith.constant 0 : i32
    %c0_i32_1 = arith.constant 0 : i32
    return %c0_i32, %c0_i32_0 : i32, i32
  }
  func.func @transform_6(%arg0: i32) -> (i32, i32) {
    %c0_i32 = arith.constant 0 : i32
    %c0_i32_0 = arith.constant 0 : i32
    %c0_i32_1 = arith.constant 0 : i32
    return %c0_i32, %c0_i32_0 : i32, i32
  }
  func.func @transform_7(%arg0: i32) -> (i32, i32) {
    %c0_i32 = arith.constant 0 : i32
    %c0_i32_0 = arith.constant 0 : i32
    %c0_i32_1 = arith.constant 0 : i32
    return %c0_i32, %c0_i32_0 : i32, i32
  }
  func.func @transform_8(%arg0: i32) -> (i32, i32) {
    %c0_i32 = arith.constant 0 : i32
    %c0_i32_0 = arith.constant 0 : i32
    %c0_i32_1 = arith.constant 0 : i32
    return %c0_i32, %c0_i32_0 : i32, i32
  }
  func.func @transform_9(%arg0: i32) -> (i32, i32) {
    %c0_i32 = arith.constant 0 : i32
    %c0_i32_0 = arith.constant 0 : i32
    return %arg0, %c0_i32 : i32, i32
  }
  func.func @transform_10(%arg0: i32) -> (i32, i32) {
    %c0_i32 = arith.constant 0 : i32
    %c0_i32_0 = arith.constant 0 : i32
    return %arg0, %c0_i32 : i32, i32
  }
}

module attributes {stable_mosaic.version = 11 : i64} {
  func.func @_knn_kernel(%arg0: i32, %arg1: memref<16x8xf32, #tpu.memory_space<vmem>>, %arg2: memref<8x32xf32, #tpu.memory_space<vmem>>, %arg3: memref<1x32xf32, #tpu.memory_space<vmem>>, %arg4: memref<16x4xi32, #tpu.memory_space<vmem>>) attributes {dimension_semantics = [#tpu.dimension_semantics<parallel>], iteration_bounds = array<i64: 2>, scalar_prefetch = 0 : i64, scratch_operands = 0 : i64, tpu.core_type = #tpu.core_type<tc>, window_params = [{transform_indices = @transform_0, window_bounds = array<i64: 16, 8>}, {pipeline_mode = #tpu.pipeline_mode<synchronous>, transform_indices = @transform_1, window_bounds = array<i64: 8, 32>}, {pipeline_mode = #tpu.pipeline_mode<synchronous>, transform_indices = @transform_2, window_bounds = array<i64: 1, 32>}, {transform_indices = @transform_3, window_bounds = array<i64: 16, 4>}]} {
    %c0 = arith.constant 0 : index
    %c0_0 = arith.constant 0 : index
    %0 = vector.load %arg1[%c0, %c0_0] : memref<16x8xf32, #tpu.memory_space<vmem>>, vector<16x8xf32>
    %c0_1 = arith.constant 0 : index
    %c0_2 = arith.constant 0 : index
    %1 = vector.load %arg2[%c0_1, %c0_2] : memref<8x32xf32, #tpu.memory_space<vmem>>, vector<8x32xf32>
    %c0_3 = arith.constant 0 : index
    %c0_4 = arith.constant 0 : index
    %2 = vector.load %arg3[%c0_3, %c0_4] : memref<1x32xf32, #tpu.memory_space<vmem>>, vector<1x32xf32>
    %3 = arith.mulf %0, %0 : vector<16x8xf32>
    %cst = arith.constant dense<0.000000e+00> : vector<16xf32>
    %4 = vector.multi_reduction <add>, %3, %cst [1] : vector<16x8xf32> to vector<16xf32>
    %5 = vector.shape_cast %4 : vector<16xf32> to vector<16x1xf32>
    %cst_5 = arith.constant dense<0.000000e+00> : vector<16x32xf32>
    %6 = tpu.matmul %0, %1, %cst_5 {dimension_numbers = #tpu.dot_dimension_numbers<[1], [0], [0], [1], [0, 0, 1, 1], [], []>} : vector<16x8xf32>, vector<8x32xf32>, vector<16x32xf32> -> vector<16x32xf32>
    %7 = vector.broadcast %5 : vector<16x1xf32> to vector<16x32xf32>
    %8 = vector.broadcast %2 : vector<1x32xf32> to vector<16x32xf32>
    %9 = arith.addf %7, %8 : vector<16x32xf32>
    %cst_6 = arith.constant 2.000000e+00 : f32
    %10 = vector.broadcast %cst_6 : f32 to vector<16x32xf32>
    %11 = arith.mulf %10, %6 : vector<16x32xf32>
    %12 = arith.subf %9, %11 : vector<16x32xf32>
    %cst_7 = arith.constant 0.000000e+00 : f32
    %13 = vector.broadcast %cst_7 : f32 to vector<16x32xf32>
    %14 = arith.maximumf %12, %13 : vector<16x32xf32>
    %c16_i32 = arith.constant 16 : i32
    %15 = arith.muli %arg0, %c16_i32 : i32
    %16 = tpu.iota {dimensions = array<i32: 0>} : vector<16x32xi32>
    %17 = vector.broadcast %15 : i32 to vector<16x32xi32>
    %18 = arith.addi %17, %16 : vector<16x32xi32>
    %19 = tpu.iota {dimensions = array<i32: 1>} : vector<16x32xi32>
    %20 = arith.sitofp %19 : vector<16x32xi32> to vector<16x32xf32>
    %21 = arith.cmpi eq, %18, %19 : vector<16x32xi32>
    %cst_8 = arith.constant 3.000000e+38 : f32
    %22 = vector.broadcast %cst_8 : f32 to vector<16x32xf32>
    %23 = arith.select %21, %22, %14 : vector<16x32xi1>, vector<16x32xf32>
    %cst_9 = arith.constant dense<0x7F800000> : vector<16xf32>
    %24 = vector.multi_reduction <minimumf>, %23, %cst_9 [1] : vector<16x32xf32> to vector<16xf32>
    %25 = vector.shape_cast %24 : vector<16xf32> to vector<16x1xf32>
    %26 = vector.broadcast %25 : vector<16x1xf32> to vector<16x32xf32>
    %27 = arith.cmpf oeq, %23, %26 : vector<16x32xf32>
    %cst_10 = arith.constant 3.200000e+01 : f32
    %28 = vector.broadcast %cst_10 : f32 to vector<16x32xf32>
    %29 = arith.select %27, %20, %28 : vector<16x32xi1>, vector<16x32xf32>
    %cst_11 = arith.constant dense<0x7F800000> : vector<16xf32>
    %30 = vector.multi_reduction <minimumf>, %29, %cst_11 [1] : vector<16x32xf32> to vector<16xf32>
    %31 = vector.shape_cast %30 : vector<16xf32> to vector<16x1xf32>
    %32 = arith.fptosi %31 : vector<16x1xf32> to vector<16x1xi32>
    %c0_12 = arith.constant 0 : index
    %c0_13 = arith.constant 0 : index
    %33 = vector.load %arg4[%c0_12, %c0_13] : memref<16x4xi32, #tpu.memory_space<vmem>>, vector<16x1xi32>
    tpu.vector_store %arg4[%c0_12, %c0_13], %32 {strides = array<i32>} : memref<16x4xi32, #tpu.memory_space<vmem>>, vector<16x1xi32>,
    %34 = vector.broadcast %31 : vector<16x1xf32> to vector<16x32xf32>
    %35 = arith.cmpf oeq, %20, %34 : vector<16x32xf32>
    %cst_14 = arith.constant 3.000000e+38 : f32
    %36 = vector.broadcast %cst_14 : f32 to vector<16x32xf32>
    %37 = arith.select %35, %36, %23 : vector<16x32xi1>, vector<16x32xf32>
    %cst_15 = arith.constant dense<0x7F800000> : vector<16xf32>
    %38 = vector.multi_reduction <minimumf>, %37, %cst_15 [1] : vector<16x32xf32> to vector<16xf32>
    %39 = vector.shape_cast %38 : vector<16xf32> to vector<16x1xf32>
    %40 = vector.broadcast %39 : vector<16x1xf32> to vector<16x32xf32>
    %41 = arith.cmpf oeq, %37, %40 : vector<16x32xf32>
    %cst_16 = arith.constant 3.200000e+01 : f32
    %42 = vector.broadcast %cst_16 : f32 to vector<16x32xf32>
    %43 = arith.select %41, %20, %42 : vector<16x32xi1>, vector<16x32xf32>
    %cst_17 = arith.constant dense<0x7F800000> : vector<16xf32>
    %44 = vector.multi_reduction <minimumf>, %43, %cst_17 [1] : vector<16x32xf32> to vector<16xf32>
    %45 = vector.shape_cast %44 : vector<16xf32> to vector<16x1xf32>
    %46 = arith.fptosi %45 : vector<16x1xf32> to vector<16x1xi32>
    %c0_18 = arith.constant 0 : index
    %c1 = arith.constant 1 : index
    %47 = vector.load %arg4[%c0_18, %c1] : memref<16x4xi32, #tpu.memory_space<vmem>>, vector<16x1xi32>
    tpu.vector_store %arg4[%c0_18, %c1], %46 {strides = array<i32>} : memref<16x4xi32, #tpu.memory_space<vmem>>, vector<16x1xi32>,
    %48 = vector.broadcast %45 : vector<16x1xf32> to vector<16x32xf32>
    %49 = arith.cmpf oeq, %20, %48 : vector<16x32xf32>
    %cst_19 = arith.constant 3.000000e+38 : f32
    %50 = vector.broadcast %cst_19 : f32 to vector<16x32xf32>
    %51 = arith.select %49, %50, %37 : vector<16x32xi1>, vector<16x32xf32>
    %cst_20 = arith.constant dense<0x7F800000> : vector<16xf32>
    %52 = vector.multi_reduction <minimumf>, %51, %cst_20 [1] : vector<16x32xf32> to vector<16xf32>
    %53 = vector.shape_cast %52 : vector<16xf32> to vector<16x1xf32>
    %54 = vector.broadcast %53 : vector<16x1xf32> to vector<16x32xf32>
    %55 = arith.cmpf oeq, %51, %54 : vector<16x32xf32>
    %cst_21 = arith.constant 3.200000e+01 : f32
    %56 = vector.broadcast %cst_21 : f32 to vector<16x32xf32>
    %57 = arith.select %55, %20, %56 : vector<16x32xi1>, vector<16x32xf32>
    %cst_22 = arith.constant dense<0x7F800000> : vector<16xf32>
    %58 = vector.multi_reduction <minimumf>, %57, %cst_22 [1] : vector<16x32xf32> to vector<16xf32>
    %59 = vector.shape_cast %58 : vector<16xf32> to vector<16x1xf32>
    %60 = arith.fptosi %59 : vector<16x1xf32> to vector<16x1xi32>
    %c0_23 = arith.constant 0 : index
    %c2 = arith.constant 2 : index
    %61 = vector.load %arg4[%c0_23, %c2] : memref<16x4xi32, #tpu.memory_space<vmem>>, vector<16x1xi32>
    tpu.vector_store %arg4[%c0_23, %c2], %60 {strides = array<i32>} : memref<16x4xi32, #tpu.memory_space<vmem>>, vector<16x1xi32>,
    %62 = vector.broadcast %59 : vector<16x1xf32> to vector<16x32xf32>
    %63 = arith.cmpf oeq, %20, %62 : vector<16x32xf32>
    %cst_24 = arith.constant 3.000000e+38 : f32
    %64 = vector.broadcast %cst_24 : f32 to vector<16x32xf32>
    %65 = arith.select %63, %64, %51 : vector<16x32xi1>, vector<16x32xf32>
    %cst_25 = arith.constant dense<0x7F800000> : vector<16xf32>
    %66 = vector.multi_reduction <minimumf>, %65, %cst_25 [1] : vector<16x32xf32> to vector<16xf32>
    %67 = vector.shape_cast %66 : vector<16xf32> to vector<16x1xf32>
    %68 = vector.broadcast %67 : vector<16x1xf32> to vector<16x32xf32>
    %69 = arith.cmpf oeq, %65, %68 : vector<16x32xf32>
    %cst_26 = arith.constant 3.200000e+01 : f32
    %70 = vector.broadcast %cst_26 : f32 to vector<16x32xf32>
    %71 = arith.select %69, %20, %70 : vector<16x32xi1>, vector<16x32xf32>
    %cst_27 = arith.constant dense<0x7F800000> : vector<16xf32>
    %72 = vector.multi_reduction <minimumf>, %71, %cst_27 [1] : vector<16x32xf32> to vector<16xf32>
    %73 = vector.shape_cast %72 : vector<16xf32> to vector<16x1xf32>
    %74 = arith.fptosi %73 : vector<16x1xf32> to vector<16x1xi32>
    %c0_28 = arith.constant 0 : index
    %c3 = arith.constant 3 : index
    %75 = vector.load %arg4[%c0_28, %c3] : memref<16x4xi32, #tpu.memory_space<vmem>>, vector<16x1xi32>
    tpu.vector_store %arg4[%c0_28, %c3], %74 {strides = array<i32>} : memref<16x4xi32, #tpu.memory_space<vmem>>, vector<16x1xi32>,
    return
  }
  func.func @transform_0(%arg0: i32) -> (i32, i32) {
    %c0_i32 = arith.constant 0 : i32
    %c0_i32_0 = arith.constant 0 : i32
    return %arg0, %c0_i32 : i32, i32
  }
  func.func @transform_1(%arg0: i32) -> (i32, i32) {
    %c0_i32 = arith.constant 0 : i32
    %c0_i32_0 = arith.constant 0 : i32
    %c0_i32_1 = arith.constant 0 : i32
    return %c0_i32, %c0_i32_0 : i32, i32
  }
  func.func @transform_2(%arg0: i32) -> (i32, i32) {
    %c0_i32 = arith.constant 0 : i32
    %c0_i32_0 = arith.constant 0 : i32
    %c0_i32_1 = arith.constant 0 : i32
    return %c0_i32, %c0_i32_0 : i32, i32
  }
  func.func @transform_3(%arg0: i32) -> (i32, i32) {
    %c0_i32 = arith.constant 0 : i32
    %c0_i32_0 = arith.constant 0 : i32
    return %arg0, %c0_i32 : i32, i32
  }
}

module attributes {stable_mosaic.version = 11 : i64} {
  func.func @_gnn_step_kernel(%arg0: i32, %arg1: memref<16x16xf32, #tpu.memory_space<vmem>>, %arg2: memref<16x64xf32, #tpu.memory_space<vmem>>, %arg3: memref<16x32xf32, #tpu.memory_space<vmem>>, %arg4: memref<16x32xbf16, #tpu.memory_space<vmem>>, %arg5: memref<16x32xbf16, #tpu.memory_space<vmem>>, %arg6: memref<8x32xbf16, #tpu.memory_space<vmem>>, %arg7: memref<1x32xf32, #tpu.memory_space<vmem>>, %arg8: memref<32x8xbf16, #tpu.memory_space<vmem>>, %arg9: memref<1x8xf32, #tpu.memory_space<vmem>>, %arg10: memref<32x1xbf16, #tpu.memory_space<vmem>>, %arg11: memref<1x1xf32, #tpu.memory_space<vmem>>, %arg12: memref<16x32xbf16, #tpu.memory_space<vmem>>, %arg13: memref<8x32xbf16, #tpu.memory_space<vmem>>, %arg14: memref<1x32xf32, #tpu.memory_space<vmem>>, %arg15: memref<32x16xbf16, #tpu.memory_space<vmem>>, %arg16: memref<1x16xf32, #tpu.memory_space<vmem>>, %arg17: memref<16x16xf32, #tpu.memory_space<vmem>>, %arg18: memref<16x32xf32, #tpu.memory_space<vmem>>) attributes {dimension_semantics = [#tpu.dimension_semantics<parallel>], iteration_bounds = array<i64: 2>, scalar_prefetch = 0 : i64, scratch_operands = 0 : i64, tpu.core_type = #tpu.core_type<tc>, window_params = [{transform_indices = @transform_0, window_bounds = array<i64: 16, 16>}, {transform_indices = @transform_1, window_bounds = array<i64: 16, 64>}, {transform_indices = @transform_2, window_bounds = array<i64: 16, 32>}, {pipeline_mode = #tpu.pipeline_mode<synchronous>, transform_indices = @transform_3, window_bounds = array<i64: 16, 32>}, {pipeline_mode = #tpu.pipeline_mode<synchronous>, transform_indices = @transform_4, window_bounds = array<i64: 16, 32>}, {pipeline_mode = #tpu.pipeline_mode<synchronous>, transform_indices = @transform_5, window_bounds = array<i64: 8, 32>}, {pipeline_mode = #tpu.pipeline_mode<synchronous>, transform_indices = @transform_6, window_bounds = array<i64: 1, 32>}, {pipeline_mode = #tpu.pipeline_mode<synchronous>, transform_indices = @transform_7, window_bounds = array<i64: 32, 8>}, {pipeline_mode = #tpu.pipeline_mode<synchronous>, transform_indices = @transform_8, window_bounds = array<i64: 1, 8>}, {pipeline_mode = #tpu.pipeline_mode<synchronous>, transform_indices = @transform_9, window_bounds = array<i64: 32, 1>}, {pipeline_mode = #tpu.pipeline_mode<synchronous>, transform_indices = @transform_10, window_bounds = array<i64: 1, 1>}, {pipeline_mode = #tpu.pipeline_mode<synchronous>, transform_indices = @transform_11, window_bounds = array<i64: 16, 32>}, {pipeline_mode = #tpu.pipeline_mode<synchronous>, transform_indices = @transform_12, window_bounds = array<i64: 8, 32>}, {pipeline_mode = #tpu.pipeline_mode<synchronous>, transform_indices = @transform_13, window_bounds = array<i64: 1, 32>}, {pipeline_mode = #tpu.pipeline_mode<synchronous>, transform_indices = @transform_14, window_bounds = array<i64: 32, 16>}, {pipeline_mode = #tpu.pipeline_mode<synchronous>, transform_indices = @transform_15, window_bounds = array<i64: 1, 16>}, {transform_indices = @transform_16, window_bounds = array<i64: 16, 16>}, {transform_indices = @transform_17, window_bounds = array<i64: 16, 32>}]} {
    %c0 = arith.constant 0 : index
    %c0_0 = arith.constant 0 : index
    %0 = vector.load %arg1[%c0, %c0_0] : memref<16x16xf32, #tpu.memory_space<vmem>>, vector<16x16xf32>
    %c0_1 = arith.constant 0 : index
    %c0_2 = arith.constant 0 : index
    %1 = vector.load %arg2[%c0_1, %c0_2] : memref<16x64xf32, #tpu.memory_space<vmem>>, vector<16x64xf32>
    %c0_3 = arith.constant 0 : index
    %c0_4 = arith.constant 0 : index
    %2 = vector.load %arg3[%c0_3, %c0_4] : memref<16x32xf32, #tpu.memory_space<vmem>>, vector<16x32xf32>
    %c0_5 = arith.constant 0 : index
    %c0_6 = arith.constant 0 : index
    %3 = vector.load %arg5[%c0_5, %c0_6] : memref<16x32xbf16, #tpu.memory_space<vmem>>, vector<16x32xbf16>
    %4 = arith.truncf %0 : vector<16x16xf32> to vector<16x16xbf16>
    %cst = arith.constant dense<0.000000e+00> : vector<16x32xf32>
    %5 = tpu.matmul %4, %3, %cst {dimension_numbers = #tpu.dot_dimension_numbers<[1], [0], [0], [1], [0, 0, 1, 1], [], []>} : vector<16x16xbf16>, vector<16x32xbf16>, vector<16x32xf32> -> vector<16x32xf32>
    %c0_7 = arith.constant 0 : index
    %c0_8 = arith.constant 0 : index
    %6 = vector.load %arg7[%c0_7, %c0_8] : memref<1x32xf32, #tpu.memory_space<vmem>>, vector<1x32xf32>
    %7 = vector.broadcast %6 : vector<1x32xf32> to vector<16x32xf32>
    %8 = arith.addf %5, %7 : vector<16x32xf32>
    %9 = vector.extract_strided_slice %1 {offsets = [0, 0], sizes = [16, 16], strides = [1, 1]} : vector<16x64xf32> to vector<16x16xf32>
    %c0_9 = arith.constant 0 : index
    %c0_10 = arith.constant 0 : index
    %10 = vector.load %arg4[%c0_9, %c0_10] : memref<16x32xbf16, #tpu.memory_space<vmem>>, vector<16x32xbf16>
    %11 = arith.truncf %9 : vector<16x16xf32> to vector<16x16xbf16>
    %cst_11 = arith.constant dense<0.000000e+00> : vector<16x32xf32>
    %12 = tpu.matmul %11, %10, %cst_11 {dimension_numbers = #tpu.dot_dimension_numbers<[1], [0], [0], [1], [0, 0, 1, 1], [], []>} : vector<16x16xbf16>, vector<16x32xbf16>, vector<16x32xf32> -> vector<16x32xf32>
    %13 = arith.addf %12, %8 : vector<16x32xf32>
    %14 = vector.extract_strided_slice %2 {offsets = [0, 0], sizes = [16, 8], strides = [1, 1]} : vector<16x32xf32> to vector<16x8xf32>
    %c0_12 = arith.constant 0 : index
    %c0_13 = arith.constant 0 : index
    %15 = vector.load %arg6[%c0_12, %c0_13] : memref<8x32xbf16, #tpu.memory_space<vmem>>, vector<8x32xbf16>
    %16 = arith.truncf %14 : vector<16x8xf32> to vector<16x8xbf16>
    %cst_14 = arith.constant dense<0.000000e+00> : vector<16x32xf32>
    %17 = tpu.matmul %16, %15, %cst_14 {dimension_numbers = #tpu.dot_dimension_numbers<[1], [0], [0], [1], [0, 0, 1, 1], [], []>} : vector<16x8xbf16>, vector<8x32xbf16>, vector<16x32xf32> -> vector<16x32xf32>
    %18 = arith.addf %13, %17 : vector<16x32xf32>
    %cst_15 = arith.constant 0.000000e+00 : f32
    %19 = vector.broadcast %cst_15 : f32 to vector<16x32xf32>
    %20 = arith.maximumf %18, %19 : vector<16x32xf32>
    %c0_16 = arith.constant 0 : index
    %c0_17 = arith.constant 0 : index
    %21 = vector.load %arg8[%c0_16, %c0_17] : memref<32x8xbf16, #tpu.memory_space<vmem>>, vector<32x8xbf16>
    %22 = arith.truncf %20 : vector<16x32xf32> to vector<16x32xbf16>
    %cst_18 = arith.constant dense<0.000000e+00> : vector<16x8xf32>
    %23 = tpu.matmul %22, %21, %cst_18 {dimension_numbers = #tpu.dot_dimension_numbers<[1], [0], [0], [1], [0, 0, 1, 1], [], []>} : vector<16x32xbf16>, vector<32x8xbf16>, vector<16x8xf32> -> vector<16x8xf32>
    %c0_19 = arith.constant 0 : index
    %c0_20 = arith.constant 0 : index
    %24 = vector.load %arg9[%c0_19, %c0_20] : memref<1x8xf32, #tpu.memory_space<vmem>>, vector<1x8xf32>
    %25 = vector.broadcast %24 : vector<1x8xf32> to vector<16x8xf32>
    %26 = arith.addf %23, %25 : vector<16x8xf32>
    %cst_21 = arith.constant 0.000000e+00 : f32
    %27 = vector.broadcast %cst_21 : f32 to vector<16x8xf32>
    %28 = arith.maximumf %26, %27 : vector<16x8xf32>
    %c0_22 = arith.constant 0 : index
    %c0_23 = arith.constant 0 : index
    %29 = vector.load %arg10[%c0_22, %c0_23] : memref<32x1xbf16, #tpu.memory_space<vmem>>, vector<32x1xbf16>
    %30 = arith.truncf %20 : vector<16x32xf32> to vector<16x32xbf16>
    %cst_24 = arith.constant dense<0.000000e+00> : vector<16x1xf32>
    %31 = tpu.matmul %30, %29, %cst_24 {dimension_numbers = #tpu.dot_dimension_numbers<[1], [0], [0], [1], [0, 0, 1, 1], [], []>} : vector<16x32xbf16>, vector<32x1xbf16>, vector<16x1xf32> -> vector<16x1xf32>
    %c0_25 = arith.constant 0 : index
    %c0_26 = arith.constant 0 : index
    %32 = vector.load %arg11[%c0_25, %c0_26] : memref<1x1xf32, #tpu.memory_space<vmem>>, vector<1x1xf32>
    %33 = vector.broadcast %32 : vector<1x1xf32> to vector<16x1xf32>
    %34 = arith.addf %31, %33 : vector<16x1xf32>
    %cst_27 = arith.constant 0.000000e+00 : f32
    %35 = vector.broadcast %cst_27 : f32 to vector<16x1xf32>
    %36 = arith.maximumf %34, %35 : vector<16x1xf32>
    %37 = vector.extract_strided_slice %1 {offsets = [0, 16], sizes = [16, 16], strides = [1, 1]} : vector<16x64xf32> to vector<16x16xf32>
    %c0_28 = arith.constant 0 : index
    %c0_29 = arith.constant 0 : index
    %38 = vector.load %arg4[%c0_28, %c0_29] : memref<16x32xbf16, #tpu.memory_space<vmem>>, vector<16x32xbf16>
    %39 = arith.truncf %37 : vector<16x16xf32> to vector<16x16xbf16>
    %cst_30 = arith.constant dense<0.000000e+00> : vector<16x32xf32>
    %40 = tpu.matmul %39, %38, %cst_30 {dimension_numbers = #tpu.dot_dimension_numbers<[1], [0], [0], [1], [0, 0, 1, 1], [], []>} : vector<16x16xbf16>, vector<16x32xbf16>, vector<16x32xf32> -> vector<16x32xf32>
    %41 = arith.addf %40, %8 : vector<16x32xf32>
    %42 = vector.extract_strided_slice %2 {offsets = [0, 8], sizes = [16, 8], strides = [1, 1]} : vector<16x32xf32> to vector<16x8xf32>
    %c0_31 = arith.constant 0 : index
    %c0_32 = arith.constant 0 : index
    %43 = vector.load %arg6[%c0_31, %c0_32] : memref<8x32xbf16, #tpu.memory_space<vmem>>, vector<8x32xbf16>
    %44 = arith.truncf %42 : vector<16x8xf32> to vector<16x8xbf16>
    %cst_33 = arith.constant dense<0.000000e+00> : vector<16x32xf32>
    %45 = tpu.matmul %44, %43, %cst_33 {dimension_numbers = #tpu.dot_dimension_numbers<[1], [0], [0], [1], [0, 0, 1, 1], [], []>} : vector<16x8xbf16>, vector<8x32xbf16>, vector<16x32xf32> -> vector<16x32xf32>
    %46 = arith.addf %41, %45 : vector<16x32xf32>
    %cst_34 = arith.constant 0.000000e+00 : f32
    %47 = vector.broadcast %cst_34 : f32 to vector<16x32xf32>
    %48 = arith.maximumf %46, %47 : vector<16x32xf32>
    %c0_35 = arith.constant 0 : index
    %c0_36 = arith.constant 0 : index
    %49 = vector.load %arg8[%c0_35, %c0_36] : memref<32x8xbf16, #tpu.memory_space<vmem>>, vector<32x8xbf16>
    %50 = arith.truncf %48 : vector<16x32xf32> to vector<16x32xbf16>
    %cst_37 = arith.constant dense<0.000000e+00> : vector<16x8xf32>
    %51 = tpu.matmul %50, %49, %cst_37 {dimension_numbers = #tpu.dot_dimension_numbers<[1], [0], [0], [1], [0, 0, 1, 1], [], []>} : vector<16x32xbf16>, vector<32x8xbf16>, vector<16x8xf32> -> vector<16x8xf32>
    %c0_38 = arith.constant 0 : index
    %c0_39 = arith.constant 0 : index
    %52 = vector.load %arg9[%c0_38, %c0_39] : memref<1x8xf32, #tpu.memory_space<vmem>>, vector<1x8xf32>
    %53 = vector.broadcast %52 : vector<1x8xf32> to vector<16x8xf32>
    %54 = arith.addf %51, %53 : vector<16x8xf32>
    %cst_40 = arith.constant 0.000000e+00 : f32
    %55 = vector.broadcast %cst_40 : f32 to vector<16x8xf32>
    %56 = arith.maximumf %54, %55 : vector<16x8xf32>
    %c0_41 = arith.constant 0 : index
    %c0_42 = arith.constant 0 : index
    %57 = vector.load %arg10[%c0_41, %c0_42] : memref<32x1xbf16, #tpu.memory_space<vmem>>, vector<32x1xbf16>
    %58 = arith.truncf %48 : vector<16x32xf32> to vector<16x32xbf16>
    %cst_43 = arith.constant dense<0.000000e+00> : vector<16x1xf32>
    %59 = tpu.matmul %58, %57, %cst_43 {dimension_numbers = #tpu.dot_dimension_numbers<[1], [0], [0], [1], [0, 0, 1, 1], [], []>} : vector<16x32xbf16>, vector<32x1xbf16>, vector<16x1xf32> -> vector<16x1xf32>
    %c0_44 = arith.constant 0 : index
    %c0_45 = arith.constant 0 : index
    %60 = vector.load %arg11[%c0_44, %c0_45] : memref<1x1xf32, #tpu.memory_space<vmem>>, vector<1x1xf32>
    %61 = vector.broadcast %60 : vector<1x1xf32> to vector<16x1xf32>
    %62 = arith.addf %59, %61 : vector<16x1xf32>
    %cst_46 = arith.constant 0.000000e+00 : f32
    %63 = vector.broadcast %cst_46 : f32 to vector<16x1xf32>
    %64 = arith.maximumf %62, %63 : vector<16x1xf32>
    %65 = vector.extract_strided_slice %1 {offsets = [0, 32], sizes = [16, 16], strides = [1, 1]} : vector<16x64xf32> to vector<16x16xf32>
    %c0_47 = arith.constant 0 : index
    %c0_48 = arith.constant 0 : index
    %66 = vector.load %arg4[%c0_47, %c0_48] : memref<16x32xbf16, #tpu.memory_space<vmem>>, vector<16x32xbf16>
    %67 = arith.truncf %65 : vector<16x16xf32> to vector<16x16xbf16>
    %cst_49 = arith.constant dense<0.000000e+00> : vector<16x32xf32>
    %68 = tpu.matmul %67, %66, %cst_49 {dimension_numbers = #tpu.dot_dimension_numbers<[1], [0], [0], [1], [0, 0, 1, 1], [], []>} : vector<16x16xbf16>, vector<16x32xbf16>, vector<16x32xf32> -> vector<16x32xf32>
    %69 = arith.addf %68, %8 : vector<16x32xf32>
    %70 = vector.extract_strided_slice %2 {offsets = [0, 16], sizes = [16, 8], strides = [1, 1]} : vector<16x32xf32> to vector<16x8xf32>
    %c0_50 = arith.constant 0 : index
    %c0_51 = arith.constant 0 : index
    %71 = vector.load %arg6[%c0_50, %c0_51] : memref<8x32xbf16, #tpu.memory_space<vmem>>, vector<8x32xbf16>
    %72 = arith.truncf %70 : vector<16x8xf32> to vector<16x8xbf16>
    %cst_52 = arith.constant dense<0.000000e+00> : vector<16x32xf32>
    %73 = tpu.matmul %72, %71, %cst_52 {dimension_numbers = #tpu.dot_dimension_numbers<[1], [0], [0], [1], [0, 0, 1, 1], [], []>} : vector<16x8xbf16>, vector<8x32xbf16>, vector<16x32xf32> -> vector<16x32xf32>
    %74 = arith.addf %69, %73 : vector<16x32xf32>
    %cst_53 = arith.constant 0.000000e+00 : f32
    %75 = vector.broadcast %cst_53 : f32 to vector<16x32xf32>
    %76 = arith.maximumf %74, %75 : vector<16x32xf32>
    %c0_54 = arith.constant 0 : index
    %c0_55 = arith.constant 0 : index
    %77 = vector.load %arg8[%c0_54, %c0_55] : memref<32x8xbf16, #tpu.memory_space<vmem>>, vector<32x8xbf16>
    %78 = arith.truncf %76 : vector<16x32xf32> to vector<16x32xbf16>
    %cst_56 = arith.constant dense<0.000000e+00> : vector<16x8xf32>
    %79 = tpu.matmul %78, %77, %cst_56 {dimension_numbers = #tpu.dot_dimension_numbers<[1], [0], [0], [1], [0, 0, 1, 1], [], []>} : vector<16x32xbf16>, vector<32x8xbf16>, vector<16x8xf32> -> vector<16x8xf32>
    %c0_57 = arith.constant 0 : index
    %c0_58 = arith.constant 0 : index
    %80 = vector.load %arg9[%c0_57, %c0_58] : memref<1x8xf32, #tpu.memory_space<vmem>>, vector<1x8xf32>
    %81 = vector.broadcast %80 : vector<1x8xf32> to vector<16x8xf32>
    %82 = arith.addf %79, %81 : vector<16x8xf32>
    %cst_59 = arith.constant 0.000000e+00 : f32
    %83 = vector.broadcast %cst_59 : f32 to vector<16x8xf32>
    %84 = arith.maximumf %82, %83 : vector<16x8xf32>
    %c0_60 = arith.constant 0 : index
    %c0_61 = arith.constant 0 : index
    %85 = vector.load %arg10[%c0_60, %c0_61] : memref<32x1xbf16, #tpu.memory_space<vmem>>, vector<32x1xbf16>
    %86 = arith.truncf %76 : vector<16x32xf32> to vector<16x32xbf16>
    %cst_62 = arith.constant dense<0.000000e+00> : vector<16x1xf32>
    %87 = tpu.matmul %86, %85, %cst_62 {dimension_numbers = #tpu.dot_dimension_numbers<[1], [0], [0], [1], [0, 0, 1, 1], [], []>} : vector<16x32xbf16>, vector<32x1xbf16>, vector<16x1xf32> -> vector<16x1xf32>
    %c0_63 = arith.constant 0 : index
    %c0_64 = arith.constant 0 : index
    %88 = vector.load %arg11[%c0_63, %c0_64] : memref<1x1xf32, #tpu.memory_space<vmem>>, vector<1x1xf32>
    %89 = vector.broadcast %88 : vector<1x1xf32> to vector<16x1xf32>
    %90 = arith.addf %87, %89 : vector<16x1xf32>
    %cst_65 = arith.constant 0.000000e+00 : f32
    %91 = vector.broadcast %cst_65 : f32 to vector<16x1xf32>
    %92 = arith.maximumf %90, %91 : vector<16x1xf32>
    %93 = vector.extract_strided_slice %1 {offsets = [0, 48], sizes = [16, 16], strides = [1, 1]} : vector<16x64xf32> to vector<16x16xf32>
    %c0_66 = arith.constant 0 : index
    %c0_67 = arith.constant 0 : index
    %94 = vector.load %arg4[%c0_66, %c0_67] : memref<16x32xbf16, #tpu.memory_space<vmem>>, vector<16x32xbf16>
    %95 = arith.truncf %93 : vector<16x16xf32> to vector<16x16xbf16>
    %cst_68 = arith.constant dense<0.000000e+00> : vector<16x32xf32>
    %96 = tpu.matmul %95, %94, %cst_68 {dimension_numbers = #tpu.dot_dimension_numbers<[1], [0], [0], [1], [0, 0, 1, 1], [], []>} : vector<16x16xbf16>, vector<16x32xbf16>, vector<16x32xf32> -> vector<16x32xf32>
    %97 = arith.addf %96, %8 : vector<16x32xf32>
    %98 = vector.extract_strided_slice %2 {offsets = [0, 24], sizes = [16, 8], strides = [1, 1]} : vector<16x32xf32> to vector<16x8xf32>
    %c0_69 = arith.constant 0 : index
    %c0_70 = arith.constant 0 : index
    %99 = vector.load %arg6[%c0_69, %c0_70] : memref<8x32xbf16, #tpu.memory_space<vmem>>, vector<8x32xbf16>
    %100 = arith.truncf %98 : vector<16x8xf32> to vector<16x8xbf16>
    %cst_71 = arith.constant dense<0.000000e+00> : vector<16x32xf32>
    %101 = tpu.matmul %100, %99, %cst_71 {dimension_numbers = #tpu.dot_dimension_numbers<[1], [0], [0], [1], [0, 0, 1, 1], [], []>} : vector<16x8xbf16>, vector<8x32xbf16>, vector<16x32xf32> -> vector<16x32xf32>
    %102 = arith.addf %97, %101 : vector<16x32xf32>
    %cst_72 = arith.constant 0.000000e+00 : f32
    %103 = vector.broadcast %cst_72 : f32 to vector<16x32xf32>
    %104 = arith.maximumf %102, %103 : vector<16x32xf32>
    %c0_73 = arith.constant 0 : index
    %c0_74 = arith.constant 0 : index
    %105 = vector.load %arg8[%c0_73, %c0_74] : memref<32x8xbf16, #tpu.memory_space<vmem>>, vector<32x8xbf16>
    %106 = arith.truncf %104 : vector<16x32xf32> to vector<16x32xbf16>
    %cst_75 = arith.constant dense<0.000000e+00> : vector<16x8xf32>
    %107 = tpu.matmul %106, %105, %cst_75 {dimension_numbers = #tpu.dot_dimension_numbers<[1], [0], [0], [1], [0, 0, 1, 1], [], []>} : vector<16x32xbf16>, vector<32x8xbf16>, vector<16x8xf32> -> vector<16x8xf32>
    %c0_76 = arith.constant 0 : index
    %c0_77 = arith.constant 0 : index
    %108 = vector.load %arg9[%c0_76, %c0_77] : memref<1x8xf32, #tpu.memory_space<vmem>>, vector<1x8xf32>
    %109 = vector.broadcast %108 : vector<1x8xf32> to vector<16x8xf32>
    %110 = arith.addf %107, %109 : vector<16x8xf32>
    %cst_78 = arith.constant 0.000000e+00 : f32
    %111 = vector.broadcast %cst_78 : f32 to vector<16x8xf32>
    %112 = arith.maximumf %110, %111 : vector<16x8xf32>
    %c0_79 = arith.constant 0 : index
    %c0_80 = arith.constant 0 : index
    %113 = vector.load %arg10[%c0_79, %c0_80] : memref<32x1xbf16, #tpu.memory_space<vmem>>, vector<32x1xbf16>
    %114 = arith.truncf %104 : vector<16x32xf32> to vector<16x32xbf16>
    %cst_81 = arith.constant dense<0.000000e+00> : vector<16x1xf32>
    %115 = tpu.matmul %114, %113, %cst_81 {dimension_numbers = #tpu.dot_dimension_numbers<[1], [0], [0], [1], [0, 0, 1, 1], [], []>} : vector<16x32xbf16>, vector<32x1xbf16>, vector<16x1xf32> -> vector<16x1xf32>
    %c0_82 = arith.constant 0 : index
    %c0_83 = arith.constant 0 : index
    %116 = vector.load %arg11[%c0_82, %c0_83] : memref<1x1xf32, #tpu.memory_space<vmem>>, vector<1x1xf32>
    %117 = vector.broadcast %116 : vector<1x1xf32> to vector<16x1xf32>
    %118 = arith.addf %115, %117 : vector<16x1xf32>
    %cst_84 = arith.constant 0.000000e+00 : f32
    %119 = vector.broadcast %cst_84 : f32 to vector<16x1xf32>
    %120 = arith.maximumf %118, %119 : vector<16x1xf32>
    %121 = arith.maximumf %36, %64 : vector<16x1xf32>
    %122 = arith.maximumf %121, %92 : vector<16x1xf32>
    %123 = arith.maximumf %122, %120 : vector<16x1xf32>
    %124 = arith.subf %36, %123 : vector<16x1xf32>
    %125 = math.exp %124 : vector<16x1xf32>
    %126 = arith.subf %64, %123 : vector<16x1xf32>
    %127 = math.exp %126 : vector<16x1xf32>
    %128 = arith.subf %92, %123 : vector<16x1xf32>
    %129 = math.exp %128 : vector<16x1xf32>
    %130 = arith.subf %120, %123 : vector<16x1xf32>
    %131 = math.exp %130 : vector<16x1xf32>
    %132 = arith.addf %125, %127 : vector<16x1xf32>
    %133 = arith.addf %132, %129 : vector<16x1xf32>
    %134 = arith.addf %133, %131 : vector<16x1xf32>
    %cst_85 = arith.constant 1.000000e+00 : f32
    %135 = vector.broadcast %cst_85 : f32 to vector<16x1xf32>
    %136 = arith.divf %135, %134 : vector<16x1xf32>
    %137 = arith.mulf %125, %136 : vector<16x1xf32>
    %138 = vector.broadcast %137 : vector<16x1xf32> to vector<16x8xf32>
    %139 = arith.mulf %138, %28 : vector<16x8xf32>
    %140 = arith.mulf %127, %136 : vector<16x1xf32>
    %141 = vector.broadcast %140 : vector<16x1xf32> to vector<16x8xf32>
    %142 = arith.mulf %141, %56 : vector<16x8xf32>
    %143 = arith.addf %139, %142 : vector<16x8xf32>
    %144 = arith.mulf %129, %136 : vector<16x1xf32>
    %145 = vector.broadcast %144 : vector<16x1xf32> to vector<16x8xf32>
    %146 = arith.mulf %145, %84 : vector<16x8xf32>
    %147 = arith.addf %143, %146 : vector<16x8xf32>
    %148 = arith.mulf %131, %136 : vector<16x1xf32>
    %149 = vector.broadcast %148 : vector<16x1xf32> to vector<16x8xf32>
    %150 = arith.mulf %149, %112 : vector<16x8xf32>
    %151 = arith.addf %147, %150 : vector<16x8xf32>
    %c0_86 = arith.constant 0 : index
    %c0_87 = arith.constant 0 : index
    %152 = vector.load %arg12[%c0_86, %c0_87] : memref<16x32xbf16, #tpu.memory_space<vmem>>, vector<16x32xbf16>
    %153 = arith.truncf %0 : vector<16x16xf32> to vector<16x16xbf16>
    %cst_88 = arith.constant dense<0.000000e+00> : vector<16x32xf32>
    %154 = tpu.matmul %153, %152, %cst_88 {dimension_numbers = #tpu.dot_dimension_numbers<[1], [0], [0], [1], [0, 0, 1, 1], [], []>} : vector<16x16xbf16>, vector<16x32xbf16>, vector<16x32xf32> -> vector<16x32xf32>
    %c0_89 = arith.constant 0 : index
    %c0_90 = arith.constant 0 : index
    %155 = vector.load %arg13[%c0_89, %c0_90] : memref<8x32xbf16, #tpu.memory_space<vmem>>, vector<8x32xbf16>
    %156 = arith.truncf %151 : vector<16x8xf32> to vector<16x8xbf16>
    %cst_91 = arith.constant dense<0.000000e+00> : vector<16x32xf32>
    %157 = tpu.matmul %156, %155, %cst_91 {dimension_numbers = #tpu.dot_dimension_numbers<[1], [0], [0], [1], [0, 0, 1, 1], [], []>} : vector<16x8xbf16>, vector<8x32xbf16>, vector<16x32xf32> -> vector<16x32xf32>
    %158 = arith.addf %154, %157 : vector<16x32xf32>
    %c0_92 = arith.constant 0 : index
    %c0_93 = arith.constant 0 : index
    %159 = vector.load %arg14[%c0_92, %c0_93] : memref<1x32xf32, #tpu.memory_space<vmem>>, vector<1x32xf32>
    %160 = vector.broadcast %159 : vector<1x32xf32> to vector<16x32xf32>
    %161 = arith.addf %158, %160 : vector<16x32xf32>
    %cst_94 = arith.constant 0.000000e+00 : f32
    %162 = vector.broadcast %cst_94 : f32 to vector<16x32xf32>
    %163 = arith.maximumf %161, %162 : vector<16x32xf32>
    %c0_95 = arith.constant 0 : index
    %c0_96 = arith.constant 0 : index
    %164 = vector.load %arg15[%c0_95, %c0_96] : memref<32x16xbf16, #tpu.memory_space<vmem>>, vector<32x16xbf16>
    %165 = arith.truncf %163 : vector<16x32xf32> to vector<16x32xbf16>
    %cst_97 = arith.constant dense<0.000000e+00> : vector<16x16xf32>
    %166 = tpu.matmul %165, %164, %cst_97 {dimension_numbers = #tpu.dot_dimension_numbers<[1], [0], [0], [1], [0, 0, 1, 1], [], []>} : vector<16x32xbf16>, vector<32x16xbf16>, vector<16x16xf32> -> vector<16x16xf32>
    %c0_98 = arith.constant 0 : index
    %c0_99 = arith.constant 0 : index
    %167 = vector.load %arg16[%c0_98, %c0_99] : memref<1x16xf32, #tpu.memory_space<vmem>>, vector<1x16xf32>
    %168 = vector.broadcast %167 : vector<1x16xf32> to vector<16x16xf32>
    %169 = arith.addf %166, %168 : vector<16x16xf32>
    %cst_100 = arith.constant 0.000000e+00 : f32
    %170 = vector.broadcast %cst_100 : f32 to vector<16x16xf32>
    %171 = arith.maximumf %169, %170 : vector<16x16xf32>
    %c0_101 = arith.constant 0 : index
    %c0_102 = arith.constant 0 : index
    %172 = vector.load %arg17[%c0_101, %c0_102] : memref<16x16xf32, #tpu.memory_space<vmem>>, vector<16x16xf32>
    tpu.vector_store %arg17[%c0_101, %c0_102], %171 {strides = array<i32>} : memref<16x16xf32, #tpu.memory_space<vmem>>, vector<16x16xf32>,
    %c0_103 = arith.constant 0 : index
    %c0_104 = arith.constant 0 : index
    %173 = vector.load %arg18[%c0_103, %c0_104] : memref<16x32xf32, #tpu.memory_space<vmem>>, vector<16x8xf32>
    tpu.vector_store %arg18[%c0_103, %c0_104], %28 {strides = array<i32>} : memref<16x32xf32, #tpu.memory_space<vmem>>, vector<16x8xf32>,
    %c0_105 = arith.constant 0 : index
    %c8 = arith.constant 8 : index
    %174 = vector.load %arg18[%c0_105, %c8] : memref<16x32xf32, #tpu.memory_space<vmem>>, vector<16x8xf32>
    tpu.vector_store %arg18[%c0_105, %c8], %56 {strides = array<i32>} : memref<16x32xf32, #tpu.memory_space<vmem>>, vector<16x8xf32>,
    %c0_106 = arith.constant 0 : index
    %c16 = arith.constant 16 : index
    %175 = vector.load %arg18[%c0_106, %c16] : memref<16x32xf32, #tpu.memory_space<vmem>>, vector<16x8xf32>
    tpu.vector_store %arg18[%c0_106, %c16], %84 {strides = array<i32>} : memref<16x32xf32, #tpu.memory_space<vmem>>, vector<16x8xf32>,
    %c0_107 = arith.constant 0 : index
    %c24 = arith.constant 24 : index
    %176 = vector.load %arg18[%c0_107, %c24] : memref<16x32xf32, #tpu.memory_space<vmem>>, vector<16x8xf32>
    tpu.vector_store %arg18[%c0_107, %c24], %112 {strides = array<i32>} : memref<16x32xf32, #tpu.memory_space<vmem>>, vector<16x8xf32>,
    return
  }
  func.func @transform_0(%arg0: i32) -> (i32, i32) {
    %c0_i32 = arith.constant 0 : i32
    %c0_i32_0 = arith.constant 0 : i32
    return %arg0, %c0_i32 : i32, i32
  }
  func.func @transform_1(%arg0: i32) -> (i32, i32) {
    %c0_i32 = arith.constant 0 : i32
    %c0_i32_0 = arith.constant 0 : i32
    return %arg0, %c0_i32 : i32, i32
  }
  func.func @transform_2(%arg0: i32) -> (i32, i32) {
    %c0_i32 = arith.constant 0 : i32
    %c0_i32_0 = arith.constant 0 : i32
    return %arg0, %c0_i32 : i32, i32
  }
  func.func @transform_3(%arg0: i32) -> (i32, i32) {
    %c0_i32 = arith.constant 0 : i32
    %c0_i32_0 = arith.constant 0 : i32
    %c0_i32_1 = arith.constant 0 : i32
    return %c0_i32, %c0_i32_0 : i32, i32
  }
  func.func @transform_4(%arg0: i32) -> (i32, i32) {
    %c0_i32 = arith.constant 0 : i32
    %c0_i32_0 = arith.constant 0 : i32
    %c0_i32_1 = arith.constant 0 : i32
    return %c0_i32, %c0_i32_0 : i32, i32
  }
  func.func @transform_5(%arg0: i32) -> (i32, i32) {
    %c0_i32 = arith.constant 0 : i32
    %c0_i32_0 = arith.constant 0 : i32
    %c0_i32_1 = arith.constant 0 : i32
    return %c0_i32, %c0_i32_0 : i32, i32
  }
  func.func @transform_6(%arg0: i32) -> (i32, i32) {
    %c0_i32 = arith.constant 0 : i32
    %c0_i32_0 = arith.constant 0 : i32
    %c0_i32_1 = arith.constant 0 : i32
    return %c0_i32, %c0_i32_0 : i32, i32
  }
  func.func @transform_7(%arg0: i32) -> (i32, i32) {
    %c0_i32 = arith.constant 0 : i32
    %c0_i32_0 = arith.constant 0 : i32
    %c0_i32_1 = arith.constant 0 : i32
    return %c0_i32, %c0_i32_0 : i32, i32
  }
  func.func @transform_8(%arg0: i32) -> (i32, i32) {
    %c0_i32 = arith.constant 0 : i32
    %c0_i32_0 = arith.constant 0 : i32
    %c0_i32_1 = arith.constant 0 : i32
    return %c0_i32, %c0_i32_0 : i32, i32
  }
  func.func @transform_9(%arg0: i32) -> (i32, i32) {
    %c0_i32 = arith.constant 0 : i32
    %c0_i32_0 = arith.constant 0 : i32
    %c0_i32_1 = arith.constant 0 : i32
    return %c0_i32, %c0_i32_0 : i32, i32
  }
  func.func @transform_10(%arg0: i32) -> (i32, i32) {
    %c0_i32 = arith.constant 0 : i32
    %c0_i32_0 = arith.constant 0 : i32
    %c0_i32_1 = arith.constant 0 : i32
    return %c0_i32, %c0_i32_0 : i32, i32
  }
  func.func @transform_11(%arg0: i32) -> (i32, i32) {
    %c0_i32 = arith.constant 0 : i32
    %c0_i32_0 = arith.constant 0 : i32
    %c0_i32_1 = arith.constant 0 : i32
    return %c0_i32, %c0_i32_0 : i32, i32
  }
  func.func @transform_12(%arg0: i32) -> (i32, i32) {
    %c0_i32 = arith.constant 0 : i32
    %c0_i32_0 = arith.constant 0 : i32
    %c0_i32_1 = arith.constant 0 : i32
    return %c0_i32, %c0_i32_0 : i32, i32
  }
  func.func @transform_13(%arg0: i32) -> (i32, i32) {
    %c0_i32 = arith.constant 0 : i32
    %c0_i32_0 = arith.constant 0 : i32
    %c0_i32_1 = arith.constant 0 : i32
    return %c0_i32, %c0_i32_0 : i32, i32
  }
  func.func @transform_14(%arg0: i32) -> (i32, i32) {
    %c0_i32 = arith.constant 0 : i32
    %c0_i32_0 = arith.constant 0 : i32
    %c0_i32_1 = arith.constant 0 : i32
    return %c0_i32, %c0_i32_0 : i32, i32
  }
  func.func @transform_15(%arg0: i32) -> (i32, i32) {
    %c0_i32 = arith.constant 0 : i32
    %c0_i32_0 = arith.constant 0 : i32
    %c0_i32_1 = arith.constant 0 : i32
    return %c0_i32, %c0_i32_0 : i32, i32
  }
  func.func @transform_16(%arg0: i32) -> (i32, i32) {
    %c0_i32 = arith.constant 0 : i32
    %c0_i32_0 = arith.constant 0 : i32
    return %arg0, %c0_i32 : i32, i32
  }
  func.func @transform_17(%arg0: i32) -> (i32, i32) {
    %c0_i32 = arith.constant 0 : i32
    %c0_i32_0 = arith.constant 0 : i32
    return %arg0, %c0_i32 : i32, i32
  }
}

module attributes {stable_mosaic.version = 11 : i64} {
  func.func @_gnn_step_kernel(%arg0: i32, %arg1: memref<16x16xf32, #tpu.memory_space<vmem>>, %arg2: memref<16x64xf32, #tpu.memory_space<vmem>>, %arg3: memref<16x32xbf16, #tpu.memory_space<vmem>>, %arg4: memref<16x32xbf16, #tpu.memory_space<vmem>>, %arg5: memref<1x32xf32, #tpu.memory_space<vmem>>, %arg6: memref<32x8xbf16, #tpu.memory_space<vmem>>, %arg7: memref<1x8xf32, #tpu.memory_space<vmem>>, %arg8: memref<32x1xbf16, #tpu.memory_space<vmem>>, %arg9: memref<1x1xf32, #tpu.memory_space<vmem>>, %arg10: memref<16x32xbf16, #tpu.memory_space<vmem>>, %arg11: memref<8x32xbf16, #tpu.memory_space<vmem>>, %arg12: memref<1x32xf32, #tpu.memory_space<vmem>>, %arg13: memref<32x16xbf16, #tpu.memory_space<vmem>>, %arg14: memref<1x16xf32, #tpu.memory_space<vmem>>, %arg15: memref<16x16xf32, #tpu.memory_space<vmem>>, %arg16: memref<16x32xf32, #tpu.memory_space<vmem>>) attributes {dimension_semantics = [#tpu.dimension_semantics<parallel>], iteration_bounds = array<i64: 2>, scalar_prefetch = 0 : i64, scratch_operands = 0 : i64, tpu.core_type = #tpu.core_type<tc>, window_params = [{transform_indices = @transform_0, window_bounds = array<i64: 16, 16>}, {transform_indices = @transform_1, window_bounds = array<i64: 16, 64>}, {pipeline_mode = #tpu.pipeline_mode<synchronous>, transform_indices = @transform_2, window_bounds = array<i64: 16, 32>}, {pipeline_mode = #tpu.pipeline_mode<synchronous>, transform_indices = @transform_3, window_bounds = array<i64: 16, 32>}, {pipeline_mode = #tpu.pipeline_mode<synchronous>, transform_indices = @transform_4, window_bounds = array<i64: 1, 32>}, {pipeline_mode = #tpu.pipeline_mode<synchronous>, transform_indices = @transform_5, window_bounds = array<i64: 32, 8>}, {pipeline_mode = #tpu.pipeline_mode<synchronous>, transform_indices = @transform_6, window_bounds = array<i64: 1, 8>}, {pipeline_mode = #tpu.pipeline_mode<synchronous>, transform_indices = @transform_7, window_bounds = array<i64: 32, 1>}, {pipeline_mode = #tpu.pipeline_mode<synchronous>, transform_indices = @transform_8, window_bounds = array<i64: 1, 1>}, {pipeline_mode = #tpu.pipeline_mode<synchronous>, transform_indices = @transform_9, window_bounds = array<i64: 16, 32>}, {pipeline_mode = #tpu.pipeline_mode<synchronous>, transform_indices = @transform_10, window_bounds = array<i64: 8, 32>}, {pipeline_mode = #tpu.pipeline_mode<synchronous>, transform_indices = @transform_11, window_bounds = array<i64: 1, 32>}, {pipeline_mode = #tpu.pipeline_mode<synchronous>, transform_indices = @transform_12, window_bounds = array<i64: 32, 16>}, {pipeline_mode = #tpu.pipeline_mode<synchronous>, transform_indices = @transform_13, window_bounds = array<i64: 1, 16>}, {transform_indices = @transform_14, window_bounds = array<i64: 16, 16>}, {transform_indices = @transform_15, window_bounds = array<i64: 16, 32>}]} {
    %c0 = arith.constant 0 : index
    %c0_0 = arith.constant 0 : index
    %0 = vector.load %arg1[%c0, %c0_0] : memref<16x16xf32, #tpu.memory_space<vmem>>, vector<16x16xf32>
    %c0_1 = arith.constant 0 : index
    %c0_2 = arith.constant 0 : index
    %1 = vector.load %arg2[%c0_1, %c0_2] : memref<16x64xf32, #tpu.memory_space<vmem>>, vector<16x64xf32>
    %c0_3 = arith.constant 0 : index
    %c0_4 = arith.constant 0 : index
    %2 = vector.load %arg4[%c0_3, %c0_4] : memref<16x32xbf16, #tpu.memory_space<vmem>>, vector<16x32xbf16>
    %3 = arith.truncf %0 : vector<16x16xf32> to vector<16x16xbf16>
    %cst = arith.constant dense<0.000000e+00> : vector<16x32xf32>
    %4 = tpu.matmul %3, %2, %cst {dimension_numbers = #tpu.dot_dimension_numbers<[1], [0], [0], [1], [0, 0, 1, 1], [], []>} : vector<16x16xbf16>, vector<16x32xbf16>, vector<16x32xf32> -> vector<16x32xf32>
    %c0_5 = arith.constant 0 : index
    %c0_6 = arith.constant 0 : index
    %5 = vector.load %arg5[%c0_5, %c0_6] : memref<1x32xf32, #tpu.memory_space<vmem>>, vector<1x32xf32>
    %6 = vector.broadcast %5 : vector<1x32xf32> to vector<16x32xf32>
    %7 = arith.addf %4, %6 : vector<16x32xf32>
    %8 = vector.extract_strided_slice %1 {offsets = [0, 0], sizes = [16, 16], strides = [1, 1]} : vector<16x64xf32> to vector<16x16xf32>
    %c0_7 = arith.constant 0 : index
    %c0_8 = arith.constant 0 : index
    %9 = vector.load %arg3[%c0_7, %c0_8] : memref<16x32xbf16, #tpu.memory_space<vmem>>, vector<16x32xbf16>
    %10 = arith.truncf %8 : vector<16x16xf32> to vector<16x16xbf16>
    %cst_9 = arith.constant dense<0.000000e+00> : vector<16x32xf32>
    %11 = tpu.matmul %10, %9, %cst_9 {dimension_numbers = #tpu.dot_dimension_numbers<[1], [0], [0], [1], [0, 0, 1, 1], [], []>} : vector<16x16xbf16>, vector<16x32xbf16>, vector<16x32xf32> -> vector<16x32xf32>
    %12 = arith.addf %11, %7 : vector<16x32xf32>
    %cst_10 = arith.constant 0.000000e+00 : f32
    %13 = vector.broadcast %cst_10 : f32 to vector<16x32xf32>
    %14 = arith.maximumf %12, %13 : vector<16x32xf32>
    %c0_11 = arith.constant 0 : index
    %c0_12 = arith.constant 0 : index
    %15 = vector.load %arg6[%c0_11, %c0_12] : memref<32x8xbf16, #tpu.memory_space<vmem>>, vector<32x8xbf16>
    %16 = arith.truncf %14 : vector<16x32xf32> to vector<16x32xbf16>
    %cst_13 = arith.constant dense<0.000000e+00> : vector<16x8xf32>
    %17 = tpu.matmul %16, %15, %cst_13 {dimension_numbers = #tpu.dot_dimension_numbers<[1], [0], [0], [1], [0, 0, 1, 1], [], []>} : vector<16x32xbf16>, vector<32x8xbf16>, vector<16x8xf32> -> vector<16x8xf32>
    %c0_14 = arith.constant 0 : index
    %c0_15 = arith.constant 0 : index
    %18 = vector.load %arg7[%c0_14, %c0_15] : memref<1x8xf32, #tpu.memory_space<vmem>>, vector<1x8xf32>
    %19 = vector.broadcast %18 : vector<1x8xf32> to vector<16x8xf32>
    %20 = arith.addf %17, %19 : vector<16x8xf32>
    %cst_16 = arith.constant 0.000000e+00 : f32
    %21 = vector.broadcast %cst_16 : f32 to vector<16x8xf32>
    %22 = arith.maximumf %20, %21 : vector<16x8xf32>
    %c0_17 = arith.constant 0 : index
    %c0_18 = arith.constant 0 : index
    %23 = vector.load %arg8[%c0_17, %c0_18] : memref<32x1xbf16, #tpu.memory_space<vmem>>, vector<32x1xbf16>
    %24 = arith.truncf %14 : vector<16x32xf32> to vector<16x32xbf16>
    %cst_19 = arith.constant dense<0.000000e+00> : vector<16x1xf32>
    %25 = tpu.matmul %24, %23, %cst_19 {dimension_numbers = #tpu.dot_dimension_numbers<[1], [0], [0], [1], [0, 0, 1, 1], [], []>} : vector<16x32xbf16>, vector<32x1xbf16>, vector<16x1xf32> -> vector<16x1xf32>
    %c0_20 = arith.constant 0 : index
    %c0_21 = arith.constant 0 : index
    %26 = vector.load %arg9[%c0_20, %c0_21] : memref<1x1xf32, #tpu.memory_space<vmem>>, vector<1x1xf32>
    %27 = vector.broadcast %26 : vector<1x1xf32> to vector<16x1xf32>
    %28 = arith.addf %25, %27 : vector<16x1xf32>
    %cst_22 = arith.constant 0.000000e+00 : f32
    %29 = vector.broadcast %cst_22 : f32 to vector<16x1xf32>
    %30 = arith.maximumf %28, %29 : vector<16x1xf32>
    %31 = vector.extract_strided_slice %1 {offsets = [0, 16], sizes = [16, 16], strides = [1, 1]} : vector<16x64xf32> to vector<16x16xf32>
    %c0_23 = arith.constant 0 : index
    %c0_24 = arith.constant 0 : index
    %32 = vector.load %arg3[%c0_23, %c0_24] : memref<16x32xbf16, #tpu.memory_space<vmem>>, vector<16x32xbf16>
    %33 = arith.truncf %31 : vector<16x16xf32> to vector<16x16xbf16>
    %cst_25 = arith.constant dense<0.000000e+00> : vector<16x32xf32>
    %34 = tpu.matmul %33, %32, %cst_25 {dimension_numbers = #tpu.dot_dimension_numbers<[1], [0], [0], [1], [0, 0, 1, 1], [], []>} : vector<16x16xbf16>, vector<16x32xbf16>, vector<16x32xf32> -> vector<16x32xf32>
    %35 = arith.addf %34, %7 : vector<16x32xf32>
    %cst_26 = arith.constant 0.000000e+00 : f32
    %36 = vector.broadcast %cst_26 : f32 to vector<16x32xf32>
    %37 = arith.maximumf %35, %36 : vector<16x32xf32>
    %c0_27 = arith.constant 0 : index
    %c0_28 = arith.constant 0 : index
    %38 = vector.load %arg6[%c0_27, %c0_28] : memref<32x8xbf16, #tpu.memory_space<vmem>>, vector<32x8xbf16>
    %39 = arith.truncf %37 : vector<16x32xf32> to vector<16x32xbf16>
    %cst_29 = arith.constant dense<0.000000e+00> : vector<16x8xf32>
    %40 = tpu.matmul %39, %38, %cst_29 {dimension_numbers = #tpu.dot_dimension_numbers<[1], [0], [0], [1], [0, 0, 1, 1], [], []>} : vector<16x32xbf16>, vector<32x8xbf16>, vector<16x8xf32> -> vector<16x8xf32>
    %c0_30 = arith.constant 0 : index
    %c0_31 = arith.constant 0 : index
    %41 = vector.load %arg7[%c0_30, %c0_31] : memref<1x8xf32, #tpu.memory_space<vmem>>, vector<1x8xf32>
    %42 = vector.broadcast %41 : vector<1x8xf32> to vector<16x8xf32>
    %43 = arith.addf %40, %42 : vector<16x8xf32>
    %cst_32 = arith.constant 0.000000e+00 : f32
    %44 = vector.broadcast %cst_32 : f32 to vector<16x8xf32>
    %45 = arith.maximumf %43, %44 : vector<16x8xf32>
    %c0_33 = arith.constant 0 : index
    %c0_34 = arith.constant 0 : index
    %46 = vector.load %arg8[%c0_33, %c0_34] : memref<32x1xbf16, #tpu.memory_space<vmem>>, vector<32x1xbf16>
    %47 = arith.truncf %37 : vector<16x32xf32> to vector<16x32xbf16>
    %cst_35 = arith.constant dense<0.000000e+00> : vector<16x1xf32>
    %48 = tpu.matmul %47, %46, %cst_35 {dimension_numbers = #tpu.dot_dimension_numbers<[1], [0], [0], [1], [0, 0, 1, 1], [], []>} : vector<16x32xbf16>, vector<32x1xbf16>, vector<16x1xf32> -> vector<16x1xf32>
    %c0_36 = arith.constant 0 : index
    %c0_37 = arith.constant 0 : index
    %49 = vector.load %arg9[%c0_36, %c0_37] : memref<1x1xf32, #tpu.memory_space<vmem>>, vector<1x1xf32>
    %50 = vector.broadcast %49 : vector<1x1xf32> to vector<16x1xf32>
    %51 = arith.addf %48, %50 : vector<16x1xf32>
    %cst_38 = arith.constant 0.000000e+00 : f32
    %52 = vector.broadcast %cst_38 : f32 to vector<16x1xf32>
    %53 = arith.maximumf %51, %52 : vector<16x1xf32>
    %54 = vector.extract_strided_slice %1 {offsets = [0, 32], sizes = [16, 16], strides = [1, 1]} : vector<16x64xf32> to vector<16x16xf32>
    %c0_39 = arith.constant 0 : index
    %c0_40 = arith.constant 0 : index
    %55 = vector.load %arg3[%c0_39, %c0_40] : memref<16x32xbf16, #tpu.memory_space<vmem>>, vector<16x32xbf16>
    %56 = arith.truncf %54 : vector<16x16xf32> to vector<16x16xbf16>
    %cst_41 = arith.constant dense<0.000000e+00> : vector<16x32xf32>
    %57 = tpu.matmul %56, %55, %cst_41 {dimension_numbers = #tpu.dot_dimension_numbers<[1], [0], [0], [1], [0, 0, 1, 1], [], []>} : vector<16x16xbf16>, vector<16x32xbf16>, vector<16x32xf32> -> vector<16x32xf32>
    %58 = arith.addf %57, %7 : vector<16x32xf32>
    %cst_42 = arith.constant 0.000000e+00 : f32
    %59 = vector.broadcast %cst_42 : f32 to vector<16x32xf32>
    %60 = arith.maximumf %58, %59 : vector<16x32xf32>
    %c0_43 = arith.constant 0 : index
    %c0_44 = arith.constant 0 : index
    %61 = vector.load %arg6[%c0_43, %c0_44] : memref<32x8xbf16, #tpu.memory_space<vmem>>, vector<32x8xbf16>
    %62 = arith.truncf %60 : vector<16x32xf32> to vector<16x32xbf16>
    %cst_45 = arith.constant dense<0.000000e+00> : vector<16x8xf32>
    %63 = tpu.matmul %62, %61, %cst_45 {dimension_numbers = #tpu.dot_dimension_numbers<[1], [0], [0], [1], [0, 0, 1, 1], [], []>} : vector<16x32xbf16>, vector<32x8xbf16>, vector<16x8xf32> -> vector<16x8xf32>
    %c0_46 = arith.constant 0 : index
    %c0_47 = arith.constant 0 : index
    %64 = vector.load %arg7[%c0_46, %c0_47] : memref<1x8xf32, #tpu.memory_space<vmem>>, vector<1x8xf32>
    %65 = vector.broadcast %64 : vector<1x8xf32> to vector<16x8xf32>
    %66 = arith.addf %63, %65 : vector<16x8xf32>
    %cst_48 = arith.constant 0.000000e+00 : f32
    %67 = vector.broadcast %cst_48 : f32 to vector<16x8xf32>
    %68 = arith.maximumf %66, %67 : vector<16x8xf32>
    %c0_49 = arith.constant 0 : index
    %c0_50 = arith.constant 0 : index
    %69 = vector.load %arg8[%c0_49, %c0_50] : memref<32x1xbf16, #tpu.memory_space<vmem>>, vector<32x1xbf16>
    %70 = arith.truncf %60 : vector<16x32xf32> to vector<16x32xbf16>
    %cst_51 = arith.constant dense<0.000000e+00> : vector<16x1xf32>
    %71 = tpu.matmul %70, %69, %cst_51 {dimension_numbers = #tpu.dot_dimension_numbers<[1], [0], [0], [1], [0, 0, 1, 1], [], []>} : vector<16x32xbf16>, vector<32x1xbf16>, vector<16x1xf32> -> vector<16x1xf32>
    %c0_52 = arith.constant 0 : index
    %c0_53 = arith.constant 0 : index
    %72 = vector.load %arg9[%c0_52, %c0_53] : memref<1x1xf32, #tpu.memory_space<vmem>>, vector<1x1xf32>
    %73 = vector.broadcast %72 : vector<1x1xf32> to vector<16x1xf32>
    %74 = arith.addf %71, %73 : vector<16x1xf32>
    %cst_54 = arith.constant 0.000000e+00 : f32
    %75 = vector.broadcast %cst_54 : f32 to vector<16x1xf32>
    %76 = arith.maximumf %74, %75 : vector<16x1xf32>
    %77 = vector.extract_strided_slice %1 {offsets = [0, 48], sizes = [16, 16], strides = [1, 1]} : vector<16x64xf32> to vector<16x16xf32>
    %c0_55 = arith.constant 0 : index
    %c0_56 = arith.constant 0 : index
    %78 = vector.load %arg3[%c0_55, %c0_56] : memref<16x32xbf16, #tpu.memory_space<vmem>>, vector<16x32xbf16>
    %79 = arith.truncf %77 : vector<16x16xf32> to vector<16x16xbf16>
    %cst_57 = arith.constant dense<0.000000e+00> : vector<16x32xf32>
    %80 = tpu.matmul %79, %78, %cst_57 {dimension_numbers = #tpu.dot_dimension_numbers<[1], [0], [0], [1], [0, 0, 1, 1], [], []>} : vector<16x16xbf16>, vector<16x32xbf16>, vector<16x32xf32> -> vector<16x32xf32>
    %81 = arith.addf %80, %7 : vector<16x32xf32>
    %cst_58 = arith.constant 0.000000e+00 : f32
    %82 = vector.broadcast %cst_58 : f32 to vector<16x32xf32>
    %83 = arith.maximumf %81, %82 : vector<16x32xf32>
    %c0_59 = arith.constant 0 : index
    %c0_60 = arith.constant 0 : index
    %84 = vector.load %arg6[%c0_59, %c0_60] : memref<32x8xbf16, #tpu.memory_space<vmem>>, vector<32x8xbf16>
    %85 = arith.truncf %83 : vector<16x32xf32> to vector<16x32xbf16>
    %cst_61 = arith.constant dense<0.000000e+00> : vector<16x8xf32>
    %86 = tpu.matmul %85, %84, %cst_61 {dimension_numbers = #tpu.dot_dimension_numbers<[1], [0], [0], [1], [0, 0, 1, 1], [], []>} : vector<16x32xbf16>, vector<32x8xbf16>, vector<16x8xf32> -> vector<16x8xf32>
    %c0_62 = arith.constant 0 : index
    %c0_63 = arith.constant 0 : index
    %87 = vector.load %arg7[%c0_62, %c0_63] : memref<1x8xf32, #tpu.memory_space<vmem>>, vector<1x8xf32>
    %88 = vector.broadcast %87 : vector<1x8xf32> to vector<16x8xf32>
    %89 = arith.addf %86, %88 : vector<16x8xf32>
    %cst_64 = arith.constant 0.000000e+00 : f32
    %90 = vector.broadcast %cst_64 : f32 to vector<16x8xf32>
    %91 = arith.maximumf %89, %90 : vector<16x8xf32>
    %c0_65 = arith.constant 0 : index
    %c0_66 = arith.constant 0 : index
    %92 = vector.load %arg8[%c0_65, %c0_66] : memref<32x1xbf16, #tpu.memory_space<vmem>>, vector<32x1xbf16>
    %93 = arith.truncf %83 : vector<16x32xf32> to vector<16x32xbf16>
    %cst_67 = arith.constant dense<0.000000e+00> : vector<16x1xf32>
    %94 = tpu.matmul %93, %92, %cst_67 {dimension_numbers = #tpu.dot_dimension_numbers<[1], [0], [0], [1], [0, 0, 1, 1], [], []>} : vector<16x32xbf16>, vector<32x1xbf16>, vector<16x1xf32> -> vector<16x1xf32>
    %c0_68 = arith.constant 0 : index
    %c0_69 = arith.constant 0 : index
    %95 = vector.load %arg9[%c0_68, %c0_69] : memref<1x1xf32, #tpu.memory_space<vmem>>, vector<1x1xf32>
    %96 = vector.broadcast %95 : vector<1x1xf32> to vector<16x1xf32>
    %97 = arith.addf %94, %96 : vector<16x1xf32>
    %cst_70 = arith.constant 0.000000e+00 : f32
    %98 = vector.broadcast %cst_70 : f32 to vector<16x1xf32>
    %99 = arith.maximumf %97, %98 : vector<16x1xf32>
    %100 = arith.maximumf %30, %53 : vector<16x1xf32>
    %101 = arith.maximumf %100, %76 : vector<16x1xf32>
    %102 = arith.maximumf %101, %99 : vector<16x1xf32>
    %103 = arith.subf %30, %102 : vector<16x1xf32>
    %104 = math.exp %103 : vector<16x1xf32>
    %105 = arith.subf %53, %102 : vector<16x1xf32>
    %106 = math.exp %105 : vector<16x1xf32>
    %107 = arith.subf %76, %102 : vector<16x1xf32>
    %108 = math.exp %107 : vector<16x1xf32>
    %109 = arith.subf %99, %102 : vector<16x1xf32>
    %110 = math.exp %109 : vector<16x1xf32>
    %111 = arith.addf %104, %106 : vector<16x1xf32>
    %112 = arith.addf %111, %108 : vector<16x1xf32>
    %113 = arith.addf %112, %110 : vector<16x1xf32>
    %cst_71 = arith.constant 1.000000e+00 : f32
    %114 = vector.broadcast %cst_71 : f32 to vector<16x1xf32>
    %115 = arith.divf %114, %113 : vector<16x1xf32>
    %116 = arith.mulf %104, %115 : vector<16x1xf32>
    %117 = vector.broadcast %116 : vector<16x1xf32> to vector<16x8xf32>
    %118 = arith.mulf %117, %22 : vector<16x8xf32>
    %119 = arith.mulf %106, %115 : vector<16x1xf32>
    %120 = vector.broadcast %119 : vector<16x1xf32> to vector<16x8xf32>
    %121 = arith.mulf %120, %45 : vector<16x8xf32>
    %122 = arith.addf %118, %121 : vector<16x8xf32>
    %123 = arith.mulf %108, %115 : vector<16x1xf32>
    %124 = vector.broadcast %123 : vector<16x1xf32> to vector<16x8xf32>
    %125 = arith.mulf %124, %68 : vector<16x8xf32>
    %126 = arith.addf %122, %125 : vector<16x8xf32>
    %127 = arith.mulf %110, %115 : vector<16x1xf32>
    %128 = vector.broadcast %127 : vector<16x1xf32> to vector<16x8xf32>
    %129 = arith.mulf %128, %91 : vector<16x8xf32>
    %130 = arith.addf %126, %129 : vector<16x8xf32>
    %c0_72 = arith.constant 0 : index
    %c0_73 = arith.constant 0 : index
    %131 = vector.load %arg10[%c0_72, %c0_73] : memref<16x32xbf16, #tpu.memory_space<vmem>>, vector<16x32xbf16>
    %132 = arith.truncf %0 : vector<16x16xf32> to vector<16x16xbf16>
    %cst_74 = arith.constant dense<0.000000e+00> : vector<16x32xf32>
    %133 = tpu.matmul %132, %131, %cst_74 {dimension_numbers = #tpu.dot_dimension_numbers<[1], [0], [0], [1], [0, 0, 1, 1], [], []>} : vector<16x16xbf16>, vector<16x32xbf16>, vector<16x32xf32> -> vector<16x32xf32>
    %c0_75 = arith.constant 0 : index
    %c0_76 = arith.constant 0 : index
    %134 = vector.load %arg11[%c0_75, %c0_76] : memref<8x32xbf16, #tpu.memory_space<vmem>>, vector<8x32xbf16>
    %135 = arith.truncf %130 : vector<16x8xf32> to vector<16x8xbf16>
    %cst_77 = arith.constant dense<0.000000e+00> : vector<16x32xf32>
    %136 = tpu.matmul %135, %134, %cst_77 {dimension_numbers = #tpu.dot_dimension_numbers<[1], [0], [0], [1], [0, 0, 1, 1], [], []>} : vector<16x8xbf16>, vector<8x32xbf16>, vector<16x32xf32> -> vector<16x32xf32>
    %137 = arith.addf %133, %136 : vector<16x32xf32>
    %c0_78 = arith.constant 0 : index
    %c0_79 = arith.constant 0 : index
    %138 = vector.load %arg12[%c0_78, %c0_79] : memref<1x32xf32, #tpu.memory_space<vmem>>, vector<1x32xf32>
    %139 = vector.broadcast %138 : vector<1x32xf32> to vector<16x32xf32>
    %140 = arith.addf %137, %139 : vector<16x32xf32>
    %cst_80 = arith.constant 0.000000e+00 : f32
    %141 = vector.broadcast %cst_80 : f32 to vector<16x32xf32>
    %142 = arith.maximumf %140, %141 : vector<16x32xf32>
    %c0_81 = arith.constant 0 : index
    %c0_82 = arith.constant 0 : index
    %143 = vector.load %arg13[%c0_81, %c0_82] : memref<32x16xbf16, #tpu.memory_space<vmem>>, vector<32x16xbf16>
    %144 = arith.truncf %142 : vector<16x32xf32> to vector<16x32xbf16>
    %cst_83 = arith.constant dense<0.000000e+00> : vector<16x16xf32>
    %145 = tpu.matmul %144, %143, %cst_83 {dimension_numbers = #tpu.dot_dimension_numbers<[1], [0], [0], [1], [0, 0, 1, 1], [], []>} : vector<16x32xbf16>, vector<32x16xbf16>, vector<16x16xf32> -> vector<16x16xf32>
    %c0_84 = arith.constant 0 : index
    %c0_85 = arith.constant 0 : index
    %146 = vector.load %arg14[%c0_84, %c0_85] : memref<1x16xf32, #tpu.memory_space<vmem>>, vector<1x16xf32>
    %147 = vector.broadcast %146 : vector<1x16xf32> to vector<16x16xf32>
    %148 = arith.addf %145, %147 : vector<16x16xf32>
    %cst_86 = arith.constant 0.000000e+00 : f32
    %149 = vector.broadcast %cst_86 : f32 to vector<16x16xf32>
    %150 = arith.maximumf %148, %149 : vector<16x16xf32>
    %c0_87 = arith.constant 0 : index
    %c0_88 = arith.constant 0 : index
    %151 = vector.load %arg15[%c0_87, %c0_88] : memref<16x16xf32, #tpu.memory_space<vmem>>, vector<16x16xf32>
    tpu.vector_store %arg15[%c0_87, %c0_88], %150 {strides = array<i32>} : memref<16x16xf32, #tpu.memory_space<vmem>>, vector<16x16xf32>,
    %c0_89 = arith.constant 0 : index
    %c0_90 = arith.constant 0 : index
    %152 = vector.load %arg16[%c0_89, %c0_90] : memref<16x32xf32, #tpu.memory_space<vmem>>, vector<16x8xf32>
    tpu.vector_store %arg16[%c0_89, %c0_90], %22 {strides = array<i32>} : memref<16x32xf32, #tpu.memory_space<vmem>>, vector<16x8xf32>,
    %c0_91 = arith.constant 0 : index
    %c8 = arith.constant 8 : index
    %153 = vector.load %arg16[%c0_91, %c8] : memref<16x32xf32, #tpu.memory_space<vmem>>, vector<16x8xf32>
    tpu.vector_store %arg16[%c0_91, %c8], %45 {strides = array<i32>} : memref<16x32xf32, #tpu.memory_space<vmem>>, vector<16x8xf32>,
    %c0_92 = arith.constant 0 : index
    %c16 = arith.constant 16 : index
    %154 = vector.load %arg16[%c0_92, %c16] : memref<16x32xf32, #tpu.memory_space<vmem>>, vector<16x8xf32>
    tpu.vector_store %arg16[%c0_92, %c16], %68 {strides = array<i32>} : memref<16x32xf32, #tpu.memory_space<vmem>>, vector<16x8xf32>,
    %c0_93 = arith.constant 0 : index
    %c24 = arith.constant 24 : index
    %155 = vector.load %arg16[%c0_93, %c24] : memref<16x32xf32, #tpu.memory_space<vmem>>, vector<16x8xf32>
    tpu.vector_store %arg16[%c0_93, %c24], %91 {strides = array<i32>} : memref<16x32xf32, #tpu.memory_space<vmem>>, vector<16x8xf32>,
    return
  }
  func.func @transform_0(%arg0: i32) -> (i32, i32) {
    %c0_i32 = arith.constant 0 : i32
    %c0_i32_0 = arith.constant 0 : i32
    return %arg0, %c0_i32 : i32, i32
  }
  func.func @transform_1(%arg0: i32) -> (i32, i32) {
    %c0_i32 = arith.constant 0 : i32
    %c0_i32_0 = arith.constant 0 : i32
    return %arg0, %c0_i32 : i32, i32
  }
  func.func @transform_2(%arg0: i32) -> (i32, i32) {
    %c0_i32 = arith.constant 0 : i32
    %c0_i32_0 = arith.constant 0 : i32
    %c0_i32_1 = arith.constant 0 : i32
    return %c0_i32, %c0_i32_0 : i32, i32
  }
  func.func @transform_3(%arg0: i32) -> (i32, i32) {
    %c0_i32 = arith.constant 0 : i32
    %c0_i32_0 = arith.constant 0 : i32
    %c0_i32_1 = arith.constant 0 : i32
    return %c0_i32, %c0_i32_0 : i32, i32
  }
  func.func @transform_4(%arg0: i32) -> (i32, i32) {
    %c0_i32 = arith.constant 0 : i32
    %c0_i32_0 = arith.constant 0 : i32
    %c0_i32_1 = arith.constant 0 : i32
    return %c0_i32, %c0_i32_0 : i32, i32
  }
  func.func @transform_5(%arg0: i32) -> (i32, i32) {
    %c0_i32 = arith.constant 0 : i32
    %c0_i32_0 = arith.constant 0 : i32
    %c0_i32_1 = arith.constant 0 : i32
    return %c0_i32, %c0_i32_0 : i32, i32
  }
  func.func @transform_6(%arg0: i32) -> (i32, i32) {
    %c0_i32 = arith.constant 0 : i32
    %c0_i32_0 = arith.constant 0 : i32
    %c0_i32_1 = arith.constant 0 : i32
    return %c0_i32, %c0_i32_0 : i32, i32
  }
  func.func @transform_7(%arg0: i32) -> (i32, i32) {
    %c0_i32 = arith.constant 0 : i32
    %c0_i32_0 = arith.constant 0 : i32
    %c0_i32_1 = arith.constant 0 : i32
    return %c0_i32, %c0_i32_0 : i32, i32
  }
  func.func @transform_8(%arg0: i32) -> (i32, i32) {
    %c0_i32 = arith.constant 0 : i32
    %c0_i32_0 = arith.constant 0 : i32
    %c0_i32_1 = arith.constant 0 : i32
    return %c0_i32, %c0_i32_0 : i32, i32
  }
  func.func @transform_9(%arg0: i32) -> (i32, i32) {
    %c0_i32 = arith.constant 0 : i32
    %c0_i32_0 = arith.constant 0 : i32
    %c0_i32_1 = arith.constant 0 : i32
    return %c0_i32, %c0_i32_0 : i32, i32
  }
  func.func @transform_10(%arg0: i32) -> (i32, i32) {
    %c0_i32 = arith.constant 0 : i32
    %c0_i32_0 = arith.constant 0 : i32
    %c0_i32_1 = arith.constant 0 : i32
    return %c0_i32, %c0_i32_0 : i32, i32
  }
  func.func @transform_11(%arg0: i32) -> (i32, i32) {
    %c0_i32 = arith.constant 0 : i32
    %c0_i32_0 = arith.constant 0 : i32
    %c0_i32_1 = arith.constant 0 : i32
    return %c0_i32, %c0_i32_0 : i32, i32
  }
  func.func @transform_12(%arg0: i32) -> (i32, i32) {
    %c0_i32 = arith.constant 0 : i32
    %c0_i32_0 = arith.constant 0 : i32
    %c0_i32_1 = arith.constant 0 : i32
    return %c0_i32, %c0_i32_0 : i32, i32
  }
  func.func @transform_13(%arg0: i32) -> (i32, i32) {
    %c0_i32 = arith.constant 0 : i32
    %c0_i32_0 = arith.constant 0 : i32
    %c0_i32_1 = arith.constant 0 : i32
    return %c0_i32, %c0_i32_0 : i32, i32
  }
  func.func @transform_14(%arg0: i32) -> (i32, i32) {
    %c0_i32 = arith.constant 0 : i32
    %c0_i32_0 = arith.constant 0 : i32
    return %arg0, %c0_i32 : i32, i32
  }
  func.func @transform_15(%arg0: i32) -> (i32, i32) {
    %c0_i32 = arith.constant 0 : i32
    %c0_i32_0 = arith.constant 0 : i32
    return %arg0, %c0_i32 : i32, i32
  }
}

</mosaic_0001>

<bundles_post_ra>
// kernel: _lambda_.7
= control target key start
LH: loop header
LB: loop body
LE: loop exit
PB: predicated region body
PF: predicated region fallthrough
CT: control target
= control target key end

     0   :  { %s536_s18 = smov 0   ;;  %s579_s0 = inlined_call_operand.vmem [shape: f32[32,16], index: 0, kind: input, shape index: {}]   ;;  %s580_s1 = inlined_call_operand.vmem [shape: bf16[16,32], index: 1, kind: input, shape index: {}]   ;;  %s581_s2 = inlined_call_operand.vmem [shape: f32[1,32], index: 2, kind: input, shape index: {}]   ;;  %s582_s3 = inlined_call_operand.vmem [shape: bf16[32,8], index: 3, kind: input, shape index: {}]   ;;  %s583_s4 = inlined_call_operand.vmem [shape: f32[1,8], index: 4, kind: input, shape index: {}]   ;;  %s584_s5 = inlined_call_operand.vmem [shape: f32[32,8], index: 5, kind: output, shape index: {}]  }
   0x1 LB: > { %s438_s19 = sadd.s32 4294967295, %s502_s18   ;;  %p442_p0 = scmp.ge.s32.totalorder %s502_s18, 1  ;;  %s502_s18 = sphi %s536_s18, %s15_s18  }
   0x2   : > { %p188_p1 = scmp.lt.s32.totalorder %s502_s18, 3 }
   0x4   : > { %p189_p2 = pnand %p442_p0, %p188_p1 }
   0x5   : > { %s443_s22 = sshll.u32 (!%p189_p2), %s438_s19, 1 }
   0x6   : > { %192 = sbr.rel (%p189_p2) target bundleno = 593 (0x251), region = 40  ;;  %p217_p3 = scmp.lt.s32.totalorder (!%p189_p2), %s443_s22, 3 }
   0xb   : > { %v485_v0 = vld [vmem:[%s580_s1] sm:$0xff]   ;;  %v504_v1 = vmov 0.0   ;;  %vm505_vm0 = vmmov 0   ;;  %s586_s22 = smov (!%p217_p3, %s443_s22), 3  ;;  %vm247_vm1 = vcmask 130048   ;;  %v486_v5 = vld [vmem:[%s582_s3 + $0x8] sm:$0xff]  }
   0xc   : > { %461 = vmatprep.subr.bf16.mxu0 %v504_v1  ;;  %467 = vmatprep.subr.bf16.mxu1 %v504_v1  ;;  %s444_s23 = sshll.u32 %s586_s22, 3  ;;  %v487_v6 = vld [vmem:[%s582_s3] sm:$0xff]   ;;  %vm318_vm2 = vcmask 261120   ;;  %vm367_vm3 = vcmask 64512  }
   0xd   : > { %462 = vmatpush3.bf16.msra.mxu0 %v485_v0  ;;  %463 = vmatprep.mubr.msk.bf16.mxu0 %vm505_vm0, %v504_v1  ;;  %s220_s26 = scalar_lea.vmem %s579_s0, %s444_s23  ;;  %v447_v7 = vld [vmem:[%s581_s2] ss:$0 sm:$0xff]  ;;  %s226_s12 = scalar_lea.vmem %s584_s5, %s444_s23 }
   0xe   : > { %471 = vmatprep.mubr.msk.bf16.mxu1 %vm505_vm0, %v504_v1  ;;  %v229_v2 = vld [vmem:[%s220_s26] sm:$0xff]  ;;  %v230_v3 = vld [vmem:[%s220_s26 + $0x8] sm:$0xff]  ;;  %468 = vmatpush3.bf16.msra.mxu1 %v486_v5 }
   0xf   : > { %v234_v4 = vpack.c.bf16 %v230_v3, %v229_v2  ;;  %469 = vmatprep.subr.bf16.mxu1 %v504_v1  ;;  %v450_v17 = vld [vmem:[%s583_s4] ss:$0 sm:$0xff] }
  0x11   : > { %464 = vmatmul.mubr.msk.bf16.vlgmr.msra.gmra.mxu0 %vm247_vm1, %v234_v4 }
  0x12   : > { %470 = vmatpush3.bf16.msra.mxu1 %v487_v6 }
  0xd1   : > { %v285_v8 = vpop.f32.mrf.mxu0 }
  0xd2   : > { %v286_v10 = vadd.f32 %v447_v7, %v285_v8 }
  0xd3   : > { %v465_v9 = vpop.f32.mrf.mxu0 }
  0xd4   : > { %v292_v14 = vmax.f32 %v286_v10, 0.0 }
  0xd5   : > { %v288_v11 = vpop.f32.mrf.mxu0 }
  0xd6   : > { %v289_v12 = vadd.f32 %v447_v7, %v288_v11 }
  0xd7   : > { %v466_v13 = vpop.f32.mrf.mxu0 }
  0xd8   : > { %v293_v15 = vmax.f32 %v289_v12, 0.0 }
  0xda   : > { %v299_v16 = vpack.c.bf16 %v293_v15, %v292_v14 }
  0xdc   : > { %472 = vmatmul.mubr.msk.bf16.vlgmr.msra.gmra.mxu1 %vm318_vm2, %v299_v16 }
 0x19c   : > { %v356_v18 = vpop.f32.mrf.mxu1 }
 0x19d   : > { %v357_v19 = vadd.f32 %v450_v17, %v356_v18 }
 0x19e   : > { %v473_v20 = vpop.f32.mrf.mxu1 }
 0x19f   : > { %488 = vtanh.f32 %v357_v19 }
 0x1a0   : > { %v359_v21 = vpop.f32.mrf.mxu1 }
 0x1a1   : > { %v360_v22 = vadd.f32 %v450_v17, %v359_v21 }
 0x1a2   : > { %v474_v23 = vpop.f32.mrf.mxu1 }
 0x1a3   : > { %490 = vtanh.f32 %v360_v22 }
 0x1ac   : > { %v489_v24 = vpop.eup %488 }
 0x1ad   : > { %v365_v25 = vmul.f32 %v489_v24, %v489_v24 }
 0x1af   : > { %v368_v26 = vsel %vm367_vm3, %v365_v25, 0.0 }
 0x1b0   : > { %v491_v27 = vpop.eup %490  ;;  %369 = vadd.xlane.f32.xlu0 %v368_v26 }
 0x1b1   : > { %v366_v28 = vmul.f32 %v491_v27, %v491_v27 }
 0x1b3   : > { %v371_v29 = vsel %vm367_vm3, %v366_v28, 0.0 }
 0x1b4   : > { %372 = vadd.xlane.f32.xlu0 %v371_v29 }
 0x239   : > { %v370_v30 = vpop.xlane.xlu0 %369 }
 0x23a   : > { %v374_v31 = vmax.f32 %v370_v30, 1e-24 }
 0x23c   : > { %492 = vrsqrt.f32 %v374_v31 }
 0x23d   : > { %v373_v32 = vpop.xlane.xlu0 %372 }
 0x23e   : > { %v375_v33 = vmax.f32 %v373_v32, 1e-24 }
 0x240   : > { %494 = vrsqrt.f32 %v375_v33 }
 0x249   : > { %v493_v34 = vpop.eup %492 }
 0x24a   : > { %v378_v35 = vmul.f32 %v493_v34, %v489_v24 }
 0x24c   : > { %380 = vst.msk [vmem:[%s226_s12] sm:$0xff] %vm367_vm3, %v378_v35 }
 0x24d   : > { %v495_v36 = vpop.eup %494 }
 0x24e   : > { %v379_v37 = vmul.f32 %v495_v36, %v491_v27 }
 0x250   : > { %381 = vst.msk [vmem:[%s226_s12 + $0x8] sm:$0xff] %vm367_vm3, %v379_v37 }
 0x251 PF: > { %s15_s18 = sadd.s32 1, %s502_s18  }
 0x252   : > { %p12_p4 = scmp.ge.s32.totalorder %s15_s18, 4  }
 0x254   :  { %14 = sbr.rel (!%p12_p4) target bundleno = 1 (0x1), region = 70 }

// kernel: _lambda_.6
= control target key start
LH: loop header
LB: loop body
LE: loop exit
PB: predicated region body
PF: predicated region fallthrough
CT: control target
= control target key end

     0   :  { %s882_s13 = smov 0   ;;  %s948_s0 = inlined_call_operand.vmem [shape: f32[32,4], index: 0, kind: input, shape index: {}]   ;;  %s949_s1 = inlined_call_operand.vmem [shape: bf16[4,32], index: 1, kind: input, shape index: {}]   ;;  %s950_s2 = inlined_call_operand.vmem [shape: f32[1,32], index: 2, kind: input, shape index: {}]   ;;  %s951_s3 = inlined_call_operand.vmem [shape: bf16[32,16], index: 3, kind: input, shape index: {}]   ;;  %s952_s4 = inlined_call_operand.vmem [shape: f32[1,16], index: 4, kind: input, shape index: {}]   ;;  %s953_s5 = inlined_call_operand.vmem [shape: bf16[16,32], index: 5, kind: input, shape index: {}]   ;;  %s954_s6 = inlined_call_operand.vmem [shape: f32[1,32], index: 6, kind: input, shape index: {}]   ;;  %s955_s7 = inlined_call_operand.vmem [shape: bf16[32,16], index: 7, kind: input, shape index: {}]   ;;  %s956_s8 = inlined_call_operand.vmem [shape: f32[1,16], index: 8, kind: input, shape index: {}]   ;;  %s957_s9 = inlined_call_operand.vmem [shape: f32[32,16], index: 9, kind: output, shape index: {0}]   ;;  %s958_s10 = inlined_call_operand.vmem [shape: f32[32,16], index: 10, kind: output, shape index: {1}]  }
   0x1 LB: > { %s738_s14 = sadd.s32 4294967295, %s823_s13   ;;  %p742_p0 = scmp.ge.s32.totalorder %s823_s13, 1  ;;  %s823_s13 = sphi %s882_s13, %s21_s13  }
   0x2   : > { %p316_p1 = scmp.lt.s32.totalorder %s823_s13, 3 }
   0x4   : > { %p317_p2 = pnand %p742_p0, %p316_p1 }
   0x5   : > { %s743_s17 = sshll.u32 (!%p317_p2), %s738_s14, 1 }
   0x6   : > { %320 = sbr.rel (%p317_p2) target bundleno = 828 (0x33c), region = 56  ;;  %p360_p3 = scmp.lt.s32.totalorder (!%p317_p2), %s743_s17, 3 }
   0xb   : > { %v380_v0 = vld [vmem:[%s949_s1] sm:$0x3]  ;;  %vm393_vm0 = vcmask 1041408   ;;  %v825_v1 = vmov 0.0   ;;  %vm826_vm1 = vmmov 0   ;;  %s960_s17 = smov (!%p360_p3, %s743_s17), 3 }
   0xc   : > { %774 = vmatprep.subr.bf16.mxu0 %v825_v1  ;;  %v395_v2 = vsel %vm393_vm0, %v380_v0, 0  ;;  %776 = vmatprep.mubr.msk.bf16.mxu0 %vm826_vm1, %v825_v1  ;;  %s895_s18 = sshll.u32 %s960_s17, 3  ;;  %vm389_vm2 = vcmask 31744   ;;  %v812_v6 = vld [vmem:[%s951_s3 + $0x8] sm:$0xff]   ;;  %v813_v7 = vld [vmem:[%s951_s3] sm:$0xff]   ;;  %vm464_vm3 = vcmask 261120  }
   0xd   : > { %775 = vmatpush3.bf16.msra.mxu0 %v395_v2  ;;  %780 = vmatprep.subr.bf16.mxu1 %v825_v1  ;;  %s363_s21 = scalar_lea.vmem %s948_s0, %s895_s18  ;;  %v749_v8 = vld [vmem:[%s950_s2] ss:$0 sm:$0xff]  ;;  %s369_s15 = scalar_lea.vmem %s957_s9, %s895_s18  ;;  %vm511_vm4 = vcmask 130048   ;;  %v815_v29 = vld [vmem:[%s955_s7 + $0x8] sm:$0xff]  }
   0xe   : > { %784 = vmatprep.mubr.msk.bf16.mxu1 %vm826_vm1, %v825_v1  ;;  %788 = vmatprep.subr.bf16.mxu0 %v825_v1  ;;  %v378_v3 = vld [vmem:[%s363_s21] sm:$0xff]  ;;  %v379_v4 = vld [vmem:[%s363_s21 + $0x8] sm:$0xff]  ;;  %s375_s27 = scalar_lea.vmem %s958_s10, %s895_s18 }
   0xf   : > { %v381_v5 = vpack.c.bf16 %v379_v4, %v378_v3  ;;  %781 = vmatpush3.bf16.msra.mxu1 %v812_v6  ;;  %v814_v18 = vld [vmem:[%s953_s5] sm:$0xff]  }
  0x10   : > { %782 = vmatprep.subr.bf16.mxu1 %v825_v1  ;;  %v751_v19 = vld [vmem:[%s952_s4] ss:$0 sm:$0xff] }
  0x11   : > { %777 = vmatmul.mubr.msk.bf16.vlgmr.msra.gmra.mxu0 %vm389_vm2, %v381_v5  ;;  %v816_v30 = vld [vmem:[%s955_s7] sm:$0xff]  }
  0x12   : > { %790 = vmatprep.mubr.msk.bf16.mxu0 %vm826_vm1, %v825_v1  ;;  %789 = vmatpush3.bf16.msra.mxu0 %v814_v18  ;;  %v755_v31 = vld [vmem:[%s954_s6] ss:$0 sm:$0xff] }
  0x13   : > { %783 = vmatpush3.bf16.msra.mxu1 %v813_v7  ;;  %v758_v41 = vld [vmem:[%s956_s8] ss:$0 sm:$0xff] }
  0x14   : > { %794 = vmatprep.subr.bf16.mxu1 %v825_v1 }
  0xd1   : > { %v431_v9 = vpop.f32.mrf.mxu0 }
  0xd2   : > { %v432_v11 = vadd.f32 %v749_v8, %v431_v9 }
  0xd3   : > { %v778_v10 = vpop.f32.mrf.mxu0 }
  0xd4   : > { %v438_v15 = vmax.f32 %v432_v11, 0.0 }
  0xd5   : > { %v434_v12 = vpop.f32.mrf.mxu0 }
  0xd6   : > { %v435_v13 = vadd.f32 %v749_v8, %v434_v12 }
  0xd7   : > { %v779_v14 = vpop.f32.mrf.mxu0 }
  0xd8   : > { %v439_v16 = vmax.f32 %v435_v13, 0.0 }
  0xda   : > { %v444_v17 = vpack.c.bf16 %v439_v16, %v438_v15 }
  0xdc   : > { %785 = vmatmul.mubr.msk.bf16.vlgmr.msra.gmra.mxu1 %vm464_vm3, %v444_v17 }
  0xdd   : > { %798 = vmatprep.mubr.msk.bf16.mxu1 %vm826_vm1, %v825_v1  ;;  %795 = vmatpush3.bf16.msra.mxu1 %v815_v29 }
  0xde   : > { %796 = vmatprep.subr.bf16.mxu1 %v825_v1 }
  0xe1   : > { %797 = vmatpush3.bf16.msra.mxu1 %v816_v30 }
 0x19c   : > { %v502_v20 = vpop.f32.mrf.mxu1 }
 0x19d   : > { %v503_v21 = vadd.f32 %v751_v19, %v502_v20 }
 0x19e   : > { %v786_v22 = vpop.f32.mrf.mxu1 }
 0x19f   : > { %v509_v23 = vmax.f32 %v503_v21, 0.0 }
 0x1a0   : > { %v505_v24 = vpop.f32.mrf.mxu1 }
 0x1a1   : > { %512 = vst.msk [vmem:[%s369_s15] sm:$0xff] %vm511_vm4, %v509_v23  ;;  %v506_v25 = vadd.f32 %v751_v19, %v505_v24 }
 0x1a2   : > { %v787_v26 = vpop.f32.mrf.mxu1 }
 0x1a3   : > { %v510_v27 = vmax.f32 %v506_v25, 0.0 }
 0x1a5   : > { %513 = vst.msk [vmem:[%s369_s15 + $0x8] sm:$0xff] %vm511_vm4, %v510_v27  ;;  %v516_v28 = vpack.c.bf16 %v510_v27, %v509_v23 }
 0x1a7   : > { %791 = vmatmul.mubr.msk.bf16.vlgmr.msra.gmra.mxu0 %vm511_vm4, %v516_v28 }
 0x267   : > { %v567_v32 = vpop.f32.mrf.mxu0 }
 0x268   : > { %v568_v34 = vadd.f32 %v755_v31, %v567_v32 }
 0x269   : > { %v792_v33 = vpop.f32.mrf.mxu0 }
 0x26a   : > { %v574_v38 = vmax.f32 %v568_v34, 0.0 }
 0x26b   : > { %v570_v35 = vpop.f32.mrf.mxu0 }
 0x26c   : > { %v571_v36 = vadd.f32 %v755_v31, %v570_v35 }
 0x26d   : > { %v793_v37 = vpop.f32.mrf.mxu0 }
 0x26e   : > { %v575_v39 = vmax.f32 %v571_v36, 0.0 }
 0x270   : > { %v580_v40 = vpack.c.bf16 %v575_v39, %v574_v38 }
 0x272   : > { %799 = vmatmul.mubr.msk.bf16.vlgmr.msra.gmra.mxu1 %vm464_vm3, %v580_v40 }
 0x332   : > { %v637_v42 = vpop.f32.mrf.mxu1 }
 0x333   : > { %v638_v43 = vadd.f32 %v758_v41, %v637_v42 }
 0x334   : > { %v800_v44 = vpop.f32.mrf.mxu1 }
 0x335   : > { %v644_v45 = vmax.f32 %v638_v43, 0.0 }
 0x336   : > { %v640_v46 = vpop.f32.mrf.mxu1 }
 0x337   : > { %646 = vst.msk [vmem:[%s375_s27] sm:$0xff] %vm511_vm4, %v644_v45  ;;  %v641_v47 = vadd.f32 %v758_v41, %v640_v46 }
 0x338   : > { %v801_v48 = vpop.f32.mrf.mxu1 }
 0x339   : > { %v645_v49 = vmax.f32 %v641_v47, 0.0 }
 0x33b   : > { %647 = vst.msk [vmem:[%s375_s27 + $0x8] sm:$0xff] %vm511_vm4, %v645_v49 }
 0x33c PF: > { %s21_s13 = sadd.s32 1, %s823_s13  }
 0x33d   : > { %p18_p4 = scmp.ge.s32.totalorder %s21_s13, 4  }
 0x33f   :  { %20 = sbr.rel (!%p18_p4) target bundleno = 1 (0x1), region = 98 }

// kernel: _lambda_.8
= control target key start
LH: loop header
LB: loop body
LE: loop exit
PB: predicated region body
PF: predicated region fallthrough
CT: control target
= control target key end

     0   :  { %s524_s12 = smov 0   ;;  %s596_s0 = inlined_call_operand.vmem [shape: f32[32,8], index: 0, kind: input, shape index: {}]   ;;  %s597_s1 = inlined_call_operand.vmem [shape: f32[8,32], index: 1, kind: input, shape index: {}]   ;;  %s598_s2 = inlined_call_operand.vmem [shape: f32[1,32], index: 2, kind: input, shape index: {}]   ;;  %s599_s3 = inlined_call_operand.vmem [shape: s32[32,4], index: 3, kind: output, shape index: {}]  }
   0x1 LB: > { %s449_s13 = sadd.s32 4294967295, %s502_s12   ;;  %p453_p0 = scmp.ge.s32.totalorder %s502_s12, 1  ;;  %s502_s12 = sphi %s524_s12, %s13_s12  }
   0x2   : > { %p138_p1 = scmp.lt.s32.totalorder %s502_s12, 3 }
   0x4   : > { %p139_p2 = pnand %p453_p0, %p138_p1 }
   0x5   : > { %s454_s16 = sshll.u32 (!%p139_p2), %s449_s13, 1  ;;  %s461_s23 = sshll.u32 (!%p139_p2), %s449_s13, 4 }
   0x6   : > { %142 = sbr.rel (%p139_p2) target bundleno = 1353 (0x549), region = 32  ;;  %p163_p3 = scmp.lt.s32.totalorder (!%p139_p2), %s454_s16, 3 }
   0xb   : > { %v176_v0 = vld [vmem:[%s597_s1] sm:$0xff]  ;;  %s601_s16 = smov (!%p163_p3, %s454_s16), 3  ;;  %vm180_vm0 = vcmask 64512   ;;  %v283_v8 = vlaneseq  ;;  %v286_v17 = vstv %s461_s23  ;;  %vm296_vm3 = vcmask 261120  }
   0xc   : > { %467 = vmatprep.subr.mxu0 %v176_v0  ;;  %s455_s17 = sshll.u32 %s601_s16, 3  ;;  %v460_v9 = vld [vmem:[%s598_s2] ss:$0 sm:$0xff]  ;;  %vm315_vm7 = vcmask 7168   ;;  %vm340_vm12 = vcmask 15368  }
   0xd   : > { %468 = vmatpush3.msra.mxu0 %v176_v0  ;;  %s166_s20 = scalar_lea.vmem %s596_s0, %s455_s17  ;;  %v284_v11 = vshrl.u32 %v283_v8, 7  ;;  %v290_v22 = vand.u32 127, %v283_v8  ;;  %s560_s26 = scalar_lea.vmem %s599_s3, %s455_s17 }
   0xe   : > { %v174_v1 = vld [vmem:[%s166_s20] sm:$0xff]  ;;  %v175_v2 = vld [vmem:[%s166_s20 + $0x8] sm:$0xff] }
   0xf   : > { %v178_v3 = vmul.f32 %v174_v1, %v174_v1  ;;  %469 = vmatprep.mubr.msk.f32.mxu0 %vm180_vm0, %v174_v1  ;;  %v179_v4 = vmul.f32 %v175_v2, %v175_v2  ;;  %v285_v14 = vadd.s32 8, %v284_v11  ;;  %v287_v19 = vadd.s32 %v286_v17, %v284_v11 }
  0x10   : > { %470 = vmatmul.mubr.msk.f32.vlgmr.msra.gmra.mxu0 %vm180_vm0, %v175_v2  ;;  %v548_v31 = vcvt.s32.f32 %v290_v22 }
  0x11   : > { %v181_v5 = vsel %vm180_vm0, %v178_v3, 0.0  ;;  %v184_v6 = vsel %vm180_vm0, %v179_v4, 0.0  ;;  %v288_v23 = vadd.s32 %v286_v17, %v285_v14  ;;  %vm292_vm1 = vcmp.eq.s32.totalorder %v287_v19, %v290_v22 }
  0x12   : > { %182 = vadd.xlane.f32.xlu0 %v181_v5 }
  0x13   : > { %vm293_vm2 = vcmp.eq.s32.totalorder %v288_v23, %v290_v22 }
  0x16   : > { %185 = vadd.xlane.f32.xlu0 %v184_v6 }
  0x9b   : > { %v183_v7 = vpop.xlane.xlu0 %182 }
  0x9c   : > { %v274_v15 = vadd.f32 %v460_v9, %v183_v7 }
  0x9f   : > { %v186_v10 = vpop.xlane.xlu0 %185 }
  0xa0   : > { %v275_v12 = vadd.f32 %v460_v9, %v186_v10 }
  0xd0   : > { %v471_v13 = vpop.f32.mrf.mxu0 }
  0xd1   : > { %v277_v16 = vmul.f32 2.0, %v471_v13 }
  0xd2   : > { %v259_v18 = vpop.f32.mrf.mxu0 }
  0xd3   : > { %v279_v20 = vsub.f32 %v275_v12, %v277_v16  ;;  %v276_v21 = vmul.f32 2.0, %v259_v18 }
  0xd5   : > { %v278_v24 = vsub.f32 %v274_v15, %v276_v21  ;;  %v281_v25 = vmax.f32 %v279_v20, 0.0 }
  0xd7   : > { %v280_v26 = vmax.f32 %v278_v24, 0.0  ;;  %v295_v29 = vsel %vm293_vm2, 3e+38, %v281_v25 }
  0xd8   : > { %v300_v30 = vsel %vm296_vm3, %v295_v29, inf }
  0xd9   : > { %v294_v27 = vsel %vm292_vm1, 3e+38, %v280_v26  ;;  %vm365_vm1 = vcmask 23568  }
  0xda   : > { %v297_v28 = vsel %vm296_vm3, %v294_v27, inf }
  0xdb   : > { %298 = vmin.xlane.f32.xlu1 %v297_v28 }
  0xdf   : > { %301 = vmin.xlane.f32.xlu1 %v300_v30 }
 0x164   : > { %v299_v32 = vpop.xlane.xlu1 %298 }
 0x165   : > { %vm303_vm4 = vcmp.eq.f32.partialorder %v294_v27, %v299_v32 }
 0x166   : > { %v305_v33 = vsel %vm303_vm4, %v548_v31, 32.0 }
 0x167   : > { %v307_v34 = vsel %vm296_vm3, %v305_v33, inf }
 0x168   : > { %308 = vmin.xlane.f32.xlu0 %v307_v34  ;;  %v302_v35 = vpop.xlane.xlu1 %301 }
 0x169   : > { %vm304_vm5 = vcmp.eq.f32.partialorder %v295_v29, %v302_v35 }
 0x16a   : > { %v306_v36 = vsel %vm304_vm5, %v548_v31, 32.0 }
 0x16b   : > { %v310_v37 = vsel %vm296_vm3, %v306_v36, inf }
 0x16c   : > { %311 = vmin.xlane.f32.xlu1 %v310_v37 }
 0x1f1   : > { %v309_v38 = vpop.xlane.xlu0 %308 }
 0x1f2   : > { %v472_v39 = vtrunc.f32 %v309_v38  ;;  %vm318_vm6 = vcmp.eq.f32.partialorder %v548_v31, %v309_v38 }
 0x1f3   : > { %v320_v40 = vsel %vm318_vm6, 3e+38, %v294_v27  ;;  %vm390_vm6 = vcmask 31768  }
 0x1f4   : > { %v473_v41 = vcvt.f32.s32 %v472_v39  ;;  %v322_v42 = vsel %vm296_vm3, %v320_v40, inf }
 0x1f5   : > { %v312_v43 = vpop.xlane.xlu1 %311  ;;  %323 = vmin.xlane.f32.xlu0 %v322_v42 }
 0x1f6   : > { %316 = vst.msk [vmem:[%s560_s26] sm:$0xff] %vm315_vm7, %v473_v41  ;;  %v474_v44 = vtrunc.f32 %v312_v43  ;;  %vm319_vm8 = vcmp.eq.f32.partialorder %v548_v31, %v312_v43 }
 0x1f7   : > { %v321_v45 = vsel %vm319_vm8, 3e+38, %v295_v29 }
 0x1f8   : > { %v475_v46 = vcvt.f32.s32 %v474_v44  ;;  %v325_v47 = vsel %vm296_vm3, %v321_v45, inf }
 0x1f9   : > { %326 = vmin.xlane.f32.xlu1 %v325_v47 }
 0x1fa   : > { %317 = vst.msk [vmem:[%s560_s26 + $0x8] sm:$0xff] %vm315_vm7, %v475_v46 }
 0x27e   : > { %v324_v48 = vpop.xlane.xlu0 %323 }
 0x27f   : > { %vm328_vm9 = vcmp.eq.f32.partialorder %v320_v40, %v324_v48 }
 0x280   : > { %v330_v49 = vsel %vm328_vm9, %v548_v31, 32.0 }
 0x281   : > { %v332_v50 = vsel %vm296_vm3, %v330_v49, inf }
 0x282   : > { %v327_v51 = vpop.xlane.xlu1 %326  ;;  %333 = vmin.xlane.f32.xlu0 %v332_v50 }
 0x283   : > { %vm329_vm10 = vcmp.eq.f32.partialorder %v321_v45, %v327_v51 }
 0x284   : > { %v331_v52 = vsel %vm329_vm10, %v548_v31, 32.0 }
 0x285   : > { %v335_v53 = vsel %vm296_vm3, %v331_v52, inf }
 0x286   : > { %336 = vmin.xlane.f32.xlu1 %v335_v53 }
 0x30b   : > { %v334_v54 = vpop.xlane.xlu0 %333 }
 0x30c   : > { %v476_v55 = vtrunc.f32 %v334_v54  ;;  %vm343_vm11 = vcmp.eq.f32.partialorder %v548_v31, %v334_v54 }
 0x30d   : > { %v345_v56 = vsel %vm343_vm11, 3e+38, %v320_v40 }
 0x30e   : > { %v477_v57 = vcvt.f32.s32 %v476_v55  ;;  %v347_v58 = vsel %vm296_vm3, %v345_v56, inf }
 0x30f   : > { %v337_v59 = vpop.xlane.xlu1 %336  ;;  %348 = vmin.xlane.f32.xlu0 %v347_v58 }
 0x310   : > { %341 = vst.msk [vmem:[%s560_s26] sm:$0xff] %vm340_vm12, %v477_v57  ;;  %v478_v60 = vtrunc.f32 %v337_v59  ;;  %vm344_vm13 = vcmp.eq.f32.partialorder %v548_v31, %v337_v59 }
 0x311   : > { %v346_v61 = vsel %vm344_vm13, 3e+38, %v321_v45 }
 0x312   : > { %v479_v62 = vcvt.f32.s32 %v478_v60  ;;  %v350_v63 = vsel %vm296_vm3, %v346_v61, inf }
 0x313   : > { %351 = vmin.xlane.f32.xlu1 %v350_v63 }
 0x314   : > { %342 = vst.msk [vmem:[%s560_s26 + $0x8] sm:$0xff] %vm340_vm12, %v479_v62 }
 0x398   : > { %v349_v0 = vpop.xlane.xlu0 %348 }
 0x399   : > { %vm353_vm14 = vcmp.eq.f32.partialorder %v345_v56, %v349_v0 }
 0x39a   : > { %v355_v1 = vsel %vm353_vm14, %v548_v31, 32.0 }
 0x39b   : > { %v357_v2 = vsel %vm296_vm3, %v355_v1, inf }
 0x39c   : > { %v352_v3 = vpop.xlane.xlu1 %351  ;;  %358 = vmin.xlane.f32.xlu0 %v357_v2 }
 0x39d   : > { %vm354_vm15 = vcmp.eq.f32.partialorder %v346_v61, %v352_v3 }
 0x39e   : > { %v356_v4 = vsel %vm354_vm15, %v548_v31, 32.0 }
 0x39f   : > { %v360_v5 = vsel %vm296_vm3, %v356_v4, inf }
 0x3a0   : > { %361 = vmin.xlane.f32.xlu1 %v360_v5 }
 0x425   : > { %v359_v6 = vpop.xlane.xlu0 %358 }
 0x426   : > { %v480_v7 = vtrunc.f32 %v359_v6  ;;  %vm368_vm0 = vcmp.eq.f32.partialorder %v548_v31, %v359_v6 }
 0x427   : > { %v370_v8 = vsel %vm368_vm0, 3e+38, %v345_v56 }
 0x428   : > { %v481_v9 = vcvt.f32.s32 %v480_v7  ;;  %v372_v10 = vsel %vm296_vm3, %v370_v8, inf }
 0x429   : > { %v362_v11 = vpop.xlane.xlu1 %361  ;;  %373 = vmin.xlane.f32.xlu0 %v372_v10 }
 0x42a   : > { %366 = vst.msk [vmem:[%s560_s26] sm:$0xff] %vm365_vm1, %v481_v9  ;;  %v482_v12 = vtrunc.f32 %v362_v11  ;;  %vm369_vm2 = vcmp.eq.f32.partialorder %v548_v31, %v362_v11 }
 0x42b   : > { %v371_v13 = vsel %vm369_vm2, 3e+38, %v346_v61 }
 0x42c   : > { %v483_v14 = vcvt.f32.s32 %v482_v12  ;;  %v375_v15 = vsel %vm296_vm3, %v371_v13, inf }
 0x42d   : > { %376 = vmin.xlane.f32.xlu1 %v375_v15 }
 0x42e   : > { %367 = vst.msk [vmem:[%s560_s26 + $0x8] sm:$0xff] %vm365_vm1, %v483_v14 }
 0x4b2   : > { %v374_v16 = vpop.xlane.xlu0 %373 }
 0x4b3   : > { %vm378_vm4 = vcmp.eq.f32.partialorder %v370_v8, %v374_v16 }
 0x4b4   : > { %v380_v17 = vsel %vm378_vm4, %v548_v31, 32.0 }
 0x4b5   : > { %v382_v18 = vsel %vm296_vm3, %v380_v17, inf }
 0x4b6   : > { %v377_v19 = vpop.xlane.xlu1 %376  ;;  %383 = vmin.xlane.f32.xlu0 %v382_v18 }
 0x4b7   : > { %vm379_vm5 = vcmp.eq.f32.partialorder %v371_v13, %v377_v19 }
 0x4b8   : > { %v381_v20 = vsel %vm379_vm5, %v548_v31, 32.0 }
 0x4b9   : > { %v385_v21 = vsel %vm296_vm3, %v381_v20, inf }
 0x4ba   : > { %386 = vmin.xlane.f32.xlu1 %v385_v21 }
 0x53f   : > { %v384_v22 = vpop.xlane.xlu0 %383 }
 0x540   : > { %v484_v23 = vtrunc.f32 %v384_v22 }
 0x542   : > { %v485_v24 = vcvt.f32.s32 %v484_v23 }
 0x543   : > { %v387_v25 = vpop.xlane.xlu1 %386 }
 0x544   : > { %391 = vst.msk [vmem:[%s560_s26] sm:$0xff] %vm390_vm6, %v485_v24  ;;  %v486_v26 = vtrunc.f32 %v387_v25 }
 0x546   : > { %v487_v27 = vcvt.f32.s32 %v486_v26 }
 0x548   : > { %392 = vst.msk [vmem:[%s560_s26 + $0x8] sm:$0xff] %vm390_vm6, %v487_v27 }
 0x549 PF: > { %s13_s12 = sadd.s32 1, %s502_s12  }
 0x54a   : > { %p10_p4 = scmp.ge.s32.totalorder %s13_s12, 4  }
 0x54c   :  { %12 = sbr.rel (!%p10_p4) target bundleno = 1 (0x1), region = 62 }

// kernel: _lambda_.10
= control target key start
LH: loop header
LB: loop body
LE: loop exit
PB: predicated region body
PF: predicated region fallthrough
CT: control target
= control target key end

     0   :  { %s2843_s0 = inlined_call_operand.vmem [shape: f32[32,16], index: 0, kind: input, shape index: {}]   ;;  %s2844_s1 = inlined_call_operand.vmem [shape: f32[32,64], index: 1, kind: input, shape index: {}]   ;;  %s2845_s2 = inlined_call_operand.vmem [shape: f32[32,32], index: 2, kind: input, shape index: {}]   ;;  %s2846_s3 = inlined_call_operand.vmem [shape: bf16[16,32], index: 3, kind: input, shape index: {}]   ;;  %s2847_s4 = inlined_call_operand.vmem [shape: bf16[16,32], index: 4, kind: input, shape index: {}]   ;;  %s2848_s5 = inlined_call_operand.vmem [shape: bf16[8,32], index: 5, kind: input, shape index: {}]   ;;  %s2849_s6 = inlined_call_operand.vmem [shape: f32[1,32], index: 6, kind: input, shape index: {}]   ;;  %s2850_s7 = inlined_call_operand.vmem [shape: bf16[32,8], index: 7, kind: input, shape index: {}]   ;;  %s2851_s8 = inlined_call_operand.vmem [shape: f32[1,8], index: 8, kind: input, shape index: {}]   ;;  %s2852_s9 = inlined_call_operand.vmem [shape: bf16[32,1], index: 9, kind: input, shape index: {}]   ;;  %s2853_s10 = inlined_call_operand.<no memory space> [shape: f32[1,1], index: 10, kind: input, shape index: {}]   ;;  %s2854_s11 = inlined_call_operand.vmem [shape: bf16[16,32], index: 11, kind: input, shape index: {}]   ;;  %s2855_s12 = inlined_call_operand.vmem [shape: bf16[8,32], index: 12, kind: input, shape index: {}]   ;;  %s2856_s13 = inlined_call_operand.vmem [shape: f32[1,32], index: 13, kind: input, shape index: {}]   ;;  %s2857_s14 = inlined_call_operand.vmem [shape: bf16[32,16], index: 14, kind: input, shape index: {}]   ;;  %s2858_s15 = inlined_call_operand.vmem [shape: f32[1,16], index: 15, kind: input, shape index: {}]   ;;  %s2859_s16 = inlined_call_operand.vmem [shape: f32[32,16], index: 16, kind: output, shape index: {0}]   ;;  %s2860_s17 = inlined_call_operand.hbm [shape: f32[32,32], index: 17, kind: output, shape index: {1}]  }
   0x1   :  { %2865 = sst [smem:[#allocation9_spill]] %s2843_s0  ;;  %v23_v0 = vstv %s2853_s10 }
   0x2   :  { %2866 = sst [smem:[#allocation10_spill]] %s2844_s1  ;;  %24 = vst [vmem:[#allocation2] sm:$0x1] %v23_v0 }
   0x3   :  { %2867 = sst [smem:[#allocation11_spill]] %s2846_s3 }
   0x4   :  { %2868 = sst [smem:[#allocation12_spill]] %s2847_s4 }
   0x5   :  { %25 = vsyncpa [#allocation4], 0 }
   0x6   :  { %27 = vsyncpa [#allocation4 + $0x1], 0  ;;  %s2425_s26 = smov 0   ;;  %s2427_s27 = smov 0  }
   0x7   :  { %s2429_s28 = smov 0   ;;  %s2431_s29 = smov 0  }
   0x8 LB: > { %2869 = sst [smem:[#allocation6_spill]] %s2313_s28  ;;  %s2446_s10 = sadd.s32 4294967295, %s2317_s29   ;;  %s2317_s29 = sphi %s2431_s29, %s2879_s29   ;;  %s2313_s28 = sphi %s2429_s28, %s2881_s28   ;;  %s2309_s27 = sphi %s2427_s27, %s2883_s27   ;;  %s2305_s26 = sphi %s2425_s26, %s2882_s26  }
   0x9   : > { %s1935_s0 = sadd.s32 4294967294, %s2317_s29   ;;  %s2450_s30 = sadd.s32 1, %s2317_s29  }
   0xa   : > { %2870 = sst [smem:[#allocation7_spill]] %s2450_s30  ;;  %s417_s18 = sadd.s32 1, %s2313_s28 }
   0xb   : > { %s414_s19 = ssub.s32 %s2317_s29, %s2450_s30  ;;  %p427_p0 = scmp.ne.s32.totalorder %s2313_s28, %s2309_s27 }
   0xc   : > { %p415_p1 = scmp.eq.s32.totalorder %s414_s19, 0  ;;  %p428_p2 = scmp.eq.s32.totalorder %s2446_s10, 1 }
   0xd   : > { %p433_p3 = scmp.ne.s32.totalorder %s2309_s27, %s2305_s26  ;;  %p434_p4 = scmp.eq.s32.totalorder %s1935_s0, 1 }
   0xe   : > { %s2461_s1 = scalar_select %p415_p1, %s2313_s28, %s417_s18  }
   0xf   : > { %p2463_p5 = por %p428_p2, %p427_p0  ;;  %p2467_p6 = por %p434_p4, %p433_p3 }
  0x10   : > { %2871 = sst [smem:[#allocation8_spill]] %s2461_s1  ;;  %p1938_p7 = scmp.ge.s32.totalorder %s2317_s29, 1 }
  0x11   : > { %p518_p8 = scmp.lt.s32.totalorder %s2317_s29, 3 }
  0x13   : > { %p519_p9 = pnand %p1938_p7, %p518_p8 }
  0x14   : > { %s2874_s4 = sld [smem:[#allocation12_spill]] (!%p519_p9)  ;;  %s1940_s0 = sshll.u32 (!%p519_p9), %s2446_s10, 1 }
  0x15   : > { %522 = sbr.rel (%p519_p9) target bundleno = 1672 (0x688), region = 84  ;;  %s2875_s3 = sld [smem:[#allocation11_spill]] (!%p519_p9) }
  0x16   : > { %p586_p10 = scmp.lt.s32.totalorder (!%p519_p9), %s1940_s0, 3  ;;  %s2876_s25 = sld [smem:[#allocation9_spill]] (!%p519_p9) }
  0x17   : > { %s2877_s28 = sld [smem:[#allocation10_spill]] (!%p519_p9)  ;;  %s582_s1 = sand.u32 (!%p519_p9), 1, %s2309_s27  }
  0x18   : > { %s2329_s23 = smov (!%p519_p9), 24  }
  0x1a   : > { %v2228_v1 = vld [vmem:[%s2874_s4] sm:$0xff]   ;;  %v2319_v2 = vmov 0.0   ;;  %vm2320_vm0 = vmmov 0   ;;  %s2885_s0 = smov (!%p586_p10, %s1940_s0), 3  ;;  %vm737_vm1 = vcmask 1043456   ;;  %vm633_vm2 = vcmask 130048  }
  0x1b   : > { %2037 = vmatprep.subr.bf16.mxu0 %v2319_v2  ;;  %2043 = vmatprep.subr.bf16.mxu1 %v2319_v2  ;;  %v2481_v3 = vld [vmem:[%s2875_s3] sm:$0xff]   ;;  %s2494_s22 = sshll.u32 %s2885_s0, 3  ;;  %vm733_vm3 = vcmask 64512   ;;  %s2322_s4 = smov 120   ;;  %v2536_v15 = vld [vmem:[%s2850_s7 + $0x8] sm:$0xff]   ;;  %vm810_vm4 = vcmask 261120  }
  0x1c   : > { %2038 = vmatpush3.bf16.msra.mxu0 %v2228_v1  ;;  %2039 = vmatprep.mubr.msk.bf16.mxu0 %vm2320_vm0, %v2319_v2  ;;  %v731_v4 = vld [vmem:[%s2848_s5] sm:$0xf]  ;;  %s589_s3 = scalar_lea.vmem %s2876_s25, %s2494_s22  ;;  %s601_s19 = scalar_lea.vmem %s2845_s2, %s2494_s22  ;;  %v2541_v16 = vld [vmem:[%s2852_s9 + $0x8] sm:$0xff]   ;;  %vm1776_vm5 = vcmask 130112   ;;  %vm1787_vm6 = vcmask 195712   ;;  %vm1798_vm7 = vcmask 261312  }
  0x1d   : > { %2044 = vmatpush3.bf16.msra.mxu1 %v2481_v3  ;;  %2045 = vmatprep.mubr.msk.bf16.mxu1 %vm2320_vm0, %v2319_v2  ;;  %s595_s30 = scalar_lea.vmem %s2877_s28, %s2494_s22  ;;  %v611_v5 = vld [vmem:[%s589_s3] sm:$0xff]  ;;  %v612_v6 = vld [vmem:[%s589_s3 + $0x8] sm:$0xff]  ;;  %v2507_v10 = vsel %vm737_vm1, %v731_v4, 0  ;;  %s2321_s3 = smov 112  }
  0x1e   : > { %2049 = vmatprep.subr.bf16.mxu0 %v2319_v2  ;;  %2055 = vmatprep.subr.bf16.mxu1 %v2319_v2  ;;  %v613_v7 = vld [vmem:[%s595_s30] sm:$0xff]  ;;  %v2504_v8 = vpack.c.bf16 %v612_v6, %v611_v5  ;;  %v614_v9 = vld [vmem:[%s595_s30 + $0x8] sm:$0xff]  ;;  %s2325_s30 = smov 80   ;;  %s1939_s25 = sshll.u32 %s582_s1, 4 }
  0x1f   : > { %v2513_v11 = vpack.c.bf16 %v614_v9, %v613_v7  ;;  %v615_v12 = vld [vmem:[%s601_s19] sm:$0xff]  ;;  %v616_v13 = vld [vmem:[%s601_s19 + $0x8] sm:$0xff]  ;;  %s2323_s19 = smov 96   ;;  %s2610_s0 = scalar_lea.vmem [#allocation3], %s1939_s25 }
  0x20   : > { %2040 = vmatmul.mubr.msk.bf16.vlgmr.msra.gmra.mxu0 %vm633_vm2, %v2504_v8  ;;  %v2526_v14 = vpack.c.bf16 %v616_v13, %v615_v12  ;;  %v2550_v17 = vld [vmem:[%s2850_s7] sm:$0xff]   ;;  %s1824_s18 = sshll.u32 %s2610_s0, 4  ;;  %s2789_s18 = int_to_ptr.vmem [resolvable:$true] %s1824_s18 }
  0x21   : > { %2046 = vmatmul.mubr.msk.bf16.vlgmr.msra.gmra.mxu1 %vm633_vm2, %v2513_v11  ;;  %2050 = vmatpush3.bf16.msra.mxu0 %v2507_v10  ;;  %v2555_v18 = vld [vmem:[%s2852_s9] sm:$0xff]  }
  0x22   : > { %2051 = vmatprep.mubr.msk.bf16.mxu0 %vm2320_vm0, %v2319_v2  ;;  %924 = vrot.lane.b32.xlu0 %v2513_v11, %s2321_s3  ;;  %v1948_v21 = vld [vmem:[%s2849_s6] ss:$0 sm:$0xff] }
  0x23   : > { %2063 = vmatprep.subr.bf16.mxu0 %v2319_v2  ;;  %2059 = vmatprep.mubr.msk.bf16.mxu1 %vm2320_vm0, %v2319_v2  ;;  %v2602_v43 = vld [vmem:[%s2851_s8] ss:$0 sm:$0xff] }
  0x24   : > { %2056 = vmatpush3.bf16.msra.mxu1 %v2536_v15  ;;  %1111 = vrot.lane.b32.xlu1 %v2513_v11, %s2323_s19  ;;  %v2650_v13 = vld [vmem:[#allocation2] ss:$0 sm:$0xff]  ;;  %s2793_s19 = scalar_lea.sflag [#allocation4], %s582_s1 }
  0x25   : > { %2057 = vmatprep.subr.bf16.mxu1 %v2319_v2 }
  0x26   : > { %971 = vrot.lane.b32.xlu0 %v2526_v14, %s2322_s4  ;;  %s2257_s4 = scalar_lea.vmem %s2789_s18, 256 }
  0x27   : > { %p2258_p11 = scmp.ne.s32.totalorder %s2789_s18, %s2257_s4 }
  0x28   : > { %2052 = vmatmul.mubr.msk.bf16.vlgmr.msra.gmra.mxu0 %vm733_vm3, %v2526_v14  ;;  %2058 = vmatpush3.bf16.msra.mxu1 %v2550_v17 }
  0x29   : > { %2067 = vmatprep.mubr.msk.bf16.mxu0 %vm2320_vm0, %v2319_v2  ;;  %2064 = vmatpush3.bf16.msra.mxu0 %v2541_v16  ;;  %p2259_p12 = pnand %p2258_p11, %p2463_p5 }
  0x2a   : > { %2065 = vmatprep.subr.bf16.mxu0 %v2319_v2  ;;  %2071 = vmatprep.subr.bf16.mxu1 %v2319_v2 }
  0x2b   : > { %1157 = vrot.lane.b32.xlu1 %v2526_v14, %s2321_s3  ;;  %s2324_s3 = smov 104   ;;  %1297 = vrot.lane.b32.xlu0 %v2513_v11, %s2325_s30  ;;  %s2328_s30 = smov 16  }
  0x2c   : > { %p2260_p13 = pneg %p2259_p12 }
  0x2d   : > { %2066 = vmatpush3.bf16.msra.mxu0 %v2555_v18 }
  0x2e   : > { %2077 = vmatprep.subr.bf16.mxu0 %v2319_v2 }
  0x2f   : > { %1343 = vrot.lane.b32.xlu1 %v2526_v14, %s2324_s3  ;;  %s2864_s3 = smov 8  }
  0x94   : > { %v925_v41 = vpop.permute.xlu0 %924 }
  0x96   : > { %v1112_v11 = vpop.permute.xlu1 %1111 }
  0x98   : > { %v972_v42 = vpop.permute.xlu0 %971 }
  0x9d   : > { %v1158_v12 = vpop.permute.xlu1 %1157 }
  0xe0   : > { %v671_v19 = vpop.f32.mrf.mxu0 }
  0xe1   : > { %v724_v20 = vpop.f32.mrf.mxu1  ;;  %v2566_v25 = vadd.f32 %v1948_v21, %v671_v19 }
  0xe2   : > { %v2041_v22 = vpop.f32.mrf.mxu0 }
  0xe3   : > { %v2047_v23 = vpop.f32.mrf.mxu1  ;;  %v725_v31 = vadd.f32 %v724_v20, %v2566_v25 }
  0xe4   : > { %v674_v24 = vpop.f32.mrf.mxu0 }
  0xe5   : > { %v727_v26 = vpop.f32.mrf.mxu1  ;;  %v2568_v28 = vadd.f32 %v1948_v21, %v674_v24 }
  0xe6   : > { %v2042_v27 = vpop.f32.mrf.mxu0 }
  0xe7   : > { %v2048_v29 = vpop.f32.mrf.mxu1  ;;  %v728_v33 = vadd.f32 %v727_v26, %v2568_v28 }
  0xe8   : > { %v775_v30 = vpop.f32.mrf.mxu0 }
  0xe9   : > { %v782_v34 = vadd.f32 %v775_v30, %v725_v31 }
  0xea   : > { %v2053_v32 = vpop.f32.mrf.mxu0 }
  0xeb   : > { %v784_v38 = vmax.f32 %v782_v34, 0.0 }
  0xec   : > { %v778_v35 = vpop.f32.mrf.mxu0 }
  0xed   : > { %v783_v36 = vadd.f32 %v778_v35, %v728_v33 }
  0xee   : > { %v2054_v37 = vpop.f32.mrf.mxu0 }
  0xef   : > { %v785_v39 = vmax.f32 %v783_v36, 0.0 }
  0xf1   : > { %v790_v40 = vpack.c.bf16 %v785_v39, %v784_v38 }
  0xf3   : > { %2060 = vmatmul.mubr.msk.bf16.vlgmr.msra.gmra.mxu1 %vm810_vm4, %v790_v40  ;;  %2068 = vmatmul.mubr.msk.bf16.vlgmr.msra.gmra.mxu0 %vm810_vm4, %v790_v40 }
  0xf4   : > { %2072 = vmatpush3.bf16.msra.mxu1 %v2481_v3  ;;  %2078 = vmatpush3.bf16.msra.mxu0 %v2507_v10 }
  0xf5   : > { %2073 = vmatprep.mubr.msk.bf16.mxu1 %vm2320_vm0, %v2319_v2  ;;  %2079 = vmatprep.mubr.msk.bf16.mxu0 %vm2320_vm0, %v2319_v2 }
  0xf6   : > { %2083 = vmatprep.subr.bf16.mxu1 %v2319_v2  ;;  %2091 = vmatprep.subr.bf16.mxu0 %v2319_v2 }
  0xfb   : > { %2074 = vmatmul.mubr.msk.bf16.vlgmr.msra.gmra.mxu1 %vm633_vm2, %v925_v41  ;;  %2080 = vmatmul.mubr.msk.bf16.vlgmr.msra.gmra.mxu0 %vm733_vm3, %v972_v42 }
  0xfc   : > { %2084 = vmatpush3.bf16.msra.mxu1 %v2536_v15  ;;  %2092 = vmatpush3.bf16.msra.mxu0 %v2541_v16 }
  0xfd   : > { %2085 = vmatprep.subr.bf16.mxu1 %v2319_v2  ;;  %2093 = vmatprep.subr.bf16.mxu0 %v2319_v2 }
  0xfe   : > { %2087 = vmatprep.mubr.msk.bf16.mxu1 %vm2320_vm0, %v2319_v2  ;;  %2095 = vmatprep.mubr.msk.bf16.mxu0 %vm2320_vm0, %v2319_v2 }
 0x100   : > { %2086 = vmatpush3.bf16.msra.mxu1 %v2550_v17  ;;  %2094 = vmatpush3.bf16.msra.mxu0 %v2555_v18 }
 0x101   : > { %2099 = vmatprep.subr.bf16.mxu1 %v2319_v2  ;;  %2105 = vmatprep.subr.bf16.mxu0 %v2319_v2 }
 0x1b3   : > { %v848_v44 = vpop.f32.mrf.mxu1  ;;  %v914_v45 = vpop.f32.mrf.mxu0 }
 0x1b4   : > { %v2607_v46 = vadd.f32 %v2602_v43, %v848_v44  ;;  %v2653_v14 = vadd.f32 %v2650_v13, %v914_v45 }
 0x1b5   : > { %v2061_v47 = vpop.f32.mrf.mxu1  ;;  %v2069_v48 = vpop.f32.mrf.mxu0 }
 0x1b6   : > { %v855_v49 = vmax.f32 %v2607_v46, 0.0  ;;  %v921_v24 = vmax.f32 %v2653_v14, 0.0 }
 0x1b7   : > { %v851_v50 = vpop.f32.mrf.mxu1  ;;  %v917_v51 = vpop.f32.mrf.mxu0 }
 0x1b8   : > { %1766 = vst.msk [vmem:[%s2610_s0] sm:$0xff] %vm733_vm3, %v855_v49  ;;  %v2617_v52 = vadd.f32 %v2602_v43, %v851_v50  ;;  %v2662_v26 = vadd.f32 %v2650_v13, %v917_v51 }
 0x1b9   : > { %v2062_v53 = vpop.f32.mrf.mxu1  ;;  %v2070_v54 = vpop.f32.mrf.mxu0 }
 0x1ba   : > { %v856_v55 = vmax.f32 %v2617_v52, 0.0  ;;  %v922_v35 = vmax.f32 %v2662_v26, 0.0 }
 0x1bb   : > { %v963_v56 = vpop.f32.mrf.mxu1  ;;  %v1010_v57 = vpop.f32.mrf.mxu0 }
 0x1bc   : > { %1767 = vst.msk [vmem:[%s2610_s0 + $0x8] sm:$0xff] %vm733_vm3, %v856_v55  ;;  %v964_v58 = vadd.f32 %v963_v56, %v2566_v25 }
 0x1bd   : > { %v2075_v59 = vpop.f32.mrf.mxu1  ;;  %v2081_v60 = vpop.f32.mrf.mxu0 }
 0x1be   : > { %v1017_v63 = vadd.f32 %v1010_v57, %v964_v58  ;;  %v1344_v58 = vpop.permute.xlu1 %1343  ;;  %v1298_v59 = vpop.permute.xlu0 %1297 }
 0x1bf   : > { %v966_v61 = vpop.f32.mrf.mxu1  ;;  %v1013_v62 = vpop.f32.mrf.mxu0 }
 0x1c0   : > { %v967_v0 = vadd.f32 %v966_v61, %v2568_v28  ;;  %v1019_v6 = vmax.f32 %v1017_v63, 0.0 }
 0x1c1   : > { %v2076_v1 = vpop.f32.mrf.mxu1  ;;  %v2082_v4 = vpop.f32.mrf.mxu0 }
 0x1c2   : > { %v1018_v5 = vadd.f32 %v1013_v62, %v967_v0 }
 0x1c4   : > { %v1020_v7 = vmax.f32 %v1018_v5, 0.0 }
 0x1c6   : > { %v1021_v9 = vpack.c.bf16 %v1020_v7, %v1019_v6 }
 0x1c8   : > { %2088 = vmatmul.mubr.msk.bf16.vlgmr.msra.gmra.mxu1 %vm810_vm4, %v1021_v9  ;;  %2096 = vmatmul.mubr.msk.bf16.vlgmr.msra.gmra.mxu0 %vm810_vm4, %v1021_v9 }
 0x1c9   : > { %2100 = vmatpush3.bf16.msra.mxu1 %v2481_v3  ;;  %2106 = vmatpush3.bf16.msra.mxu0 %v2507_v10 }
 0x1ca   : > { %2101 = vmatprep.mubr.msk.bf16.mxu1 %vm2320_vm0, %v2319_v2  ;;  %2107 = vmatprep.mubr.msk.bf16.mxu0 %vm2320_vm0, %v2319_v2 }
 0x1cb   : > { %2111 = vmatprep.subr.bf16.mxu1 %v2319_v2  ;;  %2119 = vmatprep.subr.bf16.mxu0 %v2319_v2 }
 0x1d0   : > { %2102 = vmatmul.mubr.msk.bf16.vlgmr.msra.gmra.mxu1 %vm633_vm2, %v1112_v11  ;;  %2108 = vmatmul.mubr.msk.bf16.vlgmr.msra.gmra.mxu0 %vm733_vm3, %v1158_v12 }
 0x1d1   : > { %2112 = vmatpush3.bf16.msra.mxu1 %v2536_v15  ;;  %2120 = vmatpush3.bf16.msra.mxu0 %v2541_v16 }
 0x1d2   : > { %2113 = vmatprep.subr.bf16.mxu1 %v2319_v2  ;;  %2121 = vmatprep.subr.bf16.mxu0 %v2319_v2 }
 0x1d3   : > { %2115 = vmatprep.mubr.msk.bf16.mxu1 %vm2320_vm0, %v2319_v2  ;;  %2123 = vmatprep.mubr.msk.bf16.mxu0 %vm2320_vm0, %v2319_v2 }
 0x1d5   : > { %2114 = vmatpush3.bf16.msra.mxu1 %v2550_v17  ;;  %2122 = vmatpush3.bf16.msra.mxu0 %v2555_v18 }
 0x1d6   : > { %2127 = vmatprep.subr.bf16.mxu1 %v2319_v2  ;;  %2133 = vmatprep.subr.bf16.mxu0 %v2319_v2 }
 0x288   : > { %v2655_v19 = vpop.f32.mrf.mxu1  ;;  %v1102_v20 = vpop.f32.mrf.mxu0 }
 0x289   : > { %v2658_v21 = vadd.f32 %v2650_v13, %v1102_v20 }
 0x28a   : > { %v2089_v22 = vpop.f32.mrf.mxu1  ;;  %v2097_v23 = vpop.f32.mrf.mxu0 }
 0x28b   : > { %v1109_v27 = vmax.f32 %v2658_v21, 0.0 }
 0x28c   : > { %v2665_v29 = vpop.f32.mrf.mxu1  ;;  %v1105_v30 = vpop.f32.mrf.mxu0 }
 0x28d   : > { %v1483_v31 = vmax.f32 %v921_v24, %v1109_v27  ;;  %v2672_v32 = vadd.f32 %v2650_v13, %v1105_v30 }
 0x28e   : > { %v2090_v33 = vpop.f32.mrf.mxu1  ;;  %v2098_v34 = vpop.f32.mrf.mxu0 }
 0x28f   : > { %v1110_v36 = vmax.f32 %v2672_v32, 0.0 }
 0x290   : > { %v1150_v37 = vpop.f32.mrf.mxu1  ;;  %v1196_v38 = vpop.f32.mrf.mxu0 }
 0x291   : > { %v1484_v39 = vmax.f32 %v922_v35, %v1110_v36  ;;  %v1151_v40 = vadd.f32 %v1150_v37, %v2566_v25 }
 0x292   : > { %v2103_v41 = vpop.f32.mrf.mxu1  ;;  %v2109_v42 = vpop.f32.mrf.mxu0 }
 0x293   : > { %v1203_v47 = vadd.f32 %v1196_v38, %v1151_v40 }
 0x294   : > { %v1153_v44 = vpop.f32.mrf.mxu1  ;;  %v1199_v45 = vpop.f32.mrf.mxu0 }
 0x295   : > { %v1154_v48 = vadd.f32 %v1153_v44, %v2568_v28  ;;  %v1205_v54 = vmax.f32 %v1203_v47, 0.0 }
 0x296   : > { %v2104_v50 = vpop.f32.mrf.mxu1  ;;  %v2110_v51 = vpop.f32.mrf.mxu0 }
 0x297   : > { %v1204_v53 = vadd.f32 %v1199_v45, %v1154_v48 }
 0x299   : > { %v1206_v56 = vmax.f32 %v1204_v53, 0.0 }
 0x29b   : > { %v1207_v57 = vpack.c.bf16 %v1206_v56, %v1205_v54 }
 0x29d   : > { %2116 = vmatmul.mubr.msk.bf16.vlgmr.msra.gmra.mxu1 %vm810_vm4, %v1207_v57  ;;  %2124 = vmatmul.mubr.msk.bf16.vlgmr.msra.gmra.mxu0 %vm810_vm4, %v1207_v57 }
 0x29e   : > { %2128 = vmatpush3.bf16.msra.mxu1 %v2481_v3  ;;  %2134 = vmatpush3.bf16.msra.mxu0 %v2507_v10 }
 0x29f   : > { %2129 = vmatprep.mubr.msk.bf16.mxu1 %vm2320_vm0, %v2319_v2  ;;  %2135 = vmatprep.mubr.msk.bf16.mxu0 %vm2320_vm0, %v2319_v2 }
 0x2a0   : > { %2147 = vmatprep.subr.bf16.mxu0 %v2319_v2  ;;  %2139 = vmatprep.subr.bf16.mxu1 %v2319_v2 }
 0x2a5   : > { %2130 = vmatmul.mubr.msk.bf16.vlgmr.msra.gmra.mxu1 %vm633_vm2, %v1298_v59  ;;  %2136 = vmatmul.mubr.msk.bf16.vlgmr.msra.gmra.mxu0 %vm733_vm3, %v1344_v58 }
 0x2a6   : > { %2148 = vmatpush3.bf16.msra.mxu0 %v2541_v16  ;;  %2140 = vmatpush3.bf16.msra.mxu1 %v2536_v15 }
 0x2a7   : > { %2149 = vmatprep.subr.bf16.mxu0 %v2319_v2  ;;  %2141 = vmatprep.subr.bf16.mxu1 %v2319_v2 }
 0x2a8   : > { %2143 = vmatprep.mubr.msk.bf16.mxu1 %vm2320_vm0, %v2319_v2  ;;  %2151 = vmatprep.mubr.msk.bf16.mxu0 %vm2320_vm0, %v2319_v2 }
 0x2aa   : > { %2150 = vmatpush3.bf16.msra.mxu0 %v2555_v18  ;;  %2142 = vmatpush3.bf16.msra.mxu1 %v2550_v17 }
 0x2ab   : > { %2161 = vmatprep.subr.bf16.mxu0 %v2319_v2  ;;  %2155 = vmatprep.subr.bf16.mxu1 %v2319_v2 }
 0x35d   : > { %v2706_v3 = vpop.f32.mrf.mxu1  ;;  %v1288_v10 = vpop.f32.mrf.mxu0 }
 0x35e   : > { %v1289_v15 = vadd.f32 %v2650_v13, %v1288_v10 }
 0x35f   : > { %v2117_v16 = vpop.f32.mrf.mxu1  ;;  %v2125_v60 = vpop.f32.mrf.mxu0 }
 0x360   : > { %v1295_v61 = vmax.f32 %v1289_v15, 0.0 }
 0x361   : > { %v2709_v62 = vpop.f32.mrf.mxu1  ;;  %v1291_v63 = vpop.f32.mrf.mxu0 }
 0x362   : > { %v1485_v0 = vmax.f32 %v1483_v31, %v1295_v61  ;;  %v1292_v18 = vadd.f32 %v2650_v13, %v1291_v63 }
 0x363   : > { %v2118_v1 = vpop.f32.mrf.mxu1  ;;  %v2126_v17 = vpop.f32.mrf.mxu0 }
 0x364   : > { %v1296_v4 = vmax.f32 %v1292_v18, 0.0 }
 0x365   : > { %v1336_v5 = vpop.f32.mrf.mxu1  ;;  %v1382_v6 = vpop.f32.mrf.mxu0 }
 0x366   : > { %v1486_v7 = vmax.f32 %v1484_v39, %v1296_v4  ;;  %v1337_v9 = vadd.f32 %v1336_v5, %v2566_v25  ;;  %v2326_v25 = vmov 0  }
 0x367   : > { %v2131_v11 = vpop.f32.mrf.mxu1  ;;  %v2137_v12 = vpop.f32.mrf.mxu0  ;;  %2227 = vset.pattern.permute.xlu1 %v2326_v25  ;;  %2226 = vset.pattern.permute.xlu0 %v2326_v25 }
 0x368   : > { %v1389_v23 = vadd.f32 %v1382_v6, %v1337_v9 }
 0x369   : > { %v1339_v20 = vpop.f32.mrf.mxu1  ;;  %v1385_v22 = vpop.f32.mrf.mxu0 }
 0x36a   : > { %v1340_v30 = vadd.f32 %v1339_v20, %v2568_v28  ;;  %v1391_v37 = vmax.f32 %v1389_v23, 0.0 }
 0x36b   : > { %v2132_v33 = vpop.f32.mrf.mxu1  ;;  %v2138_v34 = vpop.f32.mrf.mxu0 }
 0x36c   : > { %v1390_v31 = vadd.f32 %v1385_v22, %v1340_v30 }
 0x36e   : > { %v1392_v38 = vmax.f32 %v1390_v31, 0.0 }
 0x370   : > { %v1393_v40 = vpack.c.bf16 %v1392_v38, %v1391_v37 }
 0x372   : > { %2144 = vmatmul.mubr.msk.bf16.vlgmr.msra.gmra.mxu1 %vm810_vm4, %v1393_v40  ;;  %2152 = vmatmul.mubr.msk.bf16.vlgmr.msra.gmra.mxu0 %vm810_vm4, %v1393_v40 }
 0x373   : > { %2163 = vmatprep.mubr.msk.bf16.mxu0 %vm2320_vm0, %v2319_v2  ;;  %2157 = vmatprep.mubr.msk.bf16.mxu1 %vm2320_vm0, %v2319_v2 }
 0x432   : > { %v2720_v28 = vpop.f32.mrf.mxu1  ;;  %v1474_v39 = vpop.f32.mrf.mxu0 }
 0x433   : > { %v1475_v41 = vadd.f32 %v2650_v13, %v1474_v39 }
 0x434   : > { %v2145_v42 = vpop.f32.mrf.mxu1  ;;  %v2153_v44 = vpop.f32.mrf.mxu0 }
 0x435   : > { %v1481_v45 = vmax.f32 %v1475_v41, 0.0  ;;  %v2234_v41 = vld [vmem:[%s2854_s11] sm:$0xff]  }
 0x436   : > { %v2723_v47 = vpop.f32.mrf.mxu1  ;;  %v1477_v48 = vpop.f32.mrf.mxu0  ;;  %v1587_v42 = vld [vmem:[%s2855_s12] sm:$0xf]  ;;  %2162 = vmatpush3.bf16.msra.mxu0 %v2234_v41 }
 0x437   : > { %v1487_v50 = vmax.f32 %v1485_v0, %v1481_v45  ;;  %v1478_v51 = vadd.f32 %v2650_v13, %v1477_v48  ;;  %v1593_v44 = vsel %vm737_vm1, %v1587_v42, 0  ;;  %v1063_v48 = vadd.f32 %v2602_v43, %v2665_v29 }
 0x438   : > { %v2146_v53 = vpop.f32.mrf.mxu1  ;;  %v2154_v54 = vpop.f32.mrf.mxu0  ;;  %2156 = vmatpush3.bf16.msra.mxu1 %v1593_v44  ;;  %v1432_v29 = vadd.f32 %v2602_v43, %v2720_v28 }
 0x439   : > { %v1489_v56 = vsub.f32 %v921_v24, %v1487_v50  ;;  %v1495_v57 = vsub.f32 %v1109_v27, %v1487_v50  ;;  %v1501_v58 = vsub.f32 %v1295_v61, %v1487_v50  ;;  %v1507_v59 = vsub.f32 %v1481_v45, %v1487_v50  ;;  %2167 = vmatprep.subr.bf16.mxu1 %v2319_v2 }
 0x43a   : > { %v1482_v10 = vmax.f32 %v1478_v51, 0.0  ;;  %v1060_v45 = vadd.f32 %v2602_v43, %v2655_v19  ;;  %2164 = vmatmul.mubr.msk.bf16.vlgmr.msra.gmra.mxu0 %vm633_vm2, %v2504_v8  ;;  %v1246_v51 = vadd.f32 %v2602_v43, %v2706_v3  ;;  %v1067_v53 = vmax.f32 %v1063_v48, 0.0 }
 0x43b   : > { %v1491_v15 = vmul.f32 1.442695, %v1489_v56  ;;  %v1497_v16 = vmul.f32 1.442695, %v1495_v57  ;;  %v1503_v60 = vmul.f32 1.442695, %v1501_v58  ;;  %v1249_v54 = vadd.f32 %v2602_v43, %v2709_v62 }
 0x43c   : > { %v1488_v63 = vmax.f32 %v1486_v7, %v1482_v10  ;;  %v1509_v18 = vmul.f32 1.442695, %v1507_v59  ;;  %v1066_v50 = vmax.f32 %v1060_v45, 0.0  ;;  %v1252_v19 = vmax.f32 %v1246_v51, 0.0 }
 0x43d   : > { %2237 = vpow2.f32 %v1491_v15  ;;  %v1253_v8 = vmax.f32 %v1249_v54, 0.0  ;;  %v1435_v56 = vadd.f32 %v2602_v43, %v2723_v47  ;;  %v1438_v3 = vmax.f32 %v1432_v29, 0.0 }
 0x43e   : > { %2239 = vpow2.f32 %v1497_v16  ;;  %v1490_v13 = vsub.f32 %v922_v35, %v1488_v63  ;;  %v1496_v14 = vsub.f32 %v1110_v36, %v1488_v63  ;;  %v1502_v24 = vsub.f32 %v1296_v4, %v1488_v63 }
 0x43f   : > { %v1508_v0 = vsub.f32 %v1482_v10, %v1488_v63  ;;  %2241 = vpow2.f32 %v1503_v60  ;;  %v1439_v57 = vmax.f32 %v1435_v56, 0.0 }
 0x440   : > { %v1493_v21 = vmul.f32 1.442695, %v1490_v13  ;;  %v1499_v27 = vmul.f32 1.442695, %v1496_v14  ;;  %2243 = vpow2.f32 %v1509_v18  ;;  %v1505_v61 = vmul.f32 1.442695, %v1502_v24 }
 0x441   : > { %v1511_v1 = vmul.f32 1.442695, %v1508_v0 }
 0x442   : > { %2245 = vpow2.f32 %v1493_v21 }
 0x443   : > { %2247 = vpow2.f32 %v1499_v27 }
 0x444   : > { %2249 = vpow2.f32 %v1505_v61 }
 0x445   : > { %2251 = vpow2.f32 %v1511_v1 }
 0x44a   : > { %v2238_v17 = vpop.eup %2237 }
 0x44b   : > { %v2240_v5 = vpop.eup %2239 }
 0x44c   : > { %v1513_v6 = vadd.f32 %v2240_v5, %v2238_v17  ;;  %v2242_v26 = vpop.eup %2241 }
 0x44d   : > { %v2244_v35 = vpop.eup %2243 }
 0x44e   : > { %v1515_v7 = vadd.f32 %v2242_v26, %v1513_v6 }
 0x44f   : > { %v2246_v32 = vpop.eup %2245 }
 0x450   : > { %v2248_v36 = vpop.eup %2247  ;;  %v1517_v4 = vadd.f32 %v2244_v35, %v1515_v7 }
 0x451   : > { %v1514_v9 = vadd.f32 %v2248_v36, %v2246_v32  ;;  %v2250_v11 = vpop.eup %2249 }
 0x452   : > { %2253 = vrcp.f32 %v1517_v4  ;;  %v2252_v20 = vpop.eup %2251 }
 0x453   : > { %v1516_v12 = vadd.f32 %v2250_v11, %v1514_v9  ;;  %v2235_v9 = vld [vmem:[%s2857_s14 + $0x8] sm:$0xff]  }
 0x455   : > { %v1518_v22 = vadd.f32 %v2252_v20, %v1516_v12 }
 0x457   : > { %2255 = vrcp.f32 %v1518_v22  ;;  %v1977_v22 = vld [vmem:[%s2856_s13] ss:$0 sm:$0xff] }
 0x45f   : > { %v2254_v23 = vpop.eup %2253 }
 0x460   : > { %v1537_v30 = vmul.f32 %v2254_v23, %v2240_v5  ;;  %v1523_v33 = vmul.f32 %v2254_v23, %v2238_v17  ;;  %v1553_v34 = vmul.f32 %v2254_v23, %v2242_v26  ;;  %v1569_v31 = vmul.f32 %v2254_v23, %v2244_v35 }
 0x462   : > { %1541 = vperm.xlu1 %2227, %v1537_v30   ;;  %1527 = vperm.xlu0 %2226, %v1523_v33  }
 0x464   : > { %v2256_v37 = vpop.eup %2255 }
 0x465   : > { %v1538_v38 = vmul.f32 %v2256_v37, %v2248_v36  ;;  %v1554_v40 = vmul.f32 %v2256_v37, %v2250_v11  ;;  %v1524_v25 = vmul.f32 %v2256_v37, %v2246_v32  ;;  %v1570_v39 = vmul.f32 %v2256_v37, %v2252_v20  ;;  %v2236_v11 = vld [vmem:[%s2857_s14] sm:$0xff]  }
 0x466   : > { %1557 = vperm.xlu1 %2227, %v1553_v34  }
 0x467   : > { %1546 = vperm.xlu0 %2226, %v1538_v38  }
 0x46a   : > { %1532 = vperm.xlu1 %2227, %v1524_v25  }
 0x46b   : > { %1562 = vperm.xlu0 %2226, %v1554_v40  }
 0x46e   : > { %1573 = vperm.xlu1 %2227, %v1569_v31  }
 0x46f   : > { %1578 = vperm.xlu0 %2226, %v1570_v39  }
 0x472   : > { %1770 = vrot.lane.b32.xlu1 %v1066_v50, %s2864_s3 }
 0x473   : > { %1772 = vrot.lane.b32.xlu0 %v1067_v53, %s2864_s3 }
 0x476   : > { %1781 = vrot.lane.b32.xlu1 %v1252_v19, %s2328_s30 }
 0x477   : > { %1783 = vrot.lane.b32.xlu0 %v1253_v8, %s2328_s30  ;;  %s1987_s30 = sshll.u32 %s2446_s10, 8  ;;  %s2330_s10 = smov [#allocation3]  }
 0x478   : > { %s2786_s25 = scalar_lea.hbm %s2860_s17, %s1987_s30  ;;  %s2261_s28 = sshll.u32 %s2330_s10, 4  ;;  %s2262_s28 = int_to_ptr.vmem [resolvable:$false] %s2261_s28 }
 0x479   : > { %p2264_p0 = scmp.lt.s32.totalorder %s2789_s18, %s2262_s28 }
 0x47a   : > { %1792 = vrot.lane.b32.xlu1 %v1438_v3, %s2329_s23 }
 0x47b   : > { %1794 = vrot.lane.b32.xlu0 %v1439_v57, %s2329_s23  ;;  %s2263_s23 = scalar_lea.vmem %s2262_s28, 512 }
 0x47c   : > { %p2265_p1 = scmp.lt.s32.totalorder %s2263_s23, %s2257_s4 }
 0x47e   : > { %p2266_p2 = por %p2265_p1, %p2264_p0 }
 0x480   : > { %p2267_p3 = pnand %p2266_p2, %p2260_p13 }
 0x4dd   : > { %v1542_v62 = vpop.permute.xlu1 %1541  ;;  %v1528_v58 = vpop.permute.xlu0 %1527 }
 0x4de   : > { %v1549_v15 = vmul.f32 %v1542_v62, %v1066_v50  ;;  %v1535_v28 = vmul.f32 %v1528_v58, %v855_v49 }
 0x4e0   : > { %v1551_v18 = vadd.f32 %v1549_v15, %v1535_v28 }
 0x4e1   : > { %v1558_v59 = vpop.permute.xlu1 %1557 }
 0x4e2   : > { %v1547_v10 = vpop.permute.xlu0 %1546  ;;  %v1565_v60 = vmul.f32 %v1558_v59, %v1252_v19 }
 0x4e3   : > { %v1550_v63 = vmul.f32 %v1547_v10, %v1067_v53 }
 0x4e4   : > { %v1567_v0 = vadd.f32 %v1565_v60, %v1551_v18 }
 0x4e5   : > { %v1533_v16 = vpop.permute.xlu1 %1532 }
 0x4e6   : > { %v1563_v43 = vpop.permute.xlu0 %1562  ;;  %v1536_v47 = vmul.f32 %v1533_v16, %v856_v55 }
 0x4e7   : > { %v1566_v13 = vmul.f32 %v1563_v43, %v1253_v8 }
 0x4e8   : > { %v1552_v14 = vadd.f32 %v1550_v63, %v1536_v47 }
 0x4e9   : > { %v1574_v24 = vpop.permute.xlu1 %1573 }
 0x4ea   : > { %v1579_v21 = vpop.permute.xlu0 %1578  ;;  %v1568_v27 = vadd.f32 %v1566_v13, %v1552_v14  ;;  %v1581_v61 = vmul.f32 %v1574_v24, %v1438_v3 }
 0x4eb   : > { %v1582_v46 = vmul.f32 %v1579_v21, %v1439_v57 }
 0x4ec   : > { %v1583_v49 = vadd.f32 %v1581_v61, %v1567_v0 }
 0x4ed   : > { %v1584_v1 = vadd.f32 %v1582_v46, %v1568_v27  ;;  %v1771_v17 = vpop.permute.xlu1 %1770 }
 0x4ee   : > { %v1773_v52 = vpop.permute.xlu0 %1772  ;;  %1777 = vst.msk [vmem:[%s2610_s0] sm:$0xff] %vm1776_vm5, %v1771_v17 }
 0x4ef   : > { %v1588_v55 = vpack.c.bf16 %v1584_v1, %v1583_v49  ;;  %1778 = vst.msk [vmem:[%s2610_s0 + $0x8] sm:$0xff] %vm1776_vm5, %v1773_v52 }
 0x4f1   : > { %2158 = vmatmul.mubr.msk.bf16.vlgmr.msra.gmra.mxu1 %vm733_vm3, %v1588_v55  ;;  %v1782_v5 = vpop.permute.xlu1 %1781 }
 0x4f2   : > { %v1784_v6 = vpop.permute.xlu0 %1783  ;;  %1788 = vst.msk [vmem:[%s2610_s0] sm:$0xff] %vm1787_vm6, %v1782_v5  ;;  %2171 = vmatprep.mubr.msk.bf16.mxu1 %vm2320_vm0, %v2319_v2  ;;  %2168 = vmatpush3.bf16.msra.mxu1 %v2235_v9 }
 0x4f3   : > { %1789 = vst.msk [vmem:[%s2610_s0 + $0x8] sm:$0xff] %vm1787_vm6, %v1784_v6  ;;  %2169 = vmatprep.subr.bf16.mxu1 %v2319_v2 }
 0x4f5   : > { %v1793_v26 = vpop.permute.xlu1 %1792 }
 0x4f6   : > { %v1795_v35 = vpop.permute.xlu0 %1794  ;;  %1799 = vst.msk [vmem:[%s2610_s0] sm:$0xff] %vm1798_vm7, %v1793_v26  ;;  %2170 = vmatpush3.bf16.msra.mxu1 %v2236_v11 }
 0x4f7   : > { %1800 = vst.msk [vmem:[%s2610_s0 + $0x8] sm:$0xff] %vm1798_vm7, %v1795_v35 }
 0x4fa   : > { %v1676_v7 = vpop.f32.mrf.mxu0 }
 0x4fc   : > { %v2165_v32 = vpop.f32.mrf.mxu0 }
 0x4fe   : > { %v1679_v36 = vpop.f32.mrf.mxu0 }
 0x500   : > { %v2166_v4 = vpop.f32.mrf.mxu0 }
 0x5b1   : > { %v1629_v12 = vpop.f32.mrf.mxu1 }
 0x5b2   : > { %v1677_v20 = vadd.f32 %v1676_v7, %v1629_v12 }
 0x5b3   : > { %v2159_v23 = vpop.f32.mrf.mxu1 }
 0x5b4   : > { %v1690_v33 = vadd.f32 %v1977_v22, %v1677_v20 }
 0x5b5   : > { %v1632_v30 = vpop.f32.mrf.mxu1 }
 0x5b6   : > { %v1680_v34 = vadd.f32 %v1679_v36, %v1632_v30  ;;  %v1692_v37 = vmax.f32 %v1690_v33, 0.0 }
 0x5b7   : > { %v2160_v2 = vpop.f32.mrf.mxu1 }
 0x5b8   : > { %v1691_v31 = vadd.f32 %v1977_v22, %v1680_v34 }
 0x5ba   : > { %v1693_v38 = vmax.f32 %v1691_v31, 0.0 }
 0x5bc   : > { %v1698_v40 = vpack.c.bf16 %v1693_v38, %v1692_v37 }
 0x5be   : > { %2172 = vmatmul.mubr.msk.bf16.vlgmr.msra.gmra.mxu1 %vm810_vm4, %v1698_v40 }
 0x5bf   : > { %2270 = shalt.err (!%p2267_p3)
}
 0x5c0   : > { %s2271_s1 = scalar_lea.hbm %s2786_s25, 256  ;;  %s2275_s24 = scalar_lea.hbm %s2860_s17, 512 }
 0x5c1   : > { %p2272_p4 = scmp.ne.s32.totalorder %s2786_s25, %s2271_s1  ;;  %p2276_p9 = scmp.lt.s32.totalorder %s2786_s25, %s2860_s17 }
 0x5c2   : > { %p2277_p10 = scmp.lt.s32.totalorder %s2275_s24, %s2271_s1 }
 0x5c3   : > { %p2273_p7 = pnand %p2272_p4, %p2463_p5 }
 0x5c4   : > { %p2278_p11 = por %p2277_p10, %p2276_p9 }
 0x5c5   : > { %p2274_p8 = pneg %p2273_p7 }
 0x5c7   : > { %p2279_p12 = pnand %p2278_p11, %p2274_p8 }
 0x5c9   : > { %2282 = shalt.err (!%p2279_p12)
}
 0x5ca   : > { %s2331_s4 = smov 128   ;;  %s2878_s28 = smov 8   ;;  %v1978_v25 = vld [vmem:[%s2858_s15] ss:$0 sm:$0xff] }
 0x5cb   : > { %2175 = dma.vmem_to_hbm [thread:$0]  (%p2463_p5), %s2789_s18, 256, %s2786_s25, %s2793_s19, %s2331_s4, %s2331_s4, %s2878_s28  }
 0x5cc   : > { %s607_s30 = scalar_lea.vmem %s2859_s16, %s2494_s22 }
 0x67e   : > { %v1755_v39 = vpop.f32.mrf.mxu1 }
 0x67f   : > { %v1756_v41 = vadd.f32 %v1978_v25, %v1755_v39 }
 0x680   : > { %v2173_v42 = vpop.f32.mrf.mxu1 }
 0x681   : > { %v1762_v44 = vmax.f32 %v1756_v41, 0.0 }
 0x682   : > { %v1758_v45 = vpop.f32.mrf.mxu1 }
 0x683   : > { %1764 = vst.msk [vmem:[%s607_s30] sm:$0xff] %vm633_vm2, %v1762_v44  ;;  %v1759_v48 = vadd.f32 %v1978_v25, %v1758_v45 }
 0x684   : > { %v2174_v50 = vpop.f32.mrf.mxu1 }
 0x685   : > { %v1763_v51 = vmax.f32 %v1759_v48, 0.0 }
 0x687   : > { %1765 = vst.msk [vmem:[%s607_s30 + $0x8] sm:$0xff] %vm633_vm2, %v1763_v51 }
 0x688 PF: > { %p2181_p5 = scmp.ge.s32.totalorder %s2317_s29, 2  ;;  %s1847_s20 = sand.u32 1, %s2305_s26  }
 0x689   : > { %s1848_s22 = scalar_lea.sflag [#allocation4], %s1847_s20 }
 0x68a   : > { %p2178_p13 = pnand %p2181_p5, %p2467_p6 }
 0x68c   : > { %p2179_p0 = pneg %p2178_p13 }
 0x68e   : > { %2300 = dma.done.wait (%p2179_p0), %s1848_s22, 256  }
 0x68f   : > { %2302 = vsyncadd (%p2179_p0), %s1848_s22, 4294967040  ;;  %s2879_s29 = sld [smem:[#allocation7_spill]]  ;;  %s2882_s26 = smov %s2309_s27 }
 0x690   : > { %s2880_s25 = sld [smem:[#allocation6_spill]] }
 0x691   : > { %s2881_s28 = sld [smem:[#allocation8_spill]] }
 0x695   : > { %p30_p1 = scmp.ge.s32.totalorder %s2879_s29, 4  }
 0x696   : > { %s2883_s27 = smov %s2880_s25 }
 0x697   :  { %32 = sbr.rel (!%p30_p1) target bundleno = 8 (0x8), region = 137 }
 0x69c   :  { %1853 = vsyncpa [#allocation4], 1 }
 0x69d   :  { %1855 = vsyncpa [#allocation4 + $0x1], 1 }

// kernel: _lambda_.9
= control target key start
LH: loop header
LB: loop body
LE: loop exit
PB: predicated region body
PF: predicated region fallthrough
CT: control target
= control target key end

     0   :  { %s1979_s20 = smov 0   ;;  %s2265_s0 = inlined_call_operand.vmem [shape: f32[32,16], index: 0, kind: input, shape index: {}]   ;;  %s2266_s1 = inlined_call_operand.vmem [shape: f32[32,64], index: 1, kind: input, shape index: {}]   ;;  %s2267_s2 = inlined_call_operand.vmem [shape: bf16[16,32], index: 2, kind: input, shape index: {}]   ;;  %s2268_s3 = inlined_call_operand.vmem [shape: bf16[16,32], index: 3, kind: input, shape index: {}]   ;;  %s2269_s4 = inlined_call_operand.vmem [shape: f32[1,32], index: 4, kind: input, shape index: {}]   ;;  %s2270_s5 = inlined_call_operand.vmem [shape: bf16[32,8], index: 5, kind: input, shape index: {}]   ;;  %s2271_s6 = inlined_call_operand.vmem [shape: f32[1,8], index: 6, kind: input, shape index: {}]   ;;  %s2272_s7 = inlined_call_operand.vmem [shape: bf16[32,1], index: 7, kind: input, shape index: {}]   ;;  %s2273_s8 = inlined_call_operand.<no memory space> [shape: f32[1,1], index: 8, kind: input, shape index: {}]   ;;  %s2274_s9 = inlined_call_operand.vmem [shape: bf16[16,32], index: 9, kind: input, shape index: {}]   ;;  %s2275_s10 = inlined_call_operand.vmem [shape: bf16[8,32], index: 10, kind: input, shape index: {}]   ;;  %s2276_s11 = inlined_call_operand.vmem [shape: f32[1,32], index: 11, kind: input, shape index: {}]   ;;  %s2277_s12 = inlined_call_operand.vmem [shape: bf16[32,16], index: 12, kind: input, shape index: {}]   ;;  %s2278_s13 = inlined_call_operand.vmem [shape: f32[1,16], index: 13, kind: input, shape index: {}]   ;;  %s2279_s14 = inlined_call_operand.vmem [shape: f32[32,16], index: 14, kind: output, shape index: {0}]   ;;  %s2280_s15 = inlined_call_operand.vmem [shape: f32[32,32], index: 15, kind: output, shape index: {1}]  }
   0x1   :  { %v21_v0 = vstv %s2273_s8 }
   0x2   :  { %22 = vst [vmem:[#allocation2] sm:$0x1] %v21_v0 }
   0x3 LB: > { %s1631_s21 = sadd.s32 4294967295, %s1885_s20   ;;  %p1635_p0 = scmp.ge.s32.totalorder %s1885_s20, 1  ;;  %s1885_s20 = sphi %s1979_s20, %s28_s20  }
   0x4   : > { %p454_p1 = scmp.lt.s32.totalorder %s1885_s20, 3 }
   0x6   : > { %p455_p2 = pnand %p1635_p0, %p454_p1 }
   0x7   : > { %s1636_s25 = sshll.u32 (!%p455_p2), %s1631_s21, 1  ;;  %s1889_s18 = smov (!%p455_p2), 112  }
   0x8   : > { %458 = sbr.rel (%p455_p2) target bundleno = 1650 (0x672), region = 76  ;;  %p513_p3 = scmp.lt.s32.totalorder (!%p455_p2), %s1636_s25, 3 }
   0x9   : > { %s1890_s28 = smov (!%p455_p2), 96   ;;  %s1891_s16 = smov (!%p455_p2), 80  }
   0xa   : > { %s1893_s27 = smov (!%p455_p2), 8  }
   0xd   : > { %v1850_v1 = vld [vmem:[%s2268_s3] sm:$0xff]   ;;  %v1887_v2 = vmov 0.0   ;;  %vm1888_vm0 = vmmov 0   ;;  %s2282_s25 = smov (!%p513_p3, %s1636_s25), 3  ;;  %vm557_vm1 = vcmask 130048   ;;  %v2026_v10 = vld [vmem:[%s2270_s5 + $0x8] sm:$0xff]  }
   0xe   : > { %1717 = vmatprep.subr.bf16.mxu0 %v1887_v2  ;;  %1723 = vmatprep.subr.bf16.mxu1 %v1887_v2  ;;  %v1995_v3 = vld [vmem:[%s2267_s2] sm:$0xff]   ;;  %s2004_s26 = sshll.u32 %s2282_s25, 3  ;;  %v2031_v11 = vld [vmem:[%s2272_s7 + $0x8] sm:$0xff]   ;;  %vm681_vm2 = vcmask 261120   ;;  %vm1315_vm3 = vcmask 64512   ;;  %vm1319_vm4 = vcmask 1043456  }
   0xf   : > { %1718 = vmatpush3.bf16.msra.mxu0 %v1850_v1  ;;  %1719 = vmatprep.mubr.msk.bf16.mxu0 %vm1888_vm0, %v1887_v2  ;;  %s516_s29 = scalar_lea.vmem %s2265_s0, %s2004_s26  ;;  %s522_s17 = scalar_lea.vmem %s2266_s1, %s2004_s26  ;;  %v2040_v12 = vld [vmem:[%s2270_s5] sm:$0xff]   ;;  %vm1504_vm5 = vcmask 130112   ;;  %vm1515_vm6 = vcmask 195712   ;;  %vm1526_vm7 = vcmask 261312  }
  0x10   : > { %1724 = vmatpush3.bf16.msra.mxu1 %v1995_v3  ;;  %1725 = vmatprep.mubr.msk.bf16.mxu1 %vm1888_vm0, %v1887_v2  ;;  %v537_v4 = vld [vmem:[%s516_s29] sm:$0xff]  ;;  %v538_v5 = vld [vmem:[%s516_s29 + $0x8] sm:$0xff]  ;;  %s2091_s22 = scalar_lea.vmem %s2280_s15, %s2004_s26  ;;  %s1895_s29 = smov 24  }
  0x11   : > { %1729 = vmatprep.subr.bf16.mxu0 %v1887_v2  ;;  %1737 = vmatprep.subr.bf16.mxu1 %v1887_v2  ;;  %v2014_v6 = vpack.c.bf16 %v538_v5, %v537_v4  ;;  %v539_v7 = vld [vmem:[%s522_s17] sm:$0xff]  ;;  %v540_v8 = vld [vmem:[%s522_s17 + $0x8] sm:$0xff]  ;;  %s528_s25 = scalar_lea.vmem %s2279_s14, %s2004_s26 }
  0x12   : > { %v604_v9 = vpack.c.bf16 %v540_v8, %v539_v7  ;;  %v2045_v13 = vld [vmem:[%s2272_s7] sm:$0xff]  }
  0x13   : > { %1720 = vmatmul.mubr.msk.bf16.vlgmr.msra.gmra.mxu0 %vm557_vm1, %v2014_v6  ;;  %v1644_v14 = vld [vmem:[%s2269_s4] ss:$0 sm:$0xff] }
  0x14   : > { %1726 = vmatmul.mubr.msk.bf16.vlgmr.msra.gmra.mxu1 %vm557_vm1, %v604_v9  ;;  %795 = vrot.lane.b32.xlu0 %v604_v9, %s1889_s18  ;;  %v2082_v31 = vld [vmem:[%s2271_s6] ss:$0 sm:$0xff] }
  0x15   : > { %1733 = vmatprep.mubr.msk.bf16.mxu0 %vm1888_vm0, %v1887_v2  ;;  %1741 = vmatprep.mubr.msk.bf16.mxu1 %vm1888_vm0, %v1887_v2  ;;  %v2127_v54 = vld [vmem:[#allocation2] ss:$0 sm:$0xff] }
  0x16   : > { %1730 = vmatpush3.bf16.msra.mxu0 %v2026_v10  ;;  %1738 = vmatpush3.bf16.msra.mxu1 %v2031_v11 }
  0x17   : > { %1731 = vmatprep.subr.bf16.mxu0 %v1887_v2  ;;  %1739 = vmatprep.subr.bf16.mxu1 %v1887_v2 }
  0x18   : > { %933 = vrot.lane.b32.xlu0 %v604_v9, %s1890_s28  ;;  %1071 = vrot.lane.b32.xlu1 %v604_v9, %s1891_s16  ;;  %s1894_s28 = smov 16  }
  0x1a   : > { %1732 = vmatpush3.bf16.msra.mxu0 %v2040_v12  ;;  %1740 = vmatpush3.bf16.msra.mxu1 %v2045_v13 }
  0x1b   : > { %1745 = vmatprep.subr.bf16.mxu0 %v1887_v2  ;;  %1751 = vmatprep.subr.bf16.mxu1 %v1887_v2 }
  0x86   : > { %v796_v30 = vpop.permute.xlu0 %795 }
  0x8a   : > { %v934_v53 = vpop.permute.xlu0 %933 }
  0xd3   : > { %v595_v15 = vpop.f32.mrf.mxu0 }
  0xd4   : > { %v2054_v16 = vadd.f32 %v1644_v14, %v595_v15  ;;  %v648_v17 = vpop.f32.mrf.mxu1 }
  0xd5   : > { %v1721_v18 = vpop.f32.mrf.mxu0 }
  0xd6   : > { %v1727_v19 = vpop.f32.mrf.mxu1  ;;  %v649_v21 = vadd.f32 %v648_v17, %v2054_v16 }
  0xd7   : > { %v598_v20 = vpop.f32.mrf.mxu0 }
  0xd8   : > { %v2057_v22 = vadd.f32 %v1644_v14, %v598_v20  ;;  %v651_v23 = vpop.f32.mrf.mxu1  ;;  %v655_v27 = vmax.f32 %v649_v21, 0.0 }
  0xd9   : > { %v1722_v24 = vpop.f32.mrf.mxu0 }
  0xda   : > { %v652_v25 = vadd.f32 %v651_v23, %v2057_v22  ;;  %v1728_v26 = vpop.f32.mrf.mxu1 }
  0xdc   : > { %v656_v28 = vmax.f32 %v652_v25, 0.0 }
  0xde   : > { %v661_v29 = vpack.c.bf16 %v656_v28, %v655_v27  ;;  %v1072_v27 = vpop.permute.xlu1 %1071 }
  0xe0   : > { %1734 = vmatmul.mubr.msk.bf16.vlgmr.msra.gmra.mxu0 %vm681_vm2, %v661_v29  ;;  %1742 = vmatmul.mubr.msk.bf16.vlgmr.msra.gmra.mxu1 %vm681_vm2, %v661_v29 }
  0xe1   : > { %1746 = vmatpush3.bf16.msra.mxu0 %v1995_v3  ;;  %1747 = vmatprep.mubr.msk.bf16.mxu0 %vm1888_vm0, %v1887_v2 }
  0xe2   : > { %1752 = vmatpush3.bf16.msra.mxu1 %v2026_v10  ;;  %1759 = vmatprep.subr.bf16.mxu0 %v1887_v2 }
  0xe3   : > { %1753 = vmatprep.subr.bf16.mxu1 %v1887_v2  ;;  %1755 = vmatprep.mubr.msk.bf16.mxu1 %vm1888_vm0, %v1887_v2 }
  0xe6   : > { %1754 = vmatpush3.bf16.msra.mxu1 %v2040_v12 }
  0xe7   : > { %1767 = vmatprep.subr.bf16.mxu1 %v1887_v2 }
  0xe8   : > { %1748 = vmatmul.mubr.msk.bf16.vlgmr.msra.gmra.mxu0 %vm557_vm1, %v796_v30 }
  0xe9   : > { %1760 = vmatpush3.bf16.msra.mxu0 %v2031_v11  ;;  %1763 = vmatprep.mubr.msk.bf16.mxu0 %vm1888_vm0, %v1887_v2 }
  0xea   : > { %1761 = vmatprep.subr.bf16.mxu0 %v1887_v2 }
  0xed   : > { %1762 = vmatpush3.bf16.msra.mxu0 %v2045_v13 }
  0xee   : > { %1773 = vmatprep.subr.bf16.mxu0 %v1887_v2 }
 0x1a0   : > { %v719_v32 = vpop.f32.mrf.mxu0  ;;  %v785_v33 = vpop.f32.mrf.mxu1 }
 0x1a1   : > { %v2085_v34 = vadd.f32 %v2082_v31, %v719_v32  ;;  %v2130_v55 = vadd.f32 %v2127_v54, %v785_v33 }
 0x1a2   : > { %v1735_v35 = vpop.f32.mrf.mxu0  ;;  %v1743_v36 = vpop.f32.mrf.mxu1 }
 0x1a3   : > { %v726_v37 = vmax.f32 %v2085_v34, 0.0  ;;  %v792_v61 = vmax.f32 %v2130_v55, 0.0 }
 0x1a4   : > { %v722_v38 = vpop.f32.mrf.mxu0  ;;  %v788_v39 = vpop.f32.mrf.mxu1 }
 0x1a5   : > { %1494 = vst.msk [vmem:[%s2091_s22] sm:$0xff] %vm1315_vm3, %v726_v37  ;;  %v2099_v40 = vadd.f32 %v2082_v31, %v722_v38  ;;  %v2139_v62 = vadd.f32 %v2127_v54, %v788_v39 }
 0x1a6   : > { %v1736_v41 = vpop.f32.mrf.mxu0  ;;  %v1744_v42 = vpop.f32.mrf.mxu1 }
 0x1a7   : > { %v727_v43 = vmax.f32 %v2099_v40, 0.0  ;;  %v793_v9 = vmax.f32 %v2139_v62, 0.0 }
 0x1a8   : > { %v834_v44 = vpop.f32.mrf.mxu0 }
 0x1a9   : > { %1495 = vst.msk [vmem:[%s2091_s22 + $0x8] sm:$0xff] %vm1315_vm3, %v727_v43  ;;  %v835_v46 = vadd.f32 %v834_v44, %v2054_v16 }
 0x1aa   : > { %v1749_v45 = vpop.f32.mrf.mxu0 }
 0x1ab   : > { %v841_v50 = vmax.f32 %v835_v46, 0.0 }
 0x1ac   : > { %v837_v47 = vpop.f32.mrf.mxu0 }
 0x1ad   : > { %v838_v48 = vadd.f32 %v837_v47, %v2057_v22 }
 0x1ae   : > { %v1750_v49 = vpop.f32.mrf.mxu0 }
 0x1af   : > { %v842_v51 = vmax.f32 %v838_v48, 0.0 }
 0x1b1   : > { %v843_v52 = vpack.c.bf16 %v842_v51, %v841_v50  ;;  %v1892_v51 = vmov 0  }
 0x1b2   : > { %1849 = vset.pattern.permute.xlu0 %v1892_v51  ;;  %1848 = vset.pattern.permute.xlu1 %v1892_v51 }
 0x1b3   : > { %1756 = vmatmul.mubr.msk.bf16.vlgmr.msra.gmra.mxu1 %vm681_vm2, %v843_v52  ;;  %1764 = vmatmul.mubr.msk.bf16.vlgmr.msra.gmra.mxu0 %vm681_vm2, %v843_v52 }
 0x1b4   : > { %1768 = vmatpush3.bf16.msra.mxu1 %v1995_v3  ;;  %1769 = vmatprep.mubr.msk.bf16.mxu1 %vm1888_vm0, %v1887_v2 }
 0x1b5   : > { %1774 = vmatpush3.bf16.msra.mxu0 %v2026_v10  ;;  %1781 = vmatprep.subr.bf16.mxu1 %v1887_v2 }
 0x1b6   : > { %1775 = vmatprep.subr.bf16.mxu0 %v1887_v2  ;;  %1777 = vmatprep.mubr.msk.bf16.mxu0 %vm1888_vm0, %v1887_v2 }
 0x1b9   : > { %1776 = vmatpush3.bf16.msra.mxu0 %v2040_v12 }
 0x1ba   : > { %1789 = vmatprep.subr.bf16.mxu0 %v1887_v2 }
 0x1bb   : > { %1770 = vmatmul.mubr.msk.bf16.vlgmr.msra.gmra.mxu1 %vm557_vm1, %v934_v53 }
 0x1bc   : > { %1782 = vmatpush3.bf16.msra.mxu1 %v2031_v11  ;;  %1785 = vmatprep.mubr.msk.bf16.mxu1 %vm1888_vm0, %v1887_v2 }
 0x1bd   : > { %1783 = vmatprep.subr.bf16.mxu1 %v1887_v2 }
 0x1c0   : > { %1784 = vmatpush3.bf16.msra.mxu1 %v2045_v13 }
 0x1c1   : > { %1795 = vmatprep.subr.bf16.mxu1 %v1887_v2 }
 0x273   : > { %v2132_v56 = vpop.f32.mrf.mxu1  ;;  %v924_v57 = vpop.f32.mrf.mxu0 }
 0x274   : > { %v2135_v58 = vadd.f32 %v2127_v54, %v924_v57 }
 0x275   : > { %v1757_v59 = vpop.f32.mrf.mxu1  ;;  %v1765_v60 = vpop.f32.mrf.mxu0 }
 0x276   : > { %v931_v63 = vmax.f32 %v2135_v58, 0.0 }
 0x277   : > { %v2142_v0 = vpop.f32.mrf.mxu1  ;;  %v927_v1 = vpop.f32.mrf.mxu0 }
 0x278   : > { %v1209_v4 = vmax.f32 %v792_v61, %v931_v63  ;;  %v2149_v5 = vadd.f32 %v2127_v54, %v927_v1 }
 0x279   : > { %v1758_v7 = vpop.f32.mrf.mxu1  ;;  %v1766_v8 = vpop.f32.mrf.mxu0 }
 0x27a   : > { %v932_v14 = vmax.f32 %v2149_v5, 0.0 }
 0x27b   : > { %v972_v15 = vpop.f32.mrf.mxu1 }
 0x27c   : > { %v1210_v17 = vmax.f32 %v793_v9, %v932_v14  ;;  %v973_v19 = vadd.f32 %v972_v15, %v2054_v16 }
 0x27d   : > { %v1771_v18 = vpop.f32.mrf.mxu1 }
 0x27e   : > { %v979_v24 = vmax.f32 %v973_v19, 0.0 }
 0x27f   : > { %v975_v20 = vpop.f32.mrf.mxu1 }
 0x280   : > { %v976_v21 = vadd.f32 %v975_v20, %v2057_v22 }
 0x281   : > { %v1772_v23 = vpop.f32.mrf.mxu1 }
 0x282   : > { %v980_v25 = vmax.f32 %v976_v21, 0.0 }
 0x284   : > { %v981_v26 = vpack.c.bf16 %v980_v25, %v979_v24 }
 0x286   : > { %1778 = vmatmul.mubr.msk.bf16.vlgmr.msra.gmra.mxu0 %vm681_vm2, %v981_v26  ;;  %1786 = vmatmul.mubr.msk.bf16.vlgmr.msra.gmra.mxu1 %vm681_vm2, %v981_v26 }
 0x287   : > { %1790 = vmatpush3.bf16.msra.mxu0 %v1995_v3  ;;  %1791 = vmatprep.mubr.msk.bf16.mxu0 %vm1888_vm0, %v1887_v2 }
 0x288   : > { %1803 = vmatprep.subr.bf16.mxu0 %v1887_v2  ;;  %1796 = vmatpush3.bf16.msra.mxu1 %v2026_v10 }
 0x289   : > { %1797 = vmatprep.subr.bf16.mxu1 %v1887_v2  ;;  %1799 = vmatprep.mubr.msk.bf16.mxu1 %vm1888_vm0, %v1887_v2 }
 0x28c   : > { %1798 = vmatpush3.bf16.msra.mxu1 %v2040_v12 }
 0x28d   : > { %1811 = vmatprep.subr.bf16.mxu1 %v1887_v2 }
 0x28e   : > { %1792 = vmatmul.mubr.msk.bf16.vlgmr.msra.gmra.mxu0 %vm557_vm1, %v1072_v27 }
 0x28f   : > { %1804 = vmatpush3.bf16.msra.mxu0 %v2031_v11  ;;  %1807 = vmatprep.mubr.msk.bf16.mxu0 %vm1888_vm0, %v1887_v2 }
 0x290   : > { %1805 = vmatprep.subr.bf16.mxu0 %v1887_v2 }
 0x293   : > { %1806 = vmatpush3.bf16.msra.mxu0 %v2045_v13 }
 0x294   : > { %1817 = vmatprep.subr.bf16.mxu0 %v1887_v2 }
 0x346   : > { %v2178_v3 = vpop.f32.mrf.mxu0  ;;  %v1062_v10 = vpop.f32.mrf.mxu1 }
 0x347   : > { %v1063_v12 = vadd.f32 %v2127_v54, %v1062_v10 }
 0x348   : > { %v1779_v28 = vpop.f32.mrf.mxu0  ;;  %v1787_v29 = vpop.f32.mrf.mxu1 }
 0x349   : > { %v1069_v30 = vmax.f32 %v1063_v12, 0.0 }
 0x34a   : > { %v2181_v32 = vpop.f32.mrf.mxu0  ;;  %v1065_v11 = vpop.f32.mrf.mxu1 }
 0x34b   : > { %v1211_v33 = vmax.f32 %v1209_v4, %v1069_v30  ;;  %v1066_v35 = vadd.f32 %v2127_v54, %v1065_v11 }
 0x34c   : > { %v1780_v36 = vpop.f32.mrf.mxu0  ;;  %v1788_v38 = vpop.f32.mrf.mxu1 }
 0x34d   : > { %v1070_v39 = vmax.f32 %v1066_v35, 0.0 }
 0x34e   : > { %v1110_v13 = vpop.f32.mrf.mxu0 }
 0x34f   : > { %v1212_v41 = vmax.f32 %v1210_v17, %v1070_v39  ;;  %v1111_v44 = vadd.f32 %v1110_v13, %v2054_v16 }
 0x350   : > { %v1793_v42 = vpop.f32.mrf.mxu0 }
 0x351   : > { %v1117_v48 = vmax.f32 %v1111_v44, 0.0 }
 0x352   : > { %v1113_v45 = vpop.f32.mrf.mxu0 }
 0x353   : > { %v1114_v46 = vadd.f32 %v1113_v45, %v2057_v22 }
 0x354   : > { %v1794_v47 = vpop.f32.mrf.mxu0 }
 0x355   : > { %v1118_v49 = vmax.f32 %v1114_v46, 0.0 }
 0x357   : > { %v1119_v50 = vpack.c.bf16 %v1118_v49, %v1117_v48 }
 0x359   : > { %1800 = vmatmul.mubr.msk.bf16.vlgmr.msra.gmra.mxu1 %vm681_vm2, %v1119_v50  ;;  %1808 = vmatmul.mubr.msk.bf16.vlgmr.msra.gmra.mxu0 %vm681_vm2, %v1119_v50 }
 0x35a   : > { %1819 = vmatprep.mubr.msk.bf16.mxu0 %vm1888_vm0, %v1887_v2  ;;  %1813 = vmatprep.mubr.msk.bf16.mxu1 %vm1888_vm0, %v1887_v2 }
 0x419   : > { %v2192_v16 = vpop.f32.mrf.mxu1  ;;  %v1200_v22 = vpop.f32.mrf.mxu0 }
 0x41a   : > { %v1201_v52 = vadd.f32 %v2127_v54, %v1200_v22 }
 0x41b   : > { %v1801_v53 = vpop.f32.mrf.mxu1  ;;  %v1809_v57 = vpop.f32.mrf.mxu0 }
 0x41c   : > { %v1207_v59 = vmax.f32 %v1201_v52, 0.0  ;;  %v882_v52 = vadd.f32 %v2082_v31, %v2132_v56  ;;  %v1856_v53 = vld [vmem:[%s2274_s9] sm:$0xff]   ;;  %v885_v56 = vadd.f32 %v2082_v31, %v2142_v0 }
 0x41d   : > { %v2195_v60 = vpop.f32.mrf.mxu1  ;;  %v1203_v1 = vpop.f32.mrf.mxu0  ;;  %v1313_v57 = vld [vmem:[%s2275_s10] sm:$0xf]  ;;  %1818 = vmatpush3.bf16.msra.mxu0 %v1856_v53 }
 0x41e   : > { %v1213_v4 = vmax.f32 %v1211_v33, %v1207_v59  ;;  %v1204_v7 = vadd.f32 %v2127_v54, %v1203_v1  ;;  %v1020_v1 = vadd.f32 %v2082_v31, %v2178_v3  ;;  %v889_v3 = vmax.f32 %v885_v56, 0.0 }
 0x41f   : > { %v1802_v8 = vpop.f32.mrf.mxu1  ;;  %v1810_v15 = vpop.f32.mrf.mxu0 }
 0x420   : > { %v1215_v17 = vsub.f32 %v792_v61, %v1213_v4  ;;  %v1221_v18 = vsub.f32 %v931_v63, %v1213_v4  ;;  %v1227_v19 = vsub.f32 %v1069_v30, %v1213_v4  ;;  %v1233_v20 = vsub.f32 %v1207_v59, %v1213_v4  ;;  %1820 = vmatmul.mubr.msk.bf16.vlgmr.msra.gmra.mxu0 %vm557_vm1, %v2014_v6 }
 0x421   : > { %v1208_v21 = vmax.f32 %v1204_v7, 0.0  ;;  %v888_v59 = vmax.f32 %v882_v52, 0.0  ;;  %v1321_v4 = vsel %vm1319_vm4, %v1313_v57, 0  ;;  %v1026_v7 = vmax.f32 %v1020_v1, 0.0 }
 0x422   : > { %v1217_v23 = vmul.f32 1.442695, %v1215_v17  ;;  %v1223_v24 = vmul.f32 1.442695, %v1221_v18  ;;  %v1229_v25 = vmul.f32 1.442695, %v1227_v19  ;;  %1812 = vmatpush3.bf16.msra.mxu1 %v1321_v4  ;;  %v1158_v8 = vadd.f32 %v2082_v31, %v2192_v16 }
 0x423   : > { %v1214_v26 = vmax.f32 %v1212_v41, %v1208_v21  ;;  %v1235_v27 = vmul.f32 1.442695, %v1233_v20  ;;  %1823 = vmatprep.subr.bf16.mxu1 %v1887_v2  ;;  %v1023_v15 = vadd.f32 %v2082_v31, %v2181_v32  ;;  %v1161_v18 = vadd.f32 %v2082_v31, %v2195_v60 }
 0x424   : > { %1859 = vpow2.f32 %v1217_v23  ;;  %v1164_v17 = vmax.f32 %v1158_v8, 0.0 }
 0x425   : > { %1861 = vpow2.f32 %v1223_v24  ;;  %v1216_v54 = vsub.f32 %v793_v9, %v1214_v26  ;;  %v1222_v55 = vsub.f32 %v932_v14, %v1214_v26  ;;  %v1228_v61 = vsub.f32 %v1070_v39, %v1214_v26 }
 0x426   : > { %v1234_v10 = vsub.f32 %v1208_v21, %v1214_v26  ;;  %1863 = vpow2.f32 %v1229_v25  ;;  %v1027_v0 = vmax.f32 %v1023_v15, 0.0  ;;  %v1165_v16 = vmax.f32 %v1161_v18, 0.0 }
 0x427   : > { %v1219_v58 = vmul.f32 1.442695, %v1216_v54  ;;  %v1225_v63 = vmul.f32 1.442695, %v1222_v55  ;;  %1865 = vpow2.f32 %v1235_v27  ;;  %v1231_v12 = vmul.f32 1.442695, %v1228_v61 }
 0x428   : > { %v1237_v28 = vmul.f32 1.442695, %v1234_v10 }
 0x429   : > { %1867 = vpow2.f32 %v1219_v58 }
 0x42a   : > { %1869 = vpow2.f32 %v1225_v63 }
 0x42b   : > { %1871 = vpow2.f32 %v1231_v12 }
 0x42c   : > { %1873 = vpow2.f32 %v1237_v28 }
 0x431   : > { %v1860_v29 = vpop.eup %1859 }
 0x432   : > { %v1862_v30 = vpop.eup %1861 }
 0x433   : > { %v1239_v11 = vadd.f32 %v1862_v30, %v1860_v29  ;;  %v1864_v62 = vpop.eup %1863 }
 0x434   : > { %v1866_v9 = vpop.eup %1865 }
 0x435   : > { %v1241_v33 = vadd.f32 %v1864_v62, %v1239_v11 }
 0x436   : > { %v1868_v5 = vpop.eup %1867 }
 0x437   : > { %v1870_v14 = vpop.eup %1869  ;;  %v1243_v35 = vadd.f32 %v1866_v9, %v1241_v33 }
 0x438   : > { %v1240_v36 = vadd.f32 %v1870_v14, %v1868_v5  ;;  %v1872_v38 = vpop.eup %1871 }
 0x439   : > { %1875 = vrcp.f32 %v1243_v35  ;;  %v1874_v13 = vpop.eup %1873 }
 0x43a   : > { %v1242_v39 = vadd.f32 %v1872_v38, %v1240_v36  ;;  %v1857_v36 = vld [vmem:[%s2277_s12 + $0x8] sm:$0xff]  }
 0x43c   : > { %v1244_v41 = vadd.f32 %v1874_v13, %v1242_v39 }
 0x43e   : > { %1877 = vrcp.f32 %v1244_v41  ;;  %v1669_v41 = vld [vmem:[%s2276_s11] ss:$0 sm:$0xff] }
 0x446   : > { %v1876_v42 = vpop.eup %1875 }
 0x447   : > { %v1279_v44 = vmul.f32 %v1876_v42, %v1864_v62  ;;  %v1249_v45 = vmul.f32 %v1876_v42, %v1860_v29  ;;  %v1263_v46 = vmul.f32 %v1876_v42, %v1862_v30  ;;  %v1295_v47 = vmul.f32 %v1876_v42, %v1866_v9 }
 0x449   : > { %1283 = vperm.xlu0 %1849, %v1279_v44   ;;  %1253 = vperm.xlu1 %1848, %v1249_v45  }
 0x44b   : > { %v1878_v48 = vpop.eup %1877 }
 0x44c   : > { %v1250_v49 = vmul.f32 %v1878_v48, %v1868_v5  ;;  %v1264_v50 = vmul.f32 %v1878_v48, %v1870_v14  ;;  %v1280_v51 = vmul.f32 %v1878_v48, %v1872_v38  ;;  %v1296_v22 = vmul.f32 %v1878_v48, %v1874_v13  ;;  %v1858_v38 = vld [vmem:[%s2277_s12] sm:$0xff]  }
 0x44d   : > { %1267 = vperm.xlu1 %1848, %v1263_v46  }
 0x44e   : > { %1258 = vperm.xlu0 %1849, %v1250_v49  }
 0x451   : > { %1272 = vperm.xlu1 %1848, %v1264_v50  }
 0x452   : > { %1299 = vperm.xlu0 %1849, %v1295_v47  }
 0x455   : > { %1288 = vperm.xlu1 %1848, %v1280_v51   ;;  %v1670_v51 = vld [vmem:[%s2278_s13] ss:$0 sm:$0xff] }
 0x456   : > { %1498 = vrot.lane.b32.xlu0 %v888_v59, %s1893_s27 }
 0x459   : > { %1304 = vperm.xlu1 %1848, %v1296_v22  }
 0x45a   : > { %1509 = vrot.lane.b32.xlu0 %v1026_v7, %s1894_s28 }
 0x45d   : > { %1500 = vrot.lane.b32.xlu1 %v889_v3, %s1893_s27 }
 0x45e   : > { %1520 = vrot.lane.b32.xlu0 %v1164_v17, %s1895_s29 }
 0x461   : > { %1511 = vrot.lane.b32.xlu1 %v1027_v0, %s1894_s28 }
 0x465   : > { %1522 = vrot.lane.b32.xlu1 %v1165_v16, %s1895_s29 }
 0x4c4   : > { %v1284_v19 = vpop.permute.xlu0 %1283  ;;  %v1254_v6 = vpop.permute.xlu1 %1253 }
 0x4c5   : > { %v1261_v32 = vmul.f32 %v1254_v6, %v726_v37  ;;  %v1291_v55 = vmul.f32 %v1284_v19, %v1026_v7 }
 0x4c8   : > { %v1268_v20 = vpop.permute.xlu1 %1267 }
 0x4c9   : > { %v1259_v21 = vpop.permute.xlu0 %1258  ;;  %v1275_v23 = vmul.f32 %v1268_v20, %v888_v59 }
 0x4ca   : > { %v1262_v31 = vmul.f32 %v1259_v21, %v727_v43 }
 0x4cb   : > { %v1277_v26 = vadd.f32 %v1275_v23, %v1261_v32 }
 0x4cc   : > { %v1273_v24 = vpop.permute.xlu1 %1272 }
 0x4cd   : > { %v1300_v25 = vpop.permute.xlu0 %1299  ;;  %v1276_v27 = vmul.f32 %v1273_v24, %v889_v3  ;;  %v1293_v58 = vadd.f32 %v1291_v55, %v1277_v26 }
 0x4ce   : > { %v1307_v63 = vmul.f32 %v1300_v25, %v1164_v17 }
 0x4cf   : > { %v1278_v10 = vadd.f32 %v1276_v27, %v1262_v31 }
 0x4d0   : > { %v1289_v54 = vpop.permute.xlu1 %1288  ;;  %v1309_v28 = vadd.f32 %v1307_v63, %v1293_v58 }
 0x4d1   : > { %v1292_v60 = vmul.f32 %v1289_v54, %v1027_v0  ;;  %v1499_v61 = vpop.permute.xlu0 %1498 }
 0x4d2   : > { %1505 = vst.msk [vmem:[%s2091_s22] sm:$0xff] %vm1504_vm5, %v1499_v61 }
 0x4d3   : > { %v1294_v37 = vadd.f32 %v1292_v60, %v1278_v10 }
 0x4d4   : > { %v1305_v34 = vpop.permute.xlu1 %1304 }
 0x4d5   : > { %v1308_v12 = vmul.f32 %v1305_v34, %v1165_v16  ;;  %v1510_v30 = vpop.permute.xlu0 %1509 }
 0x4d6   : > { %1516 = vst.msk [vmem:[%s2091_s22] sm:$0xff] %vm1515_vm6, %v1510_v30 }
 0x4d7   : > { %v1310_v29 = vadd.f32 %v1308_v12, %v1294_v37 }
 0x4d8   : > { %v1501_v40 = vpop.permute.xlu1 %1500 }
 0x4d9   : > { %v1314_v43 = vpack.c.bf16 %v1310_v29, %v1309_v28  ;;  %1506 = vst.msk [vmem:[%s2091_s22 + $0x8] sm:$0xff] %vm1504_vm5, %v1501_v40  ;;  %v1521_v62 = vpop.permute.xlu0 %1520 }
 0x4da   : > { %1527 = vst.msk [vmem:[%s2091_s22] sm:$0xff] %vm1526_vm7, %v1521_v62 }
 0x4db   : > { %1814 = vmatmul.mubr.msk.bf16.vlgmr.msra.gmra.mxu1 %vm1315_vm3, %v1314_v43 }
 0x4dc   : > { %v1512_v11 = vpop.permute.xlu1 %1511  ;;  %1827 = vmatprep.mubr.msk.bf16.mxu1 %vm1888_vm0, %v1887_v2  ;;  %1824 = vmatpush3.bf16.msra.mxu1 %v1857_v36 }
 0x4dd   : > { %1517 = vst.msk [vmem:[%s2091_s22 + $0x8] sm:$0xff] %vm1515_vm6, %v1512_v11  ;;  %1825 = vmatprep.subr.bf16.mxu1 %v1887_v2 }
 0x4e0   : > { %v1523_v9 = vpop.permute.xlu1 %1522  ;;  %v1404_v33 = vpop.f32.mrf.mxu0  ;;  %1826 = vmatpush3.bf16.msra.mxu1 %v1858_v38 }
 0x4e1   : > { %1528 = vst.msk [vmem:[%s2091_s22 + $0x8] sm:$0xff] %vm1526_vm7, %v1523_v9 }
 0x4e2   : > { %v1821_v5 = vpop.f32.mrf.mxu0 }
 0x4e4   : > { %v1407_v14 = vpop.f32.mrf.mxu0 }
 0x4e6   : > { %v1822_v35 = vpop.f32.mrf.mxu0 }
 0x59b   : > { %v1357_v39 = vpop.f32.mrf.mxu1 }
 0x59c   : > { %v1405_v13 = vadd.f32 %v1404_v33, %v1357_v39 }
 0x59d   : > { %v1815_v42 = vpop.f32.mrf.mxu1 }
 0x59e   : > { %v1418_v45 = vadd.f32 %v1669_v41, %v1405_v13 }
 0x59f   : > { %v1360_v44 = vpop.f32.mrf.mxu1 }
 0x5a0   : > { %v1408_v46 = vadd.f32 %v1407_v14, %v1360_v44  ;;  %v1420_v49 = vmax.f32 %v1418_v45, 0.0 }
 0x5a1   : > { %v1816_v47 = vpop.f32.mrf.mxu1 }
 0x5a2   : > { %v1419_v48 = vadd.f32 %v1669_v41, %v1408_v46 }
 0x5a4   : > { %v1421_v2 = vmax.f32 %v1419_v48, 0.0 }
 0x5a6   : > { %v1426_v50 = vpack.c.bf16 %v1421_v2, %v1420_v49 }
 0x5a8   : > { %1828 = vmatmul.mubr.msk.bf16.vlgmr.msra.gmra.mxu1 %vm681_vm2, %v1426_v50 }
 0x668   : > { %v1483_v22 = vpop.f32.mrf.mxu1 }
 0x669   : > { %v1484_v52 = vadd.f32 %v1670_v51, %v1483_v22 }
 0x66a   : > { %v1829_v53 = vpop.f32.mrf.mxu1 }
 0x66b   : > { %v1490_v57 = vmax.f32 %v1484_v52, 0.0 }
 0x66c   : > { %v1486_v59 = vpop.f32.mrf.mxu1 }
 0x66d   : > { %1492 = vst.msk [vmem:[%s528_s25] sm:$0xff] %vm557_vm1, %v1490_v57  ;;  %v1487_v1 = vadd.f32 %v1670_v51, %v1486_v59 }
 0x66e   : > { %v1830_v4 = vpop.f32.mrf.mxu1 }
 0x66f   : > { %v1491_v56 = vmax.f32 %v1487_v1, 0.0 }
 0x671   : > { %1493 = vst.msk [vmem:[%s528_s25 + $0x8] sm:$0xff] %vm557_vm1, %v1491_v56 }
 0x672 PF: > { %s28_s20 = sadd.s32 1, %s1885_s20  }
 0x673   : > { %p25_p4 = scmp.ge.s32.totalorder %s28_s20, 4  }
 0x675   :  { %27 = sbr.rel (!%p25_p4) target bundleno = 3 (0x3), region = 121 }

</bundles_post_ra>
